<compile_context>
chip_gen: v6e
topology: v6e:2x2x1
jax: 0.10.0
libtpu: 0.0.40
codegen_flags: <defaults>
</compile_context>

<pallas_src>
import math
import functools

import jax
import jax.numpy as jnp
from jax.experimental import pallas as pl
from jax.experimental.pallas import tpu as pltpu


_EPS = 1e-5
_MASK_VALUE = -1e30   # large finite negative (avoids exp(-inf - -inf) NaNs)


def _vmem_limit_bytes():
    # ~75% of physical VMEM: ~96 MiB on v5e/v6e (128 MiB), ~48 MiB on v7x
    # (64 MiB); capped at 100 MiB.
    try:
        cap = int(pltpu.get_tpu_info().vmem_capacity_bytes)
    except Exception:
        cap = 64 * 1024 * 1024
    return int(min(cap * 3 // 4, 100 * 1024 * 1024))


# --------------------- Pass 1: LayerNorm1 + QKV projection -------------------

def _ln1_qkv_kernel(x_ref, ln1_g_ref, ln1_b_ref, w_qkv_ref, b_qkv_ref,
                    q_ref, k_ref, v_ref, *, scale):
    x = x_ref[0]                                   # (tq, C) fp32
    C = x.shape[-1]

    # LayerNorm 1 (fp32 elementwise)
    mu = jnp.mean(x, axis=-1, keepdims=True)
    var = jnp.mean((x - mu) ** 2, axis=-1, keepdims=True)
    y = (x - mu) * jax.lax.rsqrt(var + _EPS) * ln1_g_ref[0] + ln1_b_ref[0]

    # QKV projection: bf16 operands, fp32 accumulation on the MXU.
    qkv = jnp.dot(y.astype(jnp.bfloat16), w_qkv_ref[...],
                  preferred_element_type=jnp.float32) + b_qkv_ref[0]  # (tq, 3C)

    # Lane-dense (tq, C) stores; fold 1/sqrt(hd) into Q here (O(T*C) work).
    q_ref[0] = (qkv[:, :C] * scale).astype(q_ref.dtype)
    k_ref[0] = qkv[:, C:2 * C].astype(k_ref.dtype)
    v_ref[0] = qkv[:, 2 * C:].astype(v_ref.dtype)


# ------------------------ Pass 2: flash causal attention ---------------------

def _flash_attn_kernel(q_ref, k_ref, v_ref, o_ref, m_sc, l_sc, acc_sc):
    qi = pl.program_id(2)
    ki = pl.program_id(3)

    @pl.when(ki == 0)
    def _():
        m_sc[...] = jnp.full_like(m_sc, -jnp.inf)
        l_sc[...] = jnp.zeros_like(l_sc)
        acc_sc[...] = jnp.zeros_like(acc_sc)

    def update(s):
        m_prev = m_sc[...]
        m_new = jnp.maximum(m_prev, jnp.max(s, axis=-1, keepdims=True))
        alpha = jnp.exp(m_prev - m_new)
        p = jnp.exp(s - m_new)                     # (tq, tk) fp32
        l_sc[...] = alpha * l_sc[...] + jnp.sum(p, axis=-1, keepdims=True)
        acc_sc[...] = alpha * acc_sc[...] + jnp.dot(
            p.astype(jnp.bfloat16), v_ref[0],
            preferred_element_type=jnp.float32)
        m_sc[...] = m_new

    def scores():
        # q is pre-scaled by 1/sqrt(hd); bf16 operands, fp32 accumulation.
        return jax.lax.dot_general(q_ref[0], k_ref[0],
                                   (((1,), (1,)), ((), ())),
                                   preferred_element_type=jnp.float32)

    # Off-diagonal (ki < qi): fully unmasked tile, no iota/compare/select.
    @pl.when(ki < qi)
    def _():
        update(scores())

    # Diagonal tile: apply the causal mask (tq == tk).
    @pl.when(ki == qi)
    def _():
        s = scores()
        tq, tk = s.shape
        row = jax.lax.broadcasted_iota(jnp.int32, (tq, tk), 0)
        col = jax.lax.broadcasted_iota(jnp.int32, (tq, tk), 1)
        update(jnp.where(row >= col, s, _MASK_VALUE))

    # ki > qi: fully masked tile -> skipped (and its K/V DMA is a clamped
    # revisit of the diagonal block, so no extra HBM traffic).
    # TODO(synk): move the kv loop in-kernel (fori_loop + emit_pipeline) to
    # eliminate the ~nq^2/2 empty grid steps entirely.

    @pl.when(ki == pl.num_programs(3) - 1)
    def _():
        inv_l = pl.reciprocal(l_sc[...], approx=True)   # deferred softmax norm
        o_ref[0] = (acc_sc[...] * inv_l).astype(o_ref.dtype)


# ------------- Pass 3: c_proj + residual + LayerNorm2 + MLP + residual -------

def _proj_mlp_kernel(x_ref, attn_ref, w_ap_ref, b_ap_ref,
                     ln2_g_ref, ln2_b_ref,
                     w_fc_ref, b_fc_ref, w_mp_ref, b_mp_ref, o_ref):
    x = x_ref[0]                                   # (tq, C) fp32

    # Attention output projection: one full-depth (tq,C)x(C,C) MXU matmul.
    y = jnp.dot(attn_ref[0], w_ap_ref[...],
                preferred_element_type=jnp.float32)
    x1 = x + y + b_ap_ref[0]                       # residual 1

    # LayerNorm 2 (fp32 elementwise)
    mu = jnp.mean(x1, axis=-1, keepdims=True)
    var = jnp.mean((x1 - mu) ** 2, axis=-1, keepdims=True)
    z = (x1 - mu) * jax.lax.rsqrt(var + _EPS) * ln2_g_ref[0] + ln2_b_ref[0]

    # MLP with tanh-approx GELU (elementwise math in fp32, matmuls bf16).
    # TODO(synk): for GPT-2 medium/large/XL on v7x, stream w_fc/w_mp in
    # K-chunks via a reduction grid axis instead of holding them resident.
    h = jnp.dot(z.astype(jnp.bfloat16), w_fc_ref[...],
                preferred_element_type=jnp.float32) + b_fc_ref[0]     # (tq, 4C)
    c0 = math.sqrt(2.0 / math.pi)
    h = 0.5 * h * (1.0 + jnp.tanh(c0 * (h + 0.044715 * (h * h * h))))
    m = jnp.dot(h.astype(jnp.bfloat16), w_mp_ref[...],
                preferred_element_type=jnp.float32) + b_mp_ref[0]

    o_ref[0] = x1 + m                              # residual 2


# ---------------------------------- Wrapper ----------------------------------

def gpt2_block(x, params, n_head, *, tile_t=256):
    """x: (B, T, C) float32.  Requires C % 128 == 0 and (C // n_head) % 128 == 0."""
    B, T, C = x.shape
    assert C % n_head == 0
    hd = C // n_head
    assert C % 128 == 0, "C must be a multiple of 128"
    # TODO(synk): hd=64 (real GPT-2 small) needs head-batched attention blocks
    # (2 heads per lane block) to stay lane-dense; not implemented here.
    assert hd % 128 == 0, "lane-dense attention path requires head_dim % 128 == 0"
    tq = min(tile_t, T)
    assert T % tq == 0, "T must be a multiple of the sequence tile"
    nq = T // tq
    vmem_limit = _vmem_limit_bytes()

    (ln1_g, ln1_b, w_qkv, b_qkv, w_ap, b_ap,
     ln2_g, ln2_b, w_fc, b_fc, w_mp, b_mp) = params

    # bf16 weights for the MXU (accumulation stays fp32 in-kernel).
    w_qkv_bf = w_qkv.astype(jnp.bfloat16)
    w_ap_bf = w_ap.astype(jnp.bfloat16)
    w_fc_bf = w_fc.astype(jnp.bfloat16)
    w_mp_bf = w_mp.astype(jnp.bfloat16)

    def wspec(arr):
        nd = arr.ndim
        return pl.BlockSpec(arr.shape, lambda *_: (0,) * nd)

    # ---- Pass 1: LN1 + QKV (lane-dense (B,T,C) outputs, Q pre-scaled) ----
    qkv_shape = jax.ShapeDtypeStruct((B, T, C), jnp.bfloat16)
    seq_spec_bf = pl.BlockSpec((1, tq, C), lambda b, t: (b, t, 0))
    q_t, k_t, v_t = pl.pallas_call(
        functools.partial(_ln1_qkv_kernel, scale=1.0 / math.sqrt(hd)),
        out_shape=(qkv_shape, qkv_shape, qkv_shape),
        grid=(B, nq),
        in_specs=[pl.BlockSpec((1, tq, C), lambda b, t: (b, t, 0)),
                  wspec(ln1_g), wspec(ln1_b),
                  wspec(w_qkv_bf), wspec(b_qkv)],
        out_specs=(seq_spec_bf, seq_spec_bf, seq_spec_bf),
        compiler_params=pltpu.CompilerParams(
            dimension_semantics=("parallel", "parallel"),
            vmem_limit_bytes=vmem_limit),
        cost_estimate=pl.CostEstimate(
            flops=2 * B * T * C * 3 * C,
            transcendentals=B * T,
            bytes_accessed=4 * B * T * C + 3 * 2 * B * T * C + 2 * C * 3 * C),
    )(x, ln1_g, ln1_b, w_qkv_bf, b_qkv)

    # ---- Pass 2: flash causal attention ----
    # Head index folds into the lane-block of the (B,T,C) tensors (hd-wide
    # column); K/V index clamped to the diagonal so masked steps issue no DMA.
    q_spec = pl.BlockSpec((1, tq, hd), lambda b, h, qi, ki: (b, qi, h))
    kv_spec = pl.BlockSpec((1, tq, hd),
                           lambda b, h, qi, ki: (b, jnp.minimum(ki, qi), h))
    attn = pl.pallas_call(
        _flash_attn_kernel,
        out_shape=jax.ShapeDtypeStruct((B, T, C), jnp.bfloat16),
        grid=(B, n_head, nq, nq),
        in_specs=[q_spec, kv_spec, kv_spec],
        out_specs=pl.BlockSpec((1, tq, hd), lambda b, h, qi, ki: (b, qi, h)),
        scratch_shapes=[pltpu.VMEM((tq, 1), jnp.float32),
                        pltpu.VMEM((tq, 1), jnp.float32),
                        pltpu.VMEM((tq, hd), jnp.float32)],
        compiler_params=pltpu.CompilerParams(
            dimension_semantics=("parallel", "parallel", "parallel", "arbitrary"),
            vmem_limit_bytes=vmem_limit),
        cost_estimate=pl.CostEstimate(
            flops=2 * B * n_head * T * T * hd,          # ~half of dense 2*2*...
            transcendentals=B * n_head * T * T // 2,
            bytes_accessed=4 * 2 * B * T * C),
    )(q_t, k_t, v_t)

    # ---- Pass 3: c_proj + residual + LN2 + MLP + residual ----
    out = pl.pallas_call(
        _proj_mlp_kernel,
        out_shape=jax.ShapeDtypeStruct((B, T, C), jnp.float32),
        grid=(B, nq),
        in_specs=[pl.BlockSpec((1, tq, C), lambda b, t: (b, t, 0)),
                  pl.BlockSpec((1, tq, C), lambda b, t: (b, t, 0)),
                  wspec(w_ap_bf), wspec(b_ap),
                  wspec(ln2_g), wspec(ln2_b),
                  wspec(w_fc_bf), wspec(b_fc),
                  wspec(w_mp_bf), wspec(b_mp)],
        out_specs=pl.BlockSpec((1, tq, C), lambda b, t: (b, t, 0)),
        compiler_params=pltpu.CompilerParams(
            dimension_semantics=("parallel", "parallel"),
            vmem_limit_bytes=vmem_limit),
        cost_estimate=pl.CostEstimate(
            flops=2 * B * T * 9 * C * C,
            transcendentals=B * T * 4 * C,
            bytes_accessed=2 * 4 * B * T * C + 2 * B * T * C + 2 * 9 * C * C),
    )(x, attn, w_ap_bf, b_ap, ln2_g, ln2_b, w_fc_bf, b_fc, w_mp_bf, b_mp)
    return out


# --------------------------- Reference (plain JAX) ---------------------------

def gpt2_block_ref(x, params, n_head):
    (ln1_g, ln1_b, w_qkv, b_qkv, w_ap, b_ap,
     ln2_g, ln2_b, w_fc, b_fc, w_mp, b_mp) = params
    B, T, C = x.shape
    hd = C // n_head

    def ln(v, g, b):
        mu = jnp.mean(v, axis=-1, keepdims=True)
        var = jnp.mean((v - mu) ** 2, axis=-1, keepdims=True)
        return (v - mu) * jax.lax.rsqrt(var + _EPS) * g[0] + b[0]

    y = ln(x, ln1_g, ln1_b)
    qkv = y @ w_qkv + b_qkv[0]
    q, k, v = jnp.split(qkv, 3, axis=-1)
    q = q.reshape(B, T, n_head, hd).transpose(0, 2, 1, 3)
    k = k.reshape(B, T, n_head, hd).transpose(0, 2, 1, 3)
    v = v.reshape(B, T, n_head, hd).transpose(0, 2, 1, 3)
    att = (q @ jnp.swapaxes(k, -1, -2)) * (1.0 / math.sqrt(hd))
    mask = jnp.tril(jnp.ones((T, T), dtype=bool))
    att = jnp.where(mask[None, None], att, -jnp.inf)
    att = jax.nn.softmax(att, axis=-1)
    yatt = (att @ v).transpose(0, 2, 1, 3).reshape(B, T, C)
    yatt = yatt @ w_ap + b_ap[0]
    x1 = x + yatt

    z = ln(x1, ln2_g, ln2_b)
    h = z @ w_fc + b_fc[0]
    c0 = math.sqrt(2.0 / math.pi)
    h = 0.5 * h * (1.0 + jnp.tanh(c0 * (h + 0.044715 * h ** 3)))
    return x1 + (h @ w_mp + b_mp[0])


# ---------------------------------- Main -------------------------------------

if __name__ == "__main__":
    # Small but tiling-exercising config: lane-dense head_dim = 128, two
    # 256-wide sequence tiles, two heads, two batch rows.
    B, T, C, n_head = 2, 512, 256, 2

    key = jax.random.PRNGKey(0)
    keys = jax.random.split(key, 8)

    std = 0.02
    ln1_g = jnp.ones((1, C), jnp.float32)
    ln1_b = jnp.zeros((1, C), jnp.float32)
    w_qkv = std * jax.random.normal(keys[0], (C, 3 * C), jnp.float32)
    b_qkv = std * jax.random.normal(keys[1], (1, 3 * C), jnp.float32)
    w_ap = std * jax.random.normal(keys[2], (C, C), jnp.float32)
    b_ap = std * jax.random.normal(keys[3], (1, C), jnp.float32)
    ln2_g = jnp.ones((1, C), jnp.float32)
    ln2_b = jnp.zeros((1, C), jnp.float32)
    w_fc = std * jax.random.normal(keys[4], (C, 4 * C), jnp.float32)
    b_fc = std * jax.random.normal(keys[5], (1, 4 * C), jnp.float32)
    w_mp = std * jax.random.normal(keys[6], (4 * C, C), jnp.float32)
    b_mp = std * jax.random.normal(keys[7], (1, C), jnp.float32)

    params = (ln1_g, ln1_b, w_qkv, b_qkv, w_ap, b_ap,
              ln2_g, ln2_b, w_fc, b_fc, w_mp, b_mp)

    x = jax.random.normal(jax.random.PRNGKey(42), (B, T, C), jnp.float32)

    out = gpt2_block(x, params, n_head, tile_t=256)
    out = jax.block_until_ready(out)

    ref = gpt2_block_ref(x, params, n_head)
    assert out.shape == (B, T, C)
    max_err = jnp.max(jnp.abs(out - ref))
    # bf16 MXU operands / bf16 Q,K,V,attn round-trips with fp32 accumulation,
    # plus approx-reciprocal softmax normalization -> loosened tolerance.
    assert jnp.allclose(out, ref, atol=2.5e-2, rtol=2.5e-2), \
        f"max abs err = {max_err}"

    print("KERNEL_OK")
</pallas_src>

<mosaic_0001>
module attributes {stable_mosaic.version = 11 : i64} {
  func.func @_ln1_qkv_kernel(%arg0: i32, %arg1: i32, %arg2: memref<1x256x256xf32, #tpu.memory_space<vmem>>, %arg3: memref<1x256xf32, #tpu.memory_space<vmem>>, %arg4: memref<1x256xf32, #tpu.memory_space<vmem>>, %arg5: memref<256x768xbf16, #tpu.memory_space<vmem>>, %arg6: memref<1x768xf32, #tpu.memory_space<vmem>>, %arg7: memref<1x256x256xbf16, #tpu.memory_space<vmem>>, %arg8: memref<1x256x256xbf16, #tpu.memory_space<vmem>>, %arg9: memref<1x256x256xbf16, #tpu.memory_space<vmem>>) attributes {dimension_semantics = [#tpu.dimension_semantics<parallel>, #tpu.dimension_semantics<parallel>], iteration_bounds = array<i64: 2, 2>, scalar_prefetch = 0 : i64, scratch_operands = 0 : i64, tpu.core_type = #tpu.core_type<tc>, window_params = [{transform_indices = @transform_0, window_bounds = array<i64: 1, 256, 256>}, {pipeline_mode = #tpu.pipeline_mode<synchronous>, transform_indices = @transform_1, window_bounds = array<i64: 1, 256>}, {pipeline_mode = #tpu.pipeline_mode<synchronous>, transform_indices = @transform_2, window_bounds = array<i64: 1, 256>}, {pipeline_mode = #tpu.pipeline_mode<synchronous>, transform_indices = @transform_3, window_bounds = array<i64: 256, 768>}, {pipeline_mode = #tpu.pipeline_mode<synchronous>, transform_indices = @transform_4, window_bounds = array<i64: 1, 768>}, {transform_indices = @transform_5, window_bounds = array<i64: 1, 256, 256>}, {transform_indices = @transform_6, window_bounds = array<i64: 1, 256, 256>}, {transform_indices = @transform_7, window_bounds = array<i64: 1, 256, 256>}]} {
    %c0 = arith.constant 0 : index
    %c0_0 = arith.constant 0 : index
    %c0_1 = arith.constant 0 : index
    %0 = vector.load %arg2[%c0, %c0_0, %c0_1] : memref<1x256x256xf32, #tpu.memory_space<vmem>>, vector<1x256x256xf32>
    %1 = vector.shape_cast %0 : vector<1x256x256xf32> to vector<256x256xf32>
    %cst = arith.constant dense<0.000000e+00> : vector<256xf32>
    %2 = vector.multi_reduction <add>, %1, %cst [1] : vector<256x256xf32> to vector<256xf32>
    %3 = vector.shape_cast %2 : vector<256xf32> to vector<256x1xf32>
    %cst_2 = arith.constant 2.560000e+02 : f32
    %4 = vector.broadcast %cst_2 : f32 to vector<256x1xf32>
    %5 = arith.divf %3, %4 : vector<256x1xf32>
    %6 = vector.broadcast %5 : vector<256x1xf32> to vector<256x256xf32>
    %7 = arith.subf %1, %6 : vector<256x256xf32>
    %8 = arith.mulf %7, %7 : vector<256x256xf32>
    %cst_3 = arith.constant dense<0.000000e+00> : vector<256xf32>
    %9 = vector.multi_reduction <add>, %8, %cst_3 [1] : vector<256x256xf32> to vector<256xf32>
    %10 = vector.shape_cast %9 : vector<256xf32> to vector<256x1xf32>
    %cst_4 = arith.constant 2.560000e+02 : f32
    %11 = vector.broadcast %cst_4 : f32 to vector<256x1xf32>
    %12 = arith.divf %10, %11 : vector<256x1xf32>
    %13 = vector.broadcast %5 : vector<256x1xf32> to vector<256x256xf32>
    %14 = arith.subf %1, %13 : vector<256x256xf32>
    %cst_5 = arith.constant 9.99999974E-6 : f32
    %15 = vector.broadcast %cst_5 : f32 to vector<256x1xf32>
    %16 = arith.addf %12, %15 : vector<256x1xf32>
    %17 = math.rsqrt %16 : vector<256x1xf32>
    %18 = vector.broadcast %17 : vector<256x1xf32> to vector<256x256xf32>
    %19 = arith.mulf %14, %18 : vector<256x256xf32>
    %c0_6 = arith.constant 0 : index
    %c0_7 = arith.constant 0 : index
    %20 = vector.load %arg3[%c0_6, %c0_7] : memref<1x256xf32, #tpu.memory_space<vmem>>, vector<1x256xf32>
    %21 = vector.shape_cast %20 : vector<1x256xf32> to vector<256xf32>
    %22 = vector.shape_cast %21 : vector<256xf32> to vector<1x256xf32>
    %23 = vector.broadcast %22 : vector<1x256xf32> to vector<256x256xf32>
    %24 = arith.mulf %19, %23 : vector<256x256xf32>
    %c0_8 = arith.constant 0 : index
    %c0_9 = arith.constant 0 : index
    %25 = vector.load %arg4[%c0_8, %c0_9] : memref<1x256xf32, #tpu.memory_space<vmem>>, vector<1x256xf32>
    %26 = vector.shape_cast %25 : vector<1x256xf32> to vector<256xf32>
    %27 = vector.shape_cast %26 : vector<256xf32> to vector<1x256xf32>
    %28 = vector.broadcast %27 : vector<1x256xf32> to vector<256x256xf32>
    %29 = arith.addf %24, %28 : vector<256x256xf32>
    %30 = arith.truncf %29 : vector<256x256xf32> to vector<256x256xbf16>
    %c0_10 = arith.constant 0 : index
    %c0_11 = arith.constant 0 : index
    %31 = vector.load %arg5[%c0_10, %c0_11] : memref<256x768xbf16, #tpu.memory_space<vmem>>, vector<256x768xbf16>
    %cst_12 = arith.constant dense<0.000000e+00> : vector<256x768xf32>
    %32 = tpu.matmul %30, %31, %cst_12 {dimension_numbers = #tpu.dot_dimension_numbers<[1], [0], [0], [1], [0, 0, 1, 1], [], []>} : vector<256x256xbf16>, vector<256x768xbf16>, vector<256x768xf32> -> vector<256x768xf32>
    %c0_13 = arith.constant 0 : index
    %c0_14 = arith.constant 0 : index
    %33 = vector.load %arg6[%c0_13, %c0_14] : memref<1x768xf32, #tpu.memory_space<vmem>>, vector<1x768xf32>
    %34 = vector.shape_cast %33 : vector<1x768xf32> to vector<768xf32>
    %35 = vector.shape_cast %34 : vector<768xf32> to vector<1x768xf32>
    %36 = vector.broadcast %35 : vector<1x768xf32> to vector<256x768xf32>
    %37 = arith.addf %32, %36 : vector<256x768xf32>
    %38 = vector.extract_strided_slice %37 {offsets = [0, 0], sizes = [256, 256], strides = [1, 1]} : vector<256x768xf32> to vector<256x256xf32>
    %cst_15 = arith.constant 0.0883883461 : f32
    %39 = vector.broadcast %cst_15 : f32 to vector<256x256xf32>
    %40 = arith.mulf %38, %39 : vector<256x256xf32>
    %41 = arith.truncf %40 : vector<256x256xf32> to vector<256x256xbf16>
    %c0_16 = arith.constant 0 : index
    %c0_17 = arith.constant 0 : index
    %c0_18 = arith.constant 0 : index
    %42 = vector.load %arg7[%c0_16, %c0_17, %c0_18] : memref<1x256x256xbf16, #tpu.memory_space<vmem>>, vector<1x256x256xbf16>
    %43 = vector.shape_cast %42 : vector<1x256x256xbf16> to vector<256x256xbf16>
    %44 = vector.shape_cast %41 : vector<256x256xbf16> to vector<1x256x256xbf16>
    tpu.vector_store %arg7[%c0_16, %c0_17, %c0_18], %44 {strides = array<i32>} : memref<1x256x256xbf16, #tpu.memory_space<vmem>>, vector<1x256x256xbf16>,
    %45 = vector.extract_strided_slice %37 {offsets = [0, 256], sizes = [256, 256], strides = [1, 1]} : vector<256x768xf32> to vector<256x256xf32>
    %46 = arith.truncf %45 : vector<256x256xf32> to vector<256x256xbf16>
    %c0_19 = arith.constant 0 : index
    %c0_20 = arith.constant 0 : index
    %c0_21 = arith.constant 0 : index
    %47 = vector.load %arg8[%c0_19, %c0_20, %c0_21] : memref<1x256x256xbf16, #tpu.memory_space<vmem>>, vector<1x256x256xbf16>
    %48 = vector.shape_cast %47 : vector<1x256x256xbf16> to vector<256x256xbf16>
    %49 = vector.shape_cast %46 : vector<256x256xbf16> to vector<1x256x256xbf16>
    tpu.vector_store %arg8[%c0_19, %c0_20, %c0_21], %49 {strides = array<i32>} : memref<1x256x256xbf16, #tpu.memory_space<vmem>>, vector<1x256x256xbf16>,
    %50 = vector.extract_strided_slice %37 {offsets = [0, 512], sizes = [256, 256], strides = [1, 1]} : vector<256x768xf32> to vector<256x256xf32>
    %51 = arith.truncf %50 : vector<256x256xf32> to vector<256x256xbf16>
    %c0_22 = arith.constant 0 : index
    %c0_23 = arith.constant 0 : index
    %c0_24 = arith.constant 0 : index
    %52 = vector.load %arg9[%c0_22, %c0_23, %c0_24] : memref<1x256x256xbf16, #tpu.memory_space<vmem>>, vector<1x256x256xbf16>
    %53 = vector.shape_cast %52 : vector<1x256x256xbf16> to vector<256x256xbf16>
    %54 = vector.shape_cast %51 : vector<256x256xbf16> to vector<1x256x256xbf16>
    tpu.vector_store %arg9[%c0_22, %c0_23, %c0_24], %54 {strides = array<i32>} : memref<1x256x256xbf16, #tpu.memory_space<vmem>>, vector<1x256x256xbf16>,
    return
  }
  func.func @transform_0(%arg0: i32, %arg1: i32) -> (i32, i32, i32) {
    %c0_i32 = arith.constant 0 : i32
    %c0_i32_0 = arith.constant 0 : i32
    return %arg0, %arg1, %c0_i32 : i32, i32, i32
  }
  func.func @transform_1(%arg0: i32, %arg1: i32) -> (i32, i32) {
    %c0_i32 = arith.constant 0 : i32
    %c0_i32_0 = arith.constant 0 : i32
    %c0_i32_1 = arith.constant 0 : i32
    return %c0_i32, %c0_i32_0 : i32, i32
  }
  func.func @transform_2(%arg0: i32, %arg1: i32) -> (i32, i32) {
    %c0_i32 = arith.constant 0 : i32
    %c0_i32_0 = arith.constant 0 : i32
    %c0_i32_1 = arith.constant 0 : i32
    return %c0_i32, %c0_i32_0 : i32, i32
  }
  func.func @transform_3(%arg0: i32, %arg1: i32) -> (i32, i32) {
    %c0_i32 = arith.constant 0 : i32
    %c0_i32_0 = arith.constant 0 : i32
    %c0_i32_1 = arith.constant 0 : i32
    return %c0_i32, %c0_i32_0 : i32, i32
  }
  func.func @transform_4(%arg0: i32, %arg1: i32) -> (i32, i32) {
    %c0_i32 = arith.constant 0 : i32
    %c0_i32_0 = arith.constant 0 : i32
    %c0_i32_1 = arith.constant 0 : i32
    return %c0_i32, %c0_i32_0 : i32, i32
  }
  func.func @transform_5(%arg0: i32, %arg1: i32) -> (i32, i32, i32) {
    %c0_i32 = arith.constant 0 : i32
    %c0_i32_0 = arith.constant 0 : i32
    return %arg0, %arg1, %c0_i32 : i32, i32, i32
  }
  func.func @transform_6(%arg0: i32, %arg1: i32) -> (i32, i32, i32) {
    %c0_i32 = arith.constant 0 : i32
    %c0_i32_0 = arith.constant 0 : i32
    return %arg0, %arg1, %c0_i32 : i32, i32, i32
  }
  func.func @transform_7(%arg0: i32, %arg1: i32) -> (i32, i32, i32) {
    %c0_i32 = arith.constant 0 : i32
    %c0_i32_0 = arith.constant 0 : i32
    return %arg0, %arg1, %c0_i32 : i32, i32, i32
  }
}

</mosaic_0001>

<bundles_post_ra>
// kernel: tpu_custom_call.1
= control target key start
LH: loop header
LB: loop body
LE: loop exit
PB: predicated region body
PF: predicated region fallthrough
CT: control target
= control target key end

     0   :  { %s5970_s0 = inlined_call_operand.hbm [shape: f32[2,512,256], index: 0, kind: input, shape index: {}]   ;;  %s5971_s1 = inlined_call_operand.hbm [shape: f32[1,256], index: 1, kind: input, shape index: {}]   ;;  %s5972_s2 = inlined_call_operand.hbm [shape: f32[1,256], index: 2, kind: input, shape index: {}]   ;;  %s5973_s3 = inlined_call_operand.hbm [shape: bf16[256,768], index: 3, kind: input, shape index: {}]   ;;  %s5974_s4 = inlined_call_operand.vmem [shape: f32[1,768], index: 4, kind: input, shape index: {}]   ;;  %s5975_s5 = inlined_call_operand.hbm [shape: bf16[2,512,256], index: 5, kind: output, shape index: {0}]   ;;  %s5976_s6 = inlined_call_operand.hbm [shape: bf16[2,512,256], index: 6, kind: output, shape index: {1}]   ;;  %s5977_s7 = inlined_call_operand.hbm [shape: bf16[2,512,256], index: 7, kind: output, shape index: {2}]  }
   0x1   :  { %6032 = sst [smem:[#allocation52_spill]] %s5971_s1 }
   0x2   :  { %6033 = sst [smem:[#allocation53_spill]] %s5972_s2 }
   0x3   :  { %6034 = sst [smem:[#allocation54_spill]] %s5973_s3 }
   0x4   :  { %6035 = sst [smem:[#allocation55_spill]] %s5976_s6 }
   0x5   :  { %6036 = sst [smem:[#allocation56_spill]] %s5977_s7 }
   0x6   :  { %13 = vsyncpa [#allocation3], 0 }
   0x7   :  { %15 = vsyncpa [#allocation3 + $0x1], 0 }
   0x8   :  { %16 = vsyncpa [#allocation6], 0 }
   0x9   :  { %17 = vsyncpa [#allocation9], 0 }
   0xa   :  { %18 = vsyncpa [#allocation4], 0 }
   0xb   :  { %20 = vsyncpa [#allocation4 + $0x1], 0 }
   0xc   :  { %21 = vsyncpa [#allocation12], 0 }
   0xd   :  { %23 = vsyncpa [#allocation12 + $0x1], 0  ;;  %s4332_s24 = smov 0   ;;  %s4334_s25 = smov 0  }
   0xe   :  { %s4336_s26 = smov 0   ;;  %s4338_s27 = smov 0  }
   0xf   :  { %s4340_s28 = smov 0   ;;  %s4342_s29 = smov 0  }
  0x10   :  { %s4344_s30 = smov 0   ;;  %s4346_s8 = smov 0  }
  0x11 LB: > { %6037 = sst [smem:[#allocation19_spill]] %s4249_s24  ;;  %s4373_s9 = sadd.s32 4294967295, %s4277_s8   ;;  %s4277_s8 = sphi %s4346_s8, %s29_s8   ;;  %s4273_s30 = sphi %s4344_s30, %s6154_s30   ;;  %s4269_s29 = sphi %s4342_s29, %s6149_s29   ;;  %s4265_s28 = sphi %s4340_s28, %s6153_s28   ;;  %s4261_s27 = sphi %s4338_s27, %s6148_s27   ;;  %s4257_s26 = sphi %s4336_s26, %s6152_s26   ;;  %s4253_s25 = sphi %s4334_s25, %s6151_s25   ;;  %s4249_s24 = sphi %s4332_s24, %s6150_s24  }
  0x12   : > { %6038 = sst [smem:[#allocation20_spill]] %s4269_s29  ;;  %s5981_s10 = sadd.s32 4294967294, %s4277_s8  }
  0x13   : > { %p63_p0 = scmp.ne.s32.totalorder %s4253_s25, %s4249_s24  ;;  %p5978_p1 = scmp.eq.s32.totalorder %s4373_s9, 0 }
  0x14   : > { %p179_p3 = scmp.eq.s32.totalorder %s5981_s10, 3  ;;  %p3319_p5 = scmp.ge.s32.totalorder %s4277_s8, 1 }
  0x15   : > { %p4384_p4 = por %p5978_p1, %p63_p0  ;;  %p242_p7 = scmp.lt.s32.totalorder %s4277_s8, 5 }
  0x16   : > { %p4389_p6 = por %p179_p3, %p63_p0  ;;  %s4279_s14 = smov [#allocation5]  }
  0x17   : > { %s6039_s11 = scalar_select %p4384_p4, 1, 0 }
  0x18   : > { %s6040_s12 = scalar_select %p4389_p6, 1, 0 }
  0x19   : > { %p4394_p8 = pnand %p3319_p5, %p242_p7  ;;  %s255_s15 = sshll.u32 %s4279_s14, 4  ;;  %s256_s15 = int_to_ptr.vmem [resolvable:$true] %s255_s15 }
  0x1a   : > { %6041 = sst [smem:[#allocation21_spill]] %s6040_s12  ;;  %s4280_s16 = smov [#allocation7]  }
  0x1b   : > { %s6042_s13 = scalar_select %p4394_p8, 1, 0 }
  0x1c   : > { %p3698_p9 = pneg %p4394_p8  ;;  %s266_s17 = sshll.u32 %s4280_s16, 4  ;;  %s267_s17 = int_to_ptr.vmem [resolvable:$true] %s266_s17 }
  0x1d   : > { %s4281_s19 = smov [#allocation8]   ;;  %s4022_s21 = scalar_lea.vmem %s256_s15, 32 }
  0x1e   : > { %p4402_p10 = pnand %p3698_p9, %p5978_p1  ;;  %s276_s20 = sshll.u32 %s4281_s19, 4  ;;  %s4406_s20 = int_to_ptr.vmem [resolvable:$true] %s276_s20 }
  0x1f   : > { %p4023_p12 = scmp.ne.s32.totalorder %s256_s15, %s4022_s21  ;;  %p4030_p3 = scmp.lt.s32.totalorder %s256_s15, %s256_s15 }
  0x20   : > { %p4013_p11 = pneg %p4402_p10  ;;  %p4031_p5 = scmp.lt.s32.totalorder %s4022_s21, %s4022_s21 }
  0x22   : > { %p4025_p13 = pnand %p4023_p12, %p4013_p11  ;;  %p4032_p7 = por %p4031_p5, %p4030_p3 }
  0x24   : > { %p4026_p0 = pneg %p4025_p13 }
  0x26   : > { %p4033_p9 = pnand %p4032_p7, %p4026_p0 }
  0x28   : > { %4036 = shalt.err (!%p4033_p9)
}
  0x29   : > { %s6044_s1 = sld [smem:[#allocation52_spill]]  ;;  %s4048_s14 = scalar_lea.vmem %s267_s17, 32 }
  0x2a   : > { %p4049_p1 = scmp.ne.s32.totalorder %s267_s17, %s4048_s14  ;;  %p4056_p12 = scmp.lt.s32.totalorder %s267_s17, %s267_s17 }
  0x2b   : > { %p4057_p13 = scmp.lt.s32.totalorder %s4048_s14, %s4048_s14 }
  0x2c   : > { %p4051_p2 = pnand %p4049_p1, %p4013_p11 }
  0x2d   : > { %p4058_p4 = por %p4057_p13, %p4056_p12 }
  0x2e   : > { %p4052_p6 = pneg %p4051_p2 }
  0x2f   : > { %3701 = dma.hbm_to_vmem [thread:$0]  (!%p4402_p10), %s6044_s1, 32, %s256_s15, [#allocation6]  }
  0x30   : > { %p4059_p8 = pnand %p4058_p4, %p4052_p6 }
  0x32   : > { %4062 = shalt.err (!%p4059_p8)
}
  0x33   : > { %s6045_s2 = sld [smem:[#allocation53_spill]]  ;;  %s4074_s15 = scalar_lea.vmem %s4406_s20, 12288 }
  0x34   : > { %p4075_p0 = scmp.ne.s32.totalorder %s4406_s20, %s4074_s15  ;;  %p4082_p3 = scmp.lt.s32.totalorder %s4406_s20, %s4406_s20 }
  0x35   : > { %p4083_p4 = scmp.lt.s32.totalorder %s4074_s15, %s4074_s15 }
  0x36   : > { %p4077_p1 = pnand %p4075_p0, %p4013_p11 }
  0x37   : > { %p4084_p6 = por %p4083_p4, %p4082_p3 }
  0x38   : > { %p4078_p2 = pneg %p4077_p1 }
  0x39   : > { %3704 = dma.hbm_to_vmem [thread:$0]  (!%p4402_p10), %s6045_s2, 32, %s267_s17, [#allocation6]  }
  0x3a   : > { %p4085_p8 = pnand %p4084_p6, %p4078_p2 }
  0x3c   : > { %4088 = shalt.err (!%p4085_p8)
}
  0x3d   : > { %s4282_s21 = smov 384   ;;  %s4283_s17 = smov 24  }
  0x3e   : > { %s6046_s3 = sld [smem:[#allocation54_spill]]  ;;  %s38_s14 = sadd.s32 1, %s4269_s29 }
  0x3f   : > { %p39_p11 = scmp.ge.s32.totalorder %s38_s14, 2  ;;  %s41_s16 = sadd.s32 1, %s4273_s30 }
  0x40   : > { %s50_s19 = sadd.s32 1, %s4257_s26  ;;  %p57_p5 = scmp.ne.s32.totalorder %s4257_s26, %s4253_s25 }
  0x41   : > { %s6156_s14 = smov (%p39_p11, %s38_s14), 0  ;;  %s6158_s16 = smov (!%p39_p11, %s41_s16), %s4273_s30 }
  0x42   : > { %6047 = sst [smem:[#allocation22_spill]] %s6156_s14  ;;  %s46_s15 = ssub.s32 %s4269_s29, %s6156_s14 }
  0x43   : > { %p58_p7 = scmp.eq.s32.totalorder %s4277_s8, 0  ;;  %p43_p9 = scmp.ge.s32.totalorder %s6158_s16, 2 }
  0x44   : > { %3707 = dma.hbm_to_vmem [thread:$0]  (!%p4402_p10), %s6046_s3, 12288, %s4406_s20, [#allocation9], %s4282_s21, %s4282_s21, %s4283_s17  }
  0x45   : > { %p6048_p12 = scmp.eq.s32.totalorder %s4373_s9, 3  ;;  %p4456_p10 = por %p58_p7, %p57_p5 }
  0x46   : > { %p3725_p0 = scmp.lt.s32.totalorder %s4277_s8, 4  ;;  %s6160_s16 = smov (%p43_p9, %s6158_s16), 0 }
  0x47   : > { %p4452_p13 = por %p6048_p12, %p57_p5  ;;  %s293_s21 = sand.u32 1, %s4257_s26  }
  0x48   : > { %s3546_s17 = sshll.u32 %s4269_s29, 6  ;;  %s45_s22 = ssub.s32 %s4273_s30, %s6160_s16 }
  0x49   : > { %s47_s23 = sor.u32 %s46_s15, %s45_s22  ;;  %s3324_s10 = sshll.u32 %s293_s21, 9 }
  0x4a   : > { %p48_p1 = scmp.eq.s32.totalorder %s47_s23, 0  ;;  %s3327_s1 = sshll.u32 %s4273_s30, 7 }
  0x4b   : > { %s297_s2 = scalar_lea.vmem [#allocation2], %s3324_s10  ;;  %s304_s12 = sadd.s32 %s3546_s17, %s3327_s1 }
  0x4c   : > { %s307_s3 = sshll.u32 %s297_s2, 4  ;;  %s3328_s24 = sshll.u32 %s304_s12, 7  ;;  %s308_s3 = int_to_ptr.vmem [resolvable:$true] %s307_s3 }
  0x4d   : > { %s4469_s14 = scalar_select %p48_p1, %s4257_s26, %s50_s19  }
  0x4e   : > { %p4475_p2 = pnand %p3725_p0, %p4456_p10  ;;  %s306_s15 = scalar_lea.hbm %s5970_s0, %s3328_s24 }
  0x4f   : > { %s294_s22 = scalar_lea.sflag [#allocation3], %s293_s21  ;;  %s4102_s2 = scalar_lea.vmem %s308_s3, 8192 }
  0x50   : > { %p4091_p3 = pneg %p4475_p2  ;;  %p4103_p4 = scmp.ne.s32.totalorder %s308_s3, %s4102_s2 }
  0x51   : > { %s4284_s1 = smov [#allocation2]  }
  0x52   : > { %p4105_p6 = pnand %p4103_p4, %p4091_p3  ;;  %s4107_s10 = sshll.u32 %s4284_s1, 4  ;;  %s4108_s10 = int_to_ptr.vmem [resolvable:$false] %s4107_s10 }
  0x53   : > { %s4109_s12 = scalar_lea.vmem %s4108_s10, 16384  ;;  %p4110_p11 = scmp.lt.s32.totalorder %s308_s3, %s4108_s10 }
  0x54   : > { %p4106_p8 = pneg %p4105_p6  ;;  %p4111_p5 = scmp.lt.s32.totalorder %s4109_s12, %s4102_s2 }
  0x56   : > { %p4112_p7 = por %p4111_p5, %p4110_p11 }
  0x58   : > { %p4113_p9 = pnand %p4112_p7, %p4106_p8 }
  0x5a   : > { %4116 = shalt.err (!%p4113_p9)
}
  0x5b   : > { %s4285_s19 = smov 256   ;;  %s4286_s6 = smov 16  }
  0x5c   : > { %3711 = dma.hbm_to_vmem [thread:$0]  (!%p4475_p2), %s306_s15, 8192, %s308_s3, %s294_s22, %s4285_s19, %s4285_s19, %s4286_s6  }
  0x5d   : > { %p6052_p12 = scmp.ne.s32.totalorder %s6042_s13, 0 }
  0x5f   : > { %319 = sbr.rel (%p6052_p12) target bundleno = 871 (0x367), region = 40 }
  0x64   : > { %s4489_s24 = sand.u32 1, %s4253_s25   ;;  %p6053_p10 = scmp.ne.s32.totalorder %s6039_s11, 0 }
  0x65   : > { %s3330_s29 = sshll.u32 %s4489_s24, 9  ;;  %s322_s20 = scalar_lea.sflag [#allocation3], %s4489_s24 }
  0x66   : > { %s4493_s21 = scalar_lea.vmem [#allocation2], %s3330_s29 }
  0x67   : > { %4228 = dma.done.wait (%p6053_p10), %s322_s20, 8192  }
  0x68   : > { %4230 = vsyncadd (%p6053_p10), %s322_s20, 4294959104  ;;  %p6054_p0 = scmp.eq.s32.totalorder %s4373_s9, 0 }
  0x6a   : > { %4232 = dma.done.wait (%p6054_p0), [#allocation6], 64   ;;  %p6055_p1 = pmov %p6054_p0 }
  0x6b   : > { %p6056_p2 = pmov %p6054_p0 }
  0x6c   : > { %4234 = vsyncadd (%p6055_p1), [#allocation6], 4294967232 }
  0x6d   : > { %4236 = dma.done.wait (%p6056_p2), [#allocation9], 12288   ;;  %p6057_p3 = pmov %p6054_p0 }
  0x6e   : > { %v4508_v0 = vld [vmem:[%s4493_s21 + $0x100] sm:$0xff]  ;;  %v4511_v1 = vld [vmem:[%s4493_s21 + $0x108] sm:$0xff]  ;;  %v4514_v2 = vld [vmem:[%s4493_s21 + $0x110] sm:$0xff]  ;;  %s5515_s11 = sshll.u32 %s4489_s24, 8  ;;  %s3643_s23 = sshll.u32 %s4261_s27, 6 }
  0x6f   : > { %4238 = vsyncadd (%p6057_p3), [#allocation9], 4294955008  ;;  %v494_v3 = vadd.f32 %v4511_v1, %v4508_v0  ;;  %v4519_v4 = vld [vmem:[%s4493_s21 + $0x118] sm:$0xff]  ;;  %v4522_v5 = vld [vmem:[%s4493_s21] sm:$0xff]  ;;  %s5524_s13 = scalar_lea.vmem [#allocation10], %s5515_s11  ;;  %s5635_s17 = scalar_lea.vmem [#allocation11], %s5515_s11 }
  0x70   : > { %v4525_v6 = vld [vmem:[%s4493_s21 + $0x8] sm:$0xff]  ;;  %v4530_v8 = vld [vmem:[%s4493_s21 + $0x10] sm:$0xff]  ;;  %v497_v9 = vadd.f32 %v4519_v4, %v4514_v2  ;;  %v4535_v10 = vld [vmem:[%s4493_s21 + $0x18] sm:$0xff]  ;;  %s3534_s15 = sshll.u32 %s4265_s28, 7  ;;  %s5648_s1 = scalar_lea.vmem [#allocation13], %s5515_s11 }
  0x71   : > { %v446_v7 = vadd.f32 %v4525_v6, %v4522_v5  ;;  %495 = vadd.xlane.f32.xlu0 %v494_v3  ;;  %v4538_v11 = vld [vmem:[%s4493_s21 + $0x120] sm:$0xff]  ;;  %v4541_v12 = vld [vmem:[%s4493_s21 + $0x128] sm:$0xff]  ;;  %v449_v13 = vadd.f32 %v4535_v10, %v4530_v8  ;;  %v4546_v14 = vld [vmem:[%s4493_s21 + $0x130] sm:$0xff]  ;;  %s3090_s22 = sadd.s32 %s3643_s23, %s3534_s15  ;;  %s3093_s12 = sshll.u32 %s5524_s13, 4  ;;  %s5668_s12 = int_to_ptr.vmem [resolvable:$true] %s3093_s12 }
  0x72   : > { %v4549_v15 = vld [vmem:[%s4493_s21 + $0x138] sm:$0xff]  ;;  %v500_v16 = vadd.f32 %v4541_v12, %v4538_v11  ;;  %v4554_v17 = vld [vmem:[%s4493_s21 + $0x20] sm:$0xff]  ;;  %v4557_v18 = vld [vmem:[%s4493_s21 + $0x28] sm:$0xff]  ;;  %s5644_s2 = sshll.u32 %s3090_s22, 6  ;;  %s3067_s19 = scalar_lea.sflag [#allocation4], %s4489_s24 }
  0x73   : > { %447 = vadd.xlane.f32.xlu1 %v446_v7  ;;  %v503_v19 = vadd.f32 %v4549_v15, %v4546_v14  ;;  %v4562_v20 = vld [vmem:[%s4493_s21 + $0x30] sm:$0xff]  ;;  %v4565_v21 = vld [vmem:[%s4493_s21 + $0x38] sm:$0xff]  ;;  %v452_v22 = vadd.f32 %v4557_v18, %v4554_v17  ;;  %v4570_v23 = vld [vmem:[%s4493_s21 + $0x140] sm:$0xff]  ;;  %s5659_s10 = scalar_lea.hbm %s5975_s5, %s5644_s2  ;;  %s4117_s6 = scalar_lea.vmem %s5668_s12, 4096 }
  0x74   : > { %v4573_v24 = vld [vmem:[%s4493_s21 + $0x148] sm:$0xff]  ;;  %v455_v25 = vadd.f32 %v4565_v21, %v4562_v20  ;;  %v4578_v26 = vld [vmem:[%s4493_s21 + $0x150] sm:$0xff]  ;;  %v4581_v27 = vld [vmem:[%s4493_s21 + $0x158] sm:$0xff]  ;;  %p4118_p4 = scmp.ne.s32.totalorder %s5668_s12, %s4117_s6  ;;  %s4287_s29 = smov [#allocation10]  }
  0x75   : > { %498 = vadd.xlane.f32.xlu0 %v497_v9  ;;  %v506_v28 = vadd.f32 %v4573_v24, %v4570_v23  ;;  %v4586_v29 = vld [vmem:[%s4493_s21 + $0x40] sm:$0xff]  ;;  %v4589_v30 = vld [vmem:[%s4493_s21 + $0x48] sm:$0xff]  ;;  %v509_v31 = vadd.f32 %v4581_v27, %v4578_v26  ;;  %v4594_v32 = vld [vmem:[%s4493_s21 + $0x50] sm:$0xff]  ;;  %s4121_s20 = sshll.u32 %s4287_s29, 4  ;;  %s4122_s20 = int_to_ptr.vmem [resolvable:$false] %s4121_s20 }
  0x76   : > { %v4597_v33 = vld [vmem:[%s4493_s21 + $0x58] sm:$0xff]  ;;  %v458_v34 = vadd.f32 %v4589_v30, %v4586_v29  ;;  %v4602_v35 = vld [vmem:[%s4493_s21 + $0x160] sm:$0xff]  ;;  %v4605_v36 = vld [vmem:[%s4493_s21 + $0x168] sm:$0xff]  ;;  %p4119_p6 = pnand %p4118_p4, %p4452_p13  ;;  %p4124_p11 = scmp.lt.s32.totalorder %s5668_s12, %s4122_s20 }
  0x77   : > { %450 = vadd.xlane.f32.xlu1 %v449_v13  ;;  %v461_v37 = vadd.f32 %v4597_v33, %v4594_v32  ;;  %v4610_v38 = vld [vmem:[%s4493_s21 + $0x170] sm:$0xff]  ;;  %v4613_v39 = vld [vmem:[%s4493_s21 + $0x178] sm:$0xff]  ;;  %v4616_v40 = vld [vmem:[%s4493_s21 + $0x60] sm:$0xff]  ;;  %v512_v42 = vadd.f32 %v4605_v36, %v4602_v35 }
  0x78   : > { %v4619_v41 = vld [vmem:[%s4493_s21 + $0x68] sm:$0xff]  ;;  %v4624_v43 = vld [vmem:[%s4493_s21 + $0x70] sm:$0xff]  ;;  %v4627_v44 = vld [vmem:[%s4493_s21 + $0x78] sm:$0xff]  ;;  %v515_v45 = vadd.f32 %v4613_v39, %v4610_v38  ;;  %p4120_p8 = pneg %p4119_p6 }
  0x79   : > { %501 = vadd.xlane.f32.xlu0 %v500_v16  ;;  %v4632_v46 = vld [vmem:[%s4493_s21 + $0x180] sm:$0xff]  ;;  %v4635_v47 = vld [vmem:[%s4493_s21 + $0x188] sm:$0xff]  ;;  %v464_v48 = vadd.f32 %v4619_v41, %v4616_v40  ;;  %v4640_v49 = vld [vmem:[%s4493_s21 + $0x190] sm:$0xff]  ;;  %v467_v51 = vadd.f32 %v4627_v44, %v4624_v43 }
  0x7a   : > { %v4643_v50 = vld [vmem:[%s4493_s21 + $0x198] sm:$0xff]  ;;  %v4648_v52 = vld [vmem:[%s4493_s21 + $0x80] sm:$0xff]  ;;  %v4651_v53 = vld [vmem:[%s4493_s21 + $0x88] sm:$0xff]  ;;  %v518_v54 = vadd.f32 %v4635_v47, %v4632_v46 }
  0x7b   : > { %504 = vadd.xlane.f32.xlu1 %v503_v19  ;;  %v4656_v55 = vld [vmem:[%s4493_s21 + $0x90] sm:$0xff]  ;;  %v4659_v56 = vld [vmem:[%s4493_s21 + $0x98] sm:$0xff]  ;;  %v521_v57 = vadd.f32 %v4643_v50, %v4640_v49  ;;  %v4664_v58 = vld [vmem:[%s4493_s21 + $0x1a0] sm:$0xff]  ;;  %v470_v60 = vadd.f32 %v4651_v53, %v4648_v52 }
  0x7c   : > { %v4667_v59 = vld [vmem:[%s4493_s21 + $0x1a8] sm:$0xff]  ;;  %v4672_v61 = vld [vmem:[%s4493_s21 + $0x1b0] sm:$0xff]  ;;  %v4675_v62 = vld [vmem:[%s4493_s21 + $0x1b8] sm:$0xff]  ;;  %v473_v63 = vadd.f32 %v4659_v56, %v4656_v55 }
  0x7d   : > { %453 = vadd.xlane.f32.xlu0 %v452_v22  ;;  %v4680_v3 = vld [vmem:[%s4493_s21 + $0xa0] sm:$0xff]  ;;  %v4683_v7 = vld [vmem:[%s4493_s21 + $0xa8] sm:$0xff]  ;;  %v524_v9 = vadd.f32 %v4667_v59, %v4664_v58  ;;  %v4688_v13 = vld [vmem:[%s4493_s21 + $0xb0] sm:$0xff]  ;;  %v527_v19 = vadd.f32 %v4675_v62, %v4672_v61 }
  0x7e   : > { %v4691_v16 = vld [vmem:[%s4493_s21 + $0xb8] sm:$0xff]  ;;  %v4696_v22 = vld [vmem:[%s4493_s21 + $0x1c0] sm:$0xff] }
  0x7f   : > { %456 = vadd.xlane.f32.xlu1 %v455_v25  ;;  %v4699_v25 = vld [vmem:[%s4493_s21 + $0x1c8] sm:$0xff] }
  0x80   : > { %6058 = vst [vmem:[#allocation23_spill] sm:$0xff] %v4699_v25 }
  0x81   : > { %507 = vadd.xlane.f32.xlu0 %v506_v28  ;;  %v476_v28 = vadd.f32 %v4683_v7, %v4680_v3 }
  0x83   : > { %510 = vadd.xlane.f32.xlu1 %v509_v31  ;;  %v4704_v31 = vld [vmem:[%s4493_s21 + $0x1d0] sm:$0xff] }
  0x84   : > { %6059 = vst [vmem:[#allocation24_spill] sm:$0xff] %v4704_v31 }
  0x85   : > { %459 = vadd.xlane.f32.xlu0 %v458_v34  ;;  %v4707_v34 = vld [vmem:[%s4493_s21 + $0x1d8] sm:$0xff] }
  0x86   : > { %6060 = vst [vmem:[#allocation25_spill] sm:$0xff] %v4707_v34 }
  0x87   : > { %462 = vadd.xlane.f32.xlu1 %v461_v37  ;;  %v479_v37 = vadd.f32 %v4691_v16, %v4688_v13 }
  0x89   : > { %513 = vadd.xlane.f32.xlu0 %v512_v42  ;;  %v4712_v42 = vld [vmem:[%s4493_s21 + $0xc0] sm:$0xff] }
  0x8b   : > { %516 = vadd.xlane.f32.xlu1 %v515_v45  ;;  %v4715_v45 = vld [vmem:[%s4493_s21 + $0xc8] sm:$0xff] }
  0x8c   : > { %6061 = vst [vmem:[#allocation26_spill] sm:$0xff] %v4715_v45 }
  0x8d   : > { %465 = vadd.xlane.f32.xlu0 %v464_v48  ;;  %v530_v48 = vadd.f32 %v4699_v25, %v4696_v22  ;;  %v4749_v25 = vld [vmem:[%s4493_s21 + $0xe8] sm:$0xff] }
  0x8e   : > { %6067 = vst [vmem:[#allocation32_spill] sm:$0xff] %v4749_v25 }
  0x8f   : > { %468 = vadd.xlane.f32.xlu1 %v467_v51  ;;  %v4720_v51 = vld [vmem:[%s4493_s21 + $0xd0] sm:$0xff] }
  0x91   : > { %519 = vadd.xlane.f32.xlu0 %v518_v54  ;;  %v4723_v54 = vld [vmem:[%s4493_s21 + $0xd8] sm:$0xff] }
  0x92   : > { %6062 = vst [vmem:[#allocation27_spill] sm:$0xff] %v4723_v54 }
  0x93   : > { %522 = vadd.xlane.f32.xlu1 %v521_v57  ;;  %v533_v57 = vadd.f32 %v4707_v34, %v4704_v31  ;;  %v4746_v31 = vld [vmem:[%s4493_s21 + $0xe0] sm:$0xff] }
  0x94   : > { %6066 = vst [vmem:[#allocation31_spill] sm:$0xff] %v4746_v31 }
  0x95   : > { %471 = vadd.xlane.f32.xlu0 %v470_v60  ;;  %v4728_v60 = vld [vmem:[%s4493_s21 + $0x1e0] sm:$0xff] }
  0x96   : > { %6063 = vst [vmem:[#allocation28_spill] sm:$0xff] %v4728_v60 }
  0x97   : > { %474 = vadd.xlane.f32.xlu1 %v473_v63  ;;  %v4731_v63 = vld [vmem:[%s4493_s21 + $0x1e8] sm:$0xff] }
  0x98   : > { %6064 = vst [vmem:[#allocation29_spill] sm:$0xff] %v4731_v63  ;;  %v536_v34 = vadd.f32 %v4731_v63, %v4728_v60  ;;  %v3805_v63 = vld [vmem:[#allocation8 + $0x150] ss:$24 sps:$4 sm:$0xff]   ;;  %v3806_v60 = vld [vmem:[#allocation8 + $0x124] ss:$24 sps:$4 sm:$0xff]  }
  0x99   : > { %525 = vadd.xlane.f32.xlu0 %v524_v9  ;;  %v482_v9 = vadd.f32 %v4715_v45, %v4712_v42  ;;  %v4757_v45 = vld [vmem:[%s4493_s21 + $0xf8] sm:$0xff] }
  0x9a   : > { %6069 = vst [vmem:[#allocation34_spill] sm:$0xff] %v4757_v45 }
  0x9b   : > { %528 = vadd.xlane.f32.xlu1 %v527_v19  ;;  %v485_v19 = vadd.f32 %v4723_v54, %v4720_v51  ;;  %v488_v54 = vadd.f32 %v4749_v25, %v4746_v31  ;;  %v3811_v25 = vld [vmem:[#allocation8 + $0xf0] ss:$24 sps:$4 sm:$0xff]  }
  0x9d   : > { %477 = vadd.xlane.f32.xlu0 %v476_v28  ;;  %v4738_v28 = vld [vmem:[%s4493_s21 + $0x1f0] sm:$0xff] }
  0x9f   : > { %480 = vadd.xlane.f32.xlu1 %v479_v37  ;;  %v4741_v37 = vld [vmem:[%s4493_s21 + $0x1f8] sm:$0xff] }
  0xa0   : > { %6065 = vst [vmem:[#allocation30_spill] sm:$0xff] %v4741_v37 }
  0xa1   : > { %531 = vadd.xlane.f32.xlu0 %v530_v48  ;;  %v539_v48 = vadd.f32 %v4741_v37, %v4738_v28  ;;  %v3808_v37 = vld [vmem:[#allocation8 + $0x120] ss:$24 sps:$4 sm:$0xff]  }
  0xa3   : > { %534 = vadd.xlane.f32.xlu1 %v533_v57  ;;  %v4754_v57 = vld [vmem:[%s4493_s21 + $0xf0] sm:$0xff]  ;;  %s4123_s21 = scalar_lea.vmem %s4122_s20, 8192 }
  0xa4   : > { %6068 = vst [vmem:[#allocation33_spill] sm:$0xff] %v4754_v57  ;;  %p4125_p5 = scmp.lt.s32.totalorder %s4123_s21, %s4117_s6 }
  0xa5   : > { %483 = vadd.xlane.f32.xlu0 %v482_v9  ;;  %v491_v9 = vadd.f32 %v4757_v45, %v4754_v57 }
  0xa6   : > { %p4126_p7 = por %p4125_p5, %p4124_p11 }
  0xa7   : > { %486 = vadd.xlane.f32.xlu1 %v485_v19  ;;  %v3803_v19 = vld [vmem:[#allocation8 + $0x154] ss:$24 sps:$4 sm:$0xff]  }
  0xa8   : > { %3646 = vmatprep.subr.bf16.mxu1 %v3803_v19  ;;  %1751 = vmatprep.subr.bf16.mxu0 %v3803_v19  ;;  %v3817_v19 = vld [vmem:[#allocation8 + $0x90] ss:$24 sps:$4 sm:$0xff]   ;;  %p4127_p9 = pnand %p4126_p7, %p4120_p8 }
  0xa9   : > { %537 = vadd.xlane.f32.xlu0 %v536_v34  ;;  %3662 = vmatpush1.bf16.msra.mxu1 %v3805_v63  ;;  %v3809_v34 = vld [vmem:[#allocation8 + $0xf4] ss:$24 sps:$4 sm:$0xff]  }
  0xaa   : > { %1752 = vmatpush1.bf16.msra.mxu0 %v3805_v63  ;;  %3647 = vmatprep.subr.bf16.mxu1 %v3806_v60  ;;  %v3818_v63 = vld [vmem:[#allocation8 + $0x64] ss:$24 sps:$4 sm:$0xff]  }
  0xab   : > { %540 = vadd.xlane.f32.xlu1 %v539_v48  ;;  %1753 = vmatprep.subr.bf16.mxu0 %v3806_v60  ;;  %v3812_v48 = vld [vmem:[#allocation8 + $0xc4] ss:$24 sps:$4 sm:$0xff]   ;;  %v3820_v60 = vld [vmem:[#allocation8 + $0x60] ss:$24 sps:$4 sm:$0xff]  }
  0xad   : > { %489 = vadd.xlane.f32.xlu0 %v488_v54  ;;  %3663 = vmatpush1.bf16.msra.mxu1 %v3808_v37  ;;  %v3814_v54 = vld [vmem:[#allocation8 + $0xc0] ss:$24 sps:$4 sm:$0xff]  }
  0xae   : > { %1754 = vmatpush1.bf16.msra.mxu0 %v3808_v37  ;;  %3648 = vmatprep.subr.bf16.mxu1 %v3809_v34  ;;  %v3821_v37 = vld [vmem:[#allocation8 + $0x34] ss:$24 sps:$4 sm:$0xff]  }
  0xaf   : > { %492 = vadd.xlane.f32.xlu1 %v491_v9  ;;  %1755 = vmatprep.subr.bf16.mxu0 %v3809_v34  ;;  %v3815_v9 = vld [vmem:[#allocation8 + $0x94] ss:$24 sps:$4 sm:$0xff]   ;;  %v3823_v34 = vld [vmem:[#allocation8 + $0x30] ss:$24 sps:$4 sm:$0xff]  }
  0xb1   : > { %3664 = vmatpush1.bf16.msra.mxu1 %v3811_v25 }
  0xb2   : > { %1756 = vmatpush1.bf16.msra.mxu0 %v3811_v25  ;;  %3649 = vmatprep.subr.bf16.mxu1 %v3812_v48  ;;  %v3824_v25 = vld [vmem:[#allocation8 + $0x4] ss:$24 sps:$4 sm:$0xff]  }
  0xb3   : > { %1757 = vmatprep.subr.bf16.mxu0 %v3812_v48  ;;  %v3826_v48 = vld [vmem:[#allocation8] ss:$24 sps:$4 sm:$0xff]  }
  0xb5   : > { %3665 = vmatpush1.bf16.msra.mxu1 %v3814_v54 }
  0xb6   : > { %1758 = vmatpush1.bf16.msra.mxu0 %v3814_v54  ;;  %3650 = vmatprep.subr.bf16.mxu1 %v3815_v9  ;;  %v3827_v54 = vld [vmem:[#allocation8 + $0x2d4] ss:$24 sps:$4 sm:$0xff]  }
  0xb7   : > { %1759 = vmatprep.subr.bf16.mxu0 %v3815_v9 }
  0xb9   : > { %3666 = vmatpush1.bf16.msra.mxu1 %v3817_v19 }
  0xba   : > { %1760 = vmatpush1.bf16.msra.mxu0 %v3817_v19  ;;  %3651 = vmatprep.subr.bf16.mxu1 %v3818_v63 }
  0xbb   : > { %1761 = vmatprep.subr.bf16.mxu0 %v3818_v63 }
  0xbd   : > { %3667 = vmatpush1.bf16.msra.mxu1 %v3820_v60 }
  0xbe   : > { %1762 = vmatpush1.bf16.msra.mxu0 %v3820_v60  ;;  %3652 = vmatprep.subr.bf16.mxu1 %v3821_v37 }
  0xbf   : > { %1763 = vmatprep.subr.bf16.mxu0 %v3821_v37 }
  0xc1   : > { %3668 = vmatpush1.bf16.msra.mxu1 %v3823_v34 }
  0xc2   : > { %1764 = vmatpush1.bf16.msra.mxu0 %v3823_v34  ;;  %3653 = vmatprep.subr.bf16.mxu1 %v3824_v25 }
  0xc3   : > { %1765 = vmatprep.subr.bf16.mxu0 %v3824_v25 }
  0xc5   : > { %3669 = vmatpush1.bf16.msra.mxu1 %v3826_v48 }
  0xc6   : > { %1766 = vmatpush1.bf16.msra.mxu0 %v3826_v48  ;;  %3654 = vmatprep.subr.bf16.mxu1 %v3827_v54 }
  0xc7   : > { %1767 = vmatprep.subr.bf16.mxu0 %v3827_v54 }
  0xfa   : > { %v496_v9 = vpop.xlane.xlu0 %495 }
  0xfb   : > { %v559_v19 = vmul.f32 0.00390625, %v496_v9 }
  0xfc   : > { %v448_v63 = vpop.xlane.xlu1 %447 }
  0xfd   : > { %v543_v45 = vmul.f32 0.00390625, %v448_v63  ;;  %v4764_v60 = vsub.f32 %v4508_v0, %v559_v19  ;;  %v4767_v37 = vsub.f32 %v4511_v1, %v559_v19 }
  0xfe   : > { %v499_v57 = vpop.xlane.xlu0 %498 }
  0xff   : > { %6070 = vst [vmem:[#allocation35_spill] sm:$0xff] %v4764_v60  ;;  %6071 = vst [vmem:[#allocation36_spill] sm:$0xff] %v4767_v37  ;;  %v4770_v34 = vsub.f32 %v4522_v5, %v543_v45  ;;  %v4773_v25 = vsub.f32 %v4525_v6, %v543_v45  ;;  %v560_v48 = vmul.f32 0.00390625, %v499_v57  ;;  %v671_v54 = vmul.f32 %v4764_v60, %v4764_v60 }
 0x100   : > { %v451_v31 = vpop.xlane.xlu1 %450  ;;  %v672_v9 = vmul.f32 %v4767_v37, %v4767_v37 }
 0x101   : > { %6072 = vst [vmem:[#allocation37_spill] sm:$0xff] %v4770_v34  ;;  %6073 = vst [vmem:[#allocation38_spill] sm:$0xff] %v4773_v25  ;;  %v544_v0 = vmul.f32 0.00390625, %v451_v31  ;;  %v639_v1 = vmul.f32 %v4770_v34, %v4770_v34  ;;  %v640_v19 = vmul.f32 %v4773_v25, %v4773_v25  ;;  %v4784_v5 = vsub.f32 %v4514_v2, %v560_v48 }
 0x102   : > { %v4787_v6 = vsub.f32 %v4519_v4, %v560_v48  ;;  %v751_v45 = vadd.f32 %v672_v9, %v671_v54  ;;  %v502_v57 = vpop.xlane.xlu0 %501 }
 0x103   : > { %v4790_v63 = vsub.f32 %v4530_v8, %v544_v0  ;;  %v4793_v60 = vsub.f32 %v4535_v10, %v544_v0  ;;  %v561_v31 = vmul.f32 0.00390625, %v502_v57  ;;  %v673_v25 = vmul.f32 %v4784_v5, %v4784_v5 }
 0x104   : > { %752 = vadd.xlane.f32.xlu0 %v751_v45  ;;  %v505_v34 = vpop.xlane.xlu1 %504  ;;  %v674_v2 = vmul.f32 %v4787_v6, %v4787_v6  ;;  %v703_v37 = vadd.f32 %v640_v19, %v639_v1 }
 0x105   : > { %v562_v4 = vmul.f32 0.00390625, %v505_v34  ;;  %v641_v48 = vmul.f32 %v4790_v63, %v4790_v63  ;;  %v642_v8 = vmul.f32 %v4793_v60, %v4793_v60  ;;  %v4804_v10 = vsub.f32 %v4538_v11, %v561_v31 }
 0x106   : > { %v4807_v54 = vsub.f32 %v4541_v12, %v561_v31  ;;  %v754_v9 = vadd.f32 %v674_v2, %v673_v25  ;;  %v454_v0 = vpop.xlane.xlu0 %453 }
 0x107   : > { %v4810_v45 = vsub.f32 %v4546_v14, %v562_v4  ;;  %v4813_v1 = vsub.f32 %v4549_v15, %v562_v4  ;;  %v545_v34 = vmul.f32 0.00390625, %v454_v0  ;;  %v675_v57 = vmul.f32 %v4804_v10, %v4804_v10 }
 0x108   : > { %755 = vadd.xlane.f32.xlu1 %v754_v9  ;;  %704 = vadd.xlane.f32.xlu0 %v703_v37  ;;  %v457_v19 = vpop.xlane.xlu1 %456  ;;  %v676_v11 = vmul.f32 %v4807_v54, %v4807_v54  ;;  %v706_v12 = vadd.f32 %v642_v8, %v641_v48 }
 0x109   : > { %v546_v31 = vmul.f32 0.00390625, %v457_v19  ;;  %v677_v25 = vmul.f32 %v4810_v45, %v4810_v45  ;;  %v678_v14 = vmul.f32 %v4813_v1, %v4813_v1  ;;  %v4824_v15 = vsub.f32 %v4554_v17, %v545_v34 }
 0x10a   : > { %v4827_v37 = vsub.f32 %v4557_v18, %v545_v34  ;;  %v757_v2 = vadd.f32 %v676_v11, %v675_v57  ;;  %v508_v4 = vpop.xlane.xlu0 %507  ;;  %v3829_v34 = vld [vmem:[#allocation8 + $0x2d0] ss:$24 sps:$4 sm:$0xff]  }
 0x10b   : > { %v4830_v9 = vsub.f32 %v4562_v20, %v546_v31  ;;  %v4833_v48 = vsub.f32 %v4565_v21, %v546_v31  ;;  %v563_v8 = vmul.f32 0.00390625, %v508_v4  ;;  %v643_v19 = vmul.f32 %v4824_v15, %v4824_v15  ;;  %3670 = vmatpush2.bf16.msra.mxu1 %v3829_v34  ;;  %1768 = vmatpush2.bf16.msra.mxu0 %v3829_v34  ;;  %v3830_v4 = vld [vmem:[#allocation8 + $0x2a4] ss:$24 sps:$4 sm:$0xff]  }
 0x10c   : > { %758 = vadd.xlane.f32.xlu0 %v757_v2  ;;  %707 = vadd.xlane.f32.xlu1 %v706_v12  ;;  %v511_v0 = vpop.xlane.xlu1 %510  ;;  %v644_v17 = vmul.f32 %v4827_v37, %v4827_v37  ;;  %v760_v18 = vadd.f32 %v678_v14, %v677_v25 }
 0x10d   : > { %6074 = vst [vmem:[#allocation39_spill] sm:$0xff] %v4830_v9  ;;  %v564_v57 = vmul.f32 0.00390625, %v511_v0  ;;  %v645_v20 = vmul.f32 %v4830_v9, %v4830_v9  ;;  %v646_v21 = vmul.f32 %v4833_v48, %v4833_v48  ;;  %v4844_v11 = vsub.f32 %v4570_v23, %v563_v8  ;;  %3655 = vmatprep.subr.bf16.mxu1 %v3830_v4 }
 0x10e   : > { %v4847_v12 = vsub.f32 %v4573_v24, %v563_v8  ;;  %v709_v31 = vadd.f32 %v644_v17, %v643_v19  ;;  %v460_v2 = vpop.xlane.xlu0 %459  ;;  %v3832_v17 = vld [vmem:[#allocation8 + $0x2a0] ss:$24 sps:$4 sm:$0xff]   ;;  %1769 = vmatprep.subr.bf16.mxu0 %v3830_v4 }
 0x10f   : > { %v4850_v25 = vsub.f32 %v4578_v26, %v564_v57  ;;  %v4853_v14 = vsub.f32 %v4581_v27, %v564_v57  ;;  %v547_v0 = vmul.f32 0.00390625, %v460_v2  ;;  %v679_v23 = vmul.f32 %v4844_v11, %v4844_v11  ;;  %3671 = vmatpush2.bf16.msra.mxu1 %v3832_v17  ;;  %1770 = vmatpush2.bf16.msra.mxu0 %v3832_v17 }
 0x110   : > { %710 = vadd.xlane.f32.xlu0 %v709_v31  ;;  %761 = vadd.xlane.f32.xlu1 %v760_v18  ;;  %v463_v9 = vpop.xlane.xlu1 %462  ;;  %v680_v24 = vmul.f32 %v4847_v12, %v4847_v12  ;;  %v712_v8 = vadd.f32 %v646_v21, %v645_v20 }
 0x111   : > { %v548_v19 = vmul.f32 0.00390625, %v463_v9  ;;  %v681_v26 = vmul.f32 %v4850_v25, %v4850_v25  ;;  %v682_v27 = vmul.f32 %v4853_v14, %v4853_v14  ;;  %v4864_v18 = vsub.f32 %v4586_v29, %v547_v0 }
 0x112   : > { %v4867_v34 = vsub.f32 %v4589_v30, %v547_v0  ;;  %v763_v57 = vadd.f32 %v680_v24, %v679_v23  ;;  %v514_v31 = vpop.xlane.xlu0 %513  ;;  %v3833_v0 = vld [vmem:[#allocation8 + $0x274] ss:$24 sps:$4 sm:$0xff]   ;;  %v3835_v24 = vld [vmem:[#allocation8 + $0x270] ss:$24 sps:$4 sm:$0xff]  }
 0x113   : > { %v4870_v20 = vsub.f32 %v4594_v32, %v548_v19  ;;  %v4873_v9 = vsub.f32 %v4597_v33, %v548_v19  ;;  %v565_v21 = vmul.f32 0.00390625, %v514_v31  ;;  %v647_v29 = vmul.f32 %v4864_v18, %v4864_v18  ;;  %3656 = vmatprep.subr.bf16.mxu1 %v3833_v0  ;;  %1771 = vmatprep.subr.bf16.mxu0 %v3833_v0  ;;  %v3838_v0 = vld [vmem:[#allocation8 + $0x240] ss:$24 sps:$4 sm:$0xff]  }
 0x114   : > { %764 = vadd.xlane.f32.xlu0 %v763_v57  ;;  %713 = vadd.xlane.f32.xlu1 %v712_v8  ;;  %v517_v2 = vpop.xlane.xlu1 %516  ;;  %v648_v30 = vmul.f32 %v4867_v34, %v4867_v34  ;;  %v766_v4 = vadd.f32 %v682_v27, %v681_v26 }
 0x115   : > { %v566_v23 = vmul.f32 0.00390625, %v517_v2  ;;  %v649_v32 = vmul.f32 %v4870_v20, %v4870_v20  ;;  %v650_v33 = vmul.f32 %v4873_v9, %v4873_v9  ;;  %v4884_v19 = vsub.f32 %v4602_v35, %v565_v21  ;;  %3672 = vmatpush2.bf16.msra.mxu1 %v3835_v24  ;;  %1772 = vmatpush2.bf16.msra.mxu0 %v3835_v24 }
 0x116   : > { %v4887_v8 = vsub.f32 %v4605_v36, %v565_v21  ;;  %v715_v17 = vadd.f32 %v648_v30, %v647_v29  ;;  %v466_v57 = vpop.xlane.xlu0 %465  ;;  %v3836_v29 = vld [vmem:[#allocation8 + $0x244] ss:$24 sps:$4 sm:$0xff]  }
 0x117   : > { %v4890_v26 = vsub.f32 %v4610_v38, %v566_v23  ;;  %v4893_v27 = vsub.f32 %v4613_v39, %v566_v23  ;;  %v549_v31 = vmul.f32 0.00390625, %v466_v57  ;;  %v683_v36 = vmul.f32 %v4884_v19, %v4884_v19  ;;  %3657 = vmatprep.subr.bf16.mxu1 %v3836_v29  ;;  %1773 = vmatprep.subr.bf16.mxu0 %v3836_v29  ;;  %v3841_v29 = vld [vmem:[#allocation8 + $0x210] ss:$24 sps:$4 sm:$0xff]  }
 0x118   : > { %716 = vadd.xlane.f32.xlu0 %v715_v17  ;;  %767 = vadd.xlane.f32.xlu1 %v766_v4  ;;  %v469_v35 = vpop.xlane.xlu1 %468  ;;  %v684_v21 = vmul.f32 %v4887_v8, %v4887_v8  ;;  %v718_v2 = vadd.f32 %v650_v33, %v649_v32 }
 0x119   : > { %v550_v30 = vmul.f32 0.00390625, %v469_v35  ;;  %v685_v38 = vmul.f32 %v4890_v26, %v4890_v26  ;;  %v686_v39 = vmul.f32 %v4893_v27, %v4893_v27  ;;  %v4904_v23 = vsub.f32 %v4616_v40, %v549_v31  ;;  %3673 = vmatpush2.bf16.msra.mxu1 %v3838_v0  ;;  %1774 = vmatpush2.bf16.msra.mxu0 %v3838_v0 }
 0x11a   : > { %v4907_v4 = vsub.f32 %v4619_v41, %v549_v31  ;;  %v769_v24 = vadd.f32 %v684_v21, %v683_v36  ;;  %v520_v17 = vpop.xlane.xlu0 %519  ;;  %v3839_v36 = vld [vmem:[#allocation8 + $0x214] ss:$24 sps:$4 sm:$0xff]  }
 0x11b   : > { %v4910_v32 = vsub.f32 %v4624_v43, %v550_v30  ;;  %v4913_v33 = vsub.f32 %v4627_v44, %v550_v30  ;;  %v567_v57 = vmul.f32 0.00390625, %v520_v17  ;;  %v651_v41 = vmul.f32 %v4904_v23, %v4904_v23  ;;  %3658 = vmatprep.subr.bf16.mxu1 %v3839_v36  ;;  %1775 = vmatprep.subr.bf16.mxu0 %v3839_v36  ;;  %v3844_v36 = vld [vmem:[#allocation8 + $0x1e0] ss:$24 sps:$4 sm:$0xff]  }
 0x11c   : > { %770 = vadd.xlane.f32.xlu0 %v769_v24  ;;  %719 = vadd.xlane.f32.xlu1 %v718_v2  ;;  %v523_v40 = vpop.xlane.xlu1 %522  ;;  %v652_v31 = vmul.f32 %v4907_v4, %v4907_v4  ;;  %v772_v35 = vadd.f32 %v686_v39, %v685_v38 }
 0x11d   : > { %v568_v21 = vmul.f32 0.00390625, %v523_v40  ;;  %v653_v43 = vmul.f32 %v4910_v32, %v4910_v32  ;;  %v654_v44 = vmul.f32 %v4913_v33, %v4913_v33  ;;  %v4924_v30 = vsub.f32 %v4632_v46, %v567_v57  ;;  %3674 = vmatpush2.bf16.msra.mxu1 %v3841_v29  ;;  %1776 = vmatpush2.bf16.msra.mxu0 %v3841_v29 }
 0x11e   : > { %v4927_v2 = vsub.f32 %v4635_v47, %v567_v57  ;;  %v721_v0 = vadd.f32 %v652_v31, %v651_v41  ;;  %v472_v24 = vpop.xlane.xlu0 %471  ;;  %v3842_v41 = vld [vmem:[#allocation8 + $0x1e4] ss:$24 sps:$4 sm:$0xff]  }
 0x11f   : > { %v4930_v38 = vsub.f32 %v4640_v49, %v568_v21  ;;  %v4933_v39 = vsub.f32 %v4643_v50, %v568_v21  ;;  %v551_v17 = vmul.f32 0.00390625, %v472_v24  ;;  %v687_v47 = vmul.f32 %v4924_v30, %v4924_v30  ;;  %3659 = vmatprep.subr.bf16.mxu1 %v3842_v41  ;;  %1777 = vmatprep.subr.bf16.mxu0 %v3842_v41  ;;  %v3847_v41 = vld [vmem:[#allocation8 + $0x1b0] ss:$24 sps:$4 sm:$0xff]  }
 0x120   : > { %722 = vadd.xlane.f32.xlu0 %v721_v0  ;;  %773 = vadd.xlane.f32.xlu1 %v772_v35  ;;  %v475_v46 = vpop.xlane.xlu1 %474  ;;  %v688_v57 = vmul.f32 %v4927_v2, %v4927_v2  ;;  %v724_v40 = vadd.f32 %v654_v44, %v653_v43 }
 0x121   : > { %v552_v31 = vmul.f32 0.00390625, %v475_v46  ;;  %v689_v49 = vmul.f32 %v4930_v38, %v4930_v38  ;;  %v690_v50 = vmul.f32 %v4933_v39, %v4933_v39  ;;  %v4944_v21 = vsub.f32 %v4648_v52, %v551_v17  ;;  %3675 = vmatpush2.bf16.msra.mxu1 %v3844_v36  ;;  %1778 = vmatpush2.bf16.msra.mxu0 %v3844_v36 }
 0x122   : > { %v4947_v35 = vsub.f32 %v4651_v53, %v551_v17  ;;  %v775_v29 = vadd.f32 %v688_v57, %v687_v47  ;;  %v526_v0 = vpop.xlane.xlu0 %525  ;;  %v3845_v47 = vld [vmem:[#allocation8 + $0x1b4] ss:$24 sps:$4 sm:$0xff]  }
 0x123   : > { %v4950_v43 = vsub.f32 %v4656_v55, %v552_v31  ;;  %v4953_v44 = vsub.f32 %v4659_v56, %v552_v31  ;;  %v569_v24 = vmul.f32 0.00390625, %v526_v0  ;;  %v655_v53 = vmul.f32 %v4944_v21, %v4944_v21  ;;  %3660 = vmatprep.subr.bf16.mxu1 %v3845_v47  ;;  %1779 = vmatprep.subr.bf16.mxu0 %v3845_v47  ;;  %v3850_v47 = vld [vmem:[#allocation8 + $0x180] ss:$24 sps:$4 sm:$0xff]  }
 0x124   : > { %776 = vadd.xlane.f32.xlu0 %v775_v29  ;;  %725 = vadd.xlane.f32.xlu1 %v724_v40  ;;  %v529_v52 = vpop.xlane.xlu1 %528  ;;  %v656_v17 = vmul.f32 %v4947_v35, %v4947_v35  ;;  %v778_v46 = vadd.f32 %v690_v50, %v689_v49 }
 0x125   : > { %v570_v57 = vmul.f32 0.00390625, %v529_v52  ;;  %v657_v55 = vmul.f32 %v4950_v43, %v4950_v43  ;;  %v658_v56 = vmul.f32 %v4953_v44, %v4953_v44  ;;  %v4964_v31 = vsub.f32 %v4664_v58, %v569_v24  ;;  %3676 = vmatpush2.bf16.msra.mxu1 %v3847_v41  ;;  %1780 = vmatpush2.bf16.msra.mxu0 %v3847_v41 }
 0x126   : > { %v4967_v40 = vsub.f32 %v4667_v59, %v569_v24  ;;  %v727_v36 = vadd.f32 %v656_v17, %v655_v53  ;;  %v478_v29 = vpop.xlane.xlu0 %477  ;;  %v3848_v53 = vld [vmem:[#allocation8 + $0x184] ss:$24 sps:$4 sm:$0xff]  }
 0x127   : > { %v4970_v49 = vsub.f32 %v4672_v61, %v570_v57  ;;  %v4973_v50 = vsub.f32 %v4675_v62, %v570_v57  ;;  %v553_v0 = vmul.f32 0.00390625, %v478_v29  ;;  %v691_v59 = vmul.f32 %v4964_v31, %v4964_v31  ;;  %3661 = vmatprep.subr.bf16.mxu1 %v3848_v53  ;;  %1781 = vmatprep.subr.bf16.mxu0 %v3848_v53 }
 0x128   : > { %728 = vadd.xlane.f32.xlu0 %v727_v36  ;;  %779 = vadd.xlane.f32.xlu1 %v778_v46  ;;  %v481_v58 = vpop.xlane.xlu1 %480  ;;  %v692_v24 = vmul.f32 %v4967_v40, %v4967_v40  ;;  %v730_v52 = vadd.f32 %v658_v56, %v657_v55 }
 0x129   : > { %6075 = vst [vmem:[#allocation40_spill] sm:$0xff] %v4970_v49  ;;  %v554_v17 = vmul.f32 0.00390625, %v481_v58  ;;  %v693_v61 = vmul.f32 %v4970_v49, %v4970_v49  ;;  %v694_v62 = vmul.f32 %v4973_v50, %v4973_v50  ;;  %v4984_v57 = vsub.f32 %v4680_v3, %v553_v0  ;;  %3677 = vmatpush2.bf16.msra.mxu1 %v3850_v47 }
 0x12a   : > { %v4987_v46 = vsub.f32 %v4683_v7, %v553_v0  ;;  %v781_v41 = vadd.f32 %v692_v24, %v691_v59  ;;  %v532_v36 = vpop.xlane.xlu0 %531  ;;  %1782 = vmatpush2.bf16.msra.mxu0 %v3850_v47  ;;  %v3853_v59 = vld [vmem:[#allocation8 + $0x15c] ss:$24 sps:$4 sm:$0xff]  }
 0x12b   : > { %6076 = vst [vmem:[#allocation41_spill] sm:$0xff] %v4984_v57  ;;  %v4990_v55 = vsub.f32 %v4688_v13, %v554_v17  ;;  %v4993_v56 = vsub.f32 %v4691_v16, %v554_v17  ;;  %v571_v29 = vmul.f32 0.00390625, %v532_v36  ;;  %v659_v7 = vmul.f32 %v4984_v57, %v4984_v57  ;;  %1944 = vmatprep.subr.bf16.mxu1 %v3853_v59  ;;  %v6083_v36 = vld [vmem:[#allocation24_spill] sm:$0xff] }
 0x12c   : > { %6077 = vst [vmem:[#allocation42_spill] sm:$0xff] %v4987_v46  ;;  %782 = vadd.xlane.f32.xlu0 %v781_v41  ;;  %731 = vadd.xlane.f32.xlu1 %v730_v52  ;;  %v535_v3 = vpop.xlane.xlu1 %534  ;;  %v660_v0 = vmul.f32 %v4987_v46, %v4987_v46  ;;  %v784_v58 = vadd.f32 %v694_v62, %v693_v61  ;;  %v6081_v52 = vld [vmem:[#allocation23_spill] sm:$0xff]  ;;  %v6085_v61 = vld [vmem:[#allocation25_spill] sm:$0xff] }
 0x12d   : > { %6078 = vst [vmem:[#allocation43_spill] sm:$0xff] %v4990_v55  ;;  %6079 = vst [vmem:[#allocation44_spill] sm:$0xff] %v4993_v56  ;;  %v572_v24 = vmul.f32 0.00390625, %v535_v3  ;;  %v661_v13 = vmul.f32 %v4990_v55, %v4990_v55  ;;  %v662_v16 = vmul.f32 %v4993_v56, %v4993_v56  ;;  %v5004_v53 = vsub.f32 %v4696_v22, %v571_v29 }
 0x12e   : > { %v5007_v17 = vsub.f32 %v6081_v52, %v571_v29  ;;  %v733_v47 = vadd.f32 %v660_v0, %v659_v7  ;;  %v484_v41 = vpop.xlane.xlu0 %483  ;;  %v3856_v7 = vld [vmem:[#allocation8 + $0x164] ss:$24 sps:$4 sm:$0xff]  }
 0x12f   : > { %6080 = vst [vmem:[#allocation45_spill] sm:$0xff] %v5004_v53  ;;  %v5010_v57 = vsub.f32 %v6083_v36, %v572_v24  ;;  %v5013_v62 = vsub.f32 %v6085_v61, %v572_v24  ;;  %v555_v3 = vmul.f32 0.00390625, %v484_v41  ;;  %v695_v22 = vmul.f32 %v5004_v53, %v5004_v53  ;;  %2137 = vmatprep.subr.bf16.mxu0 %v3856_v7  ;;  %v6093_v7 = vld [vmem:[#allocation28_spill] sm:$0xff] }
 0x130   : > { %6082 = vst [vmem:[#allocation23_spill] sm:$0xff] %v5007_v17  ;;  %734 = vadd.xlane.f32.xlu0 %v733_v47  ;;  %785 = vadd.xlane.f32.xlu1 %v784_v58  ;;  %v487_v55 = vpop.xlane.xlu1 %486  ;;  %v696_v29 = vmul.f32 %v5007_v17, %v5007_v17  ;;  %v736_v52 = vadd.f32 %v662_v16, %v661_v13  ;;  %v6088_v58 = vld [vmem:[#allocation26_spill] sm:$0xff]  ;;  %v6091_v13 = vld [vmem:[#allocation27_spill] sm:$0xff] }
 0x131   : > { %6084 = vst [vmem:[#allocation24_spill] sm:$0xff] %v5010_v57  ;;  %6086 = vst [vmem:[#allocation25_spill] sm:$0xff] %v5013_v62  ;;  %v556_v0 = vmul.f32 0.00390625, %v487_v55  ;;  %v697_v59 = vmul.f32 %v5010_v57, %v5010_v57  ;;  %v698_v24 = vmul.f32 %v5013_v62, %v5013_v62  ;;  %v5024_v41 = vsub.f32 %v4712_v42, %v555_v3 }
 0x132   : > { %v5027_v47 = vsub.f32 %v6088_v58, %v555_v3  ;;  %v787_v36 = vadd.f32 %v696_v29, %v695_v22  ;;  %v538_v61 = vpop.xlane.xlu0 %537 }
 0x133   : > { %6087 = vst [vmem:[#allocation46_spill] sm:$0xff] %v5024_v41  ;;  %v5030_v53 = vsub.f32 %v4720_v51, %v556_v0  ;;  %v5033_v55 = vsub.f32 %v6091_v13, %v556_v0  ;;  %v573_v16 = vmul.f32 0.00390625, %v538_v61  ;;  %v663_v42 = vmul.f32 %v5024_v41, %v5024_v41 }
 0x134   : > { %6089 = vst [vmem:[#allocation26_spill] sm:$0xff] %v5027_v47  ;;  %788 = vadd.xlane.f32.xlu0 %v787_v36  ;;  %737 = vadd.xlane.f32.xlu1 %v736_v52  ;;  %v541_v57 = vpop.xlane.xlu1 %540  ;;  %v664_v3 = vmul.f32 %v5027_v47, %v5027_v47  ;;  %v790_v58 = vadd.f32 %v698_v24, %v697_v59  ;;  %v6095_v36 = vld [vmem:[#allocation29_spill] sm:$0xff]  ;;  %v6098_v47 = vld [vmem:[#allocation30_spill] sm:$0xff] }
 0x135   : > { %6090 = vst [vmem:[#allocation47_spill] sm:$0xff] %v5030_v53  ;;  %6092 = vst [vmem:[#allocation27_spill] sm:$0xff] %v5033_v55  ;;  %v574_v22 = vmul.f32 0.00390625, %v541_v57  ;;  %v665_v29 = vmul.f32 %v5030_v53, %v5030_v53  ;;  %v666_v51 = vmul.f32 %v5033_v55, %v5033_v55  ;;  %v5044_v0 = vsub.f32 %v6093_v7, %v573_v16  ;;  %v6106_v55 = vld [vmem:[#allocation34_spill] sm:$0xff] }
 0x136   : > { %v5047_v52 = vsub.f32 %v6095_v36, %v573_v16  ;;  %v739_v61 = vadd.f32 %v664_v3, %v663_v42  ;;  %v490_v13 = vpop.xlane.xlu0 %489 }
 0x137   : > { %6094 = vst [vmem:[#allocation28_spill] sm:$0xff] %v5044_v0  ;;  %v5050_v41 = vsub.f32 %v4738_v28, %v574_v22  ;;  %v5053_v59 = vsub.f32 %v6098_v47, %v574_v22  ;;  %v557_v57 = vmul.f32 0.00390625, %v490_v13  ;;  %v699_v53 = vmul.f32 %v5044_v0, %v5044_v0  ;;  %v6100_v47 = vld [vmem:[#allocation31_spill] sm:$0xff]  ;;  %v6102_v22 = vld [vmem:[#allocation32_spill] sm:$0xff]  ;;  %v6104_v13 = vld [vmem:[#allocation33_spill] sm:$0xff] }
 0x138   : > { %6096 = vst [vmem:[#allocation29_spill] sm:$0xff] %v5047_v52  ;;  %740 = vadd.xlane.f32.xlu0 %v739_v61  ;;  %791 = vadd.xlane.f32.xlu1 %v790_v58  ;;  %v493_v24 = vpop.xlane.xlu1 %492  ;;  %v700_v7 = vmul.f32 %v5047_v52, %v5047_v52  ;;  %v742_v16 = vadd.f32 %v666_v51, %v665_v29 }
 0x139   : > { %6097 = vst [vmem:[#allocation48_spill] sm:$0xff] %v5050_v41  ;;  %6099 = vst [vmem:[#allocation30_spill] sm:$0xff] %v5053_v59  ;;  %v558_v36 = vmul.f32 0.00390625, %v493_v24  ;;  %v701_v42 = vmul.f32 %v5050_v41, %v5050_v41  ;;  %v702_v28 = vmul.f32 %v5053_v59, %v5053_v59  ;;  %v5064_v3 = vsub.f32 %v6100_v47, %v557_v57 }
 0x13a   : > { %v5067_v58 = vsub.f32 %v6102_v22, %v557_v57  ;;  %v793_v61 = vadd.f32 %v700_v7, %v699_v53 }
 0x13b   : > { %6101 = vst [vmem:[#allocation31_spill] sm:$0xff] %v5064_v3  ;;  %v5070_v0 = vsub.f32 %v6104_v13, %v558_v36  ;;  %v5073_v52 = vsub.f32 %v6106_v55, %v558_v36  ;;  %v667_v29 = vmul.f32 %v5064_v3, %v5064_v3  ;;  %v796_v24 = vadd.f32 %v702_v28, %v701_v42 }
 0x13c   : > { %6103 = vst [vmem:[#allocation32_spill] sm:$0xff] %v5067_v58  ;;  %794 = vadd.xlane.f32.xlu0 %v793_v61  ;;  %743 = vadd.xlane.f32.xlu1 %v742_v16  ;;  %v668_v51 = vmul.f32 %v5067_v58, %v5067_v58  ;;  %v961_v42 = vlaneseq }
 0x13d   : > { %6105 = vst [vmem:[#allocation33_spill] sm:$0xff] %v5070_v0  ;;  %6107 = vst [vmem:[#allocation34_spill] sm:$0xff] %v5073_v52  ;;  %v669_v57 = vmul.f32 %v5070_v0, %v5070_v0  ;;  %v670_v53 = vmul.f32 %v5073_v52, %v5073_v52 }
 0x13e   : > { %v745_v7 = vadd.f32 %v668_v51, %v667_v29  ;;  %v5083_v51 = vshrl.u32 %v961_v42, 7  ;;  %v1035_v42 = vld [vmem:[#allocation7] sm:$0x3] }
 0x13f   : > { %v748_v55 = vadd.f32 %v670_v53, %v669_v57 }
 0x140   : > { %746 = vadd.xlane.f32.xlu0 %v745_v7  ;;  %797 = vadd.xlane.f32.xlu1 %v796_v24  ;;  %6108 = vst [vmem:[#allocation49_spill] sm:$0xff] %v5083_v51 }
 0x144   : > { %749 = vadd.xlane.f32.xlu1 %v748_v55 }
 0x18d   : > { %v753_v36 = vpop.xlane.xlu0 %752 }
 0x18e   : > { %v815_v16 = vmul.f32 0.00390625, %v753_v36 }
 0x190   : > { %v847_v47 = vadd.f32 1e-05, %v815_v16  ;;  %v5086_v16 = vsub.s32 1, %v5083_v51 }
 0x191   : > { %v705_v22 = vpop.xlane.xlu0 %704  ;;  %v756_v61 = vpop.xlane.xlu1 %755 }
 0x192   : > { %3947 = vrsqrt.f32 %v847_v47  ;;  %v799_v13 = vmul.f32 0.00390625, %v705_v22  ;;  %v816_v3 = vmul.f32 0.00390625, %v756_v61  ;;  %6109 = vst [vmem:[#allocation50_spill] sm:$0xff] %v5086_v16  ;;  %v5089_v47 = vsub.s32 0, %v5083_v51  ;;  %v6112_v51 = vld [vmem:[#allocation35_spill] sm:$0xff] }
 0x194   : > { %v831_v28 = vadd.f32 1e-05, %v799_v13  ;;  %v848_v58 = vadd.f32 1e-05, %v816_v3  ;;  %v959_v3 = vld [vmem:[#allocation5] sm:$0x3] }
 0x195   : > { %v759_v0 = vpop.xlane.xlu0 %758  ;;  %v708_v41 = vpop.xlane.xlu1 %707  ;;  %6110 = vst [vmem:[#allocation51_spill] sm:$0xff] %v5089_v47  ;;  %v5092_v13 = vrot.slane %v959_v3, %v5086_v16 }
 0x196   : > { %3949 = vrsqrt.f32 %v831_v28  ;;  %v817_v52 = vmul.f32 0.00390625, %v759_v0  ;;  %v800_v29 = vmul.f32 0.00390625, %v708_v41 }
 0x197   : > { %3951 = vrsqrt.f32 %v848_v58 }
 0x198   : > { %v849_v24 = vadd.f32 1e-05, %v817_v52  ;;  %v832_v57 = vadd.f32 1e-05, %v800_v29  ;;  %v5095_v29 = vrot.slane %v959_v3, %v5089_v47 }
 0x199   : > { %v711_v53 = vpop.xlane.xlu0 %710  ;;  %v762_v7 = vpop.xlane.xlu1 %761 }
 0x19a   : > { %3953 = vrsqrt.f32 %v849_v24  ;;  %v801_v55 = vmul.f32 0.00390625, %v711_v53  ;;  %v818_v36 = vmul.f32 0.00390625, %v762_v7  ;;  %v6111_v53 = vld [vmem:[#allocation36_spill] sm:$0xff] }
 0x19b   : > { %3955 = vrsqrt.f32 %v832_v57 }
 0x19c   : > { %v850_v0 = vadd.f32 1e-05, %v818_v36  ;;  %v833_v41 = vadd.f32 1e-05, %v801_v55 }
 0x19d   : > { %v765_v22 = vpop.xlane.xlu0 %764  ;;  %v714_v61 = vpop.xlane.xlu1 %713 }
 0x19e   : > { %v819_v58 = vmul.f32 0.00390625, %v765_v22  ;;  %v802_v52 = vmul.f32 0.00390625, %v714_v61  ;;  %3957 = vrsqrt.f32 %v850_v0  ;;  %v5100_v22 = vrot.slane %v1035_v42, %v5086_v16 }
 0x19f   : > { %v3948_v28 = vpop.eup %3947  ;;  %3959 = vrsqrt.f32 %v833_v41  ;;  %v5104_v0 = vrot.slane %v1035_v42, %v5089_v47  ;;  %v6114_v42 = vld [vmem:[#allocation37_spill] sm:$0xff] }
 0x1a0   : > { %v851_v24 = vadd.f32 1e-05, %v819_v58  ;;  %v834_v57 = vadd.f32 1e-05, %v802_v52  ;;  %v928_v7 = vmul.f32 %v3948_v28, %v6111_v53  ;;  %v927_v36 = vmul.f32 %v3948_v28, %v6112_v51  ;;  %v6113_v28 = vld [vmem:[#allocation38_spill] sm:$0xff] }
 0x1a1   : > { %v717_v55 = vpop.xlane.xlu0 %716  ;;  %v768_v59 = vpop.xlane.xlu1 %767 }
 0x1a2   : > { %v803_v61 = vmul.f32 0.00390625, %v717_v55  ;;  %v820_v62 = vmul.f32 0.00390625, %v768_v59  ;;  %v1004_v17 = vmul.f32 %v5092_v13, %v928_v7  ;;  %3961 = vrsqrt.f32 %v834_v57 }
 0x1a3   : > { %v3950_v3 = vpop.eup %3949  ;;  %v1003_v58 = vmul.f32 %v5095_v29, %v927_v36  ;;  %3963 = vrsqrt.f32 %v851_v24 }
 0x1a4   : > { %v3952_v52 = vpop.eup %3951  ;;  %v835_v51 = vadd.f32 1e-05, %v803_v61  ;;  %v852_v41 = vadd.f32 1e-05, %v820_v62  ;;  %v896_v53 = vmul.f32 %v3950_v3, %v6113_v28  ;;  %v1080_v59 = vadd.f32 %v5100_v22, %v1004_v17 }
 0x1a5   : > { %v771_v56 = vpop.xlane.xlu0 %770  ;;  %v720_v16 = vpop.xlane.xlu1 %719  ;;  %v930_v55 = vmul.f32 %v3952_v52, %v4787_v6  ;;  %v929_v7 = vmul.f32 %v3952_v52, %v4784_v5  ;;  %v895_v47 = vmul.f32 %v3950_v3, %v6114_v42  ;;  %v1079_v36 = vadd.f32 %v5104_v0, %v1003_v58 }
 0x1a6   : > { %v821_v46 = vmul.f32 0.00390625, %v771_v56  ;;  %v804_v57 = vmul.f32 0.00390625, %v720_v16  ;;  %v972_v24 = vmul.f32 %v5092_v13, %v896_v53  ;;  %3965 = vrsqrt.f32 %v852_v41 }
 0x1a7   : > { %v3954_v61 = vpop.eup %3953  ;;  %v1006_v62 = vmul.f32 %v5092_v13, %v930_v55  ;;  %v1005_v28 = vmul.f32 %v5095_v29, %v929_v7  ;;  %v971_v6 = vmul.f32 %v5095_v29, %v895_v47  ;;  %3967 = vrsqrt.f32 %v835_v51 }
 0x1a8   : > { %v3956_v49 = vpop.eup %3955  ;;  %v853_v17 = vadd.f32 1e-05, %v821_v46  ;;  %v836_v5 = vadd.f32 1e-05, %v804_v57  ;;  %v932_v3 = vmul.f32 %v3954_v61, %v4807_v54  ;;  %v1048_v47 = vadd.f32 %v5100_v22, %v972_v24  ;;  %v3851_v46 = vld [vmem:[#allocation8 + $0x158] ss:$24 sps:$4 sm:$0xff]  }
 0x1a9   : > { %v723_v56 = vpop.xlane.xlu0 %722  ;;  %v774_v16 = vpop.xlane.xlu1 %773  ;;  %v1082_v58 = vadd.f32 %v5100_v22, %v1006_v62  ;;  %v1081_v52 = vadd.f32 %v5104_v0, %v1005_v28  ;;  %v898_v41 = vmul.f32 %v3956_v49, %v4793_v60  ;;  %v897_v53 = vmul.f32 %v3956_v49, %v4790_v63  ;;  %v3859_v63 = vld [vmem:[#allocation8 + $0x12c] ss:$24 sps:$4 sm:$0xff]  }
 0x1aa   : > { %3969 = vrsqrt.f32 %v853_v17  ;;  %v805_v55 = vmul.f32 0.00390625, %v723_v56  ;;  %v822_v7 = vmul.f32 0.00390625, %v774_v16  ;;  %v1047_v57 = vadd.f32 %v5104_v0, %v971_v6 }
 0x1ab   : > { %v5123_v51 = vpack.c.bf16 %v1082_v58, %v1080_v59  ;;  %v5125_v42 = vpack.c.bf16 %v1081_v52, %v1079_v36  ;;  %v974_v54 = vmul.f32 %v5092_v13, %v898_v41  ;;  %v3958_v62 = vpop.eup %3957  ;;  %3971 = vrsqrt.f32 %v836_v5 }
 0x1ac   : > { %v837_v28 = vadd.f32 1e-05, %v805_v55  ;;  %v973_v60 = vmul.f32 %v5095_v29, %v897_v53  ;;  %v1008_v49 = vmul.f32 %v5092_v13, %v932_v3  ;;  %v934_v36 = vmul.f32 %v3958_v62, %v4813_v1  ;;  %v3960_v16 = vpop.eup %3959  ;;  %v3854_v53 = vld [vmem:[#allocation8 + $0x160] ss:$24 sps:$4 sm:$0xff]  }
 0x1ad   : > { %1863 = vmatprep.mubr.bf16.mxu1 %v5123_v51  ;;  %v777_v24 = vpop.xlane.xlu0 %776  ;;  %v726_v59 = vpop.xlane.xlu1 %725  ;;  %v1050_v17 = vadd.f32 %v5100_v22, %v974_v54  ;;  %v931_v56 = vmul.f32 %v3954_v61, %v4804_v10  ;;  %v933_v6 = vmul.f32 %v3958_v62, %v4810_v45  ;;  %v854_v5 = vadd.f32 1e-05, %v822_v7  ;;  %v3857_v55 = vld [vmem:[#allocation8 + $0x128] ss:$24 sps:$4 sm:$0xff]   ;;  %v3862_v61 = vld [vmem:[#allocation8 + $0x134] ss:$24 sps:$4 sm:$0xff]  }
 0x1ae   : > { %v823_v58 = vmul.f32 0.00390625, %v777_v24  ;;  %1864 = vmatmul.mubr.bf16.vlgmr.msra.gmra.mxu1 %v5125_v42  ;;  %v806_v52 = vmul.f32 0.00390625, %v726_v59  ;;  %v1049_v3 = vadd.f32 %v5104_v0, %v973_v60  ;;  %3973 = vrsqrt.f32 %v837_v28  ;;  %v3865_v60 = vld [vmem:[#allocation8 + $0xfc] ss:$24 sps:$4 sm:$0xff]  }
 0x1af   : > { %1945 = vmatpush1.bf16.msra.mxu1 %v3851_v46  ;;  %v5138_v41 = vpack.c.bf16 %v1050_v17, %v1048_v47  ;;  %v1010_v1 = vmul.f32 %v5092_v13, %v934_v36  ;;  %v1084_v10 = vadd.f32 %v5100_v22, %v1008_v49  ;;  %v3962_v45 = vpop.eup %3961  ;;  %v1007_v24 = vmul.f32 %v5095_v29, %v931_v56 }
 0x1b0   : > { %v855_v54 = vadd.f32 1e-05, %v823_v58  ;;  %v838_v7 = vadd.f32 1e-05, %v806_v52  ;;  %v5142_v62 = vpack.c.bf16 %v1049_v3, %v1047_v57  ;;  %1946 = vmatprep.subr.bf16.mxu1 %v3859_v63  ;;  %v5145_v28 = vpop.eup %3963  ;;  %v1009_v49 = vmul.f32 %v5095_v29, %v933_v6  ;;  %v3860_v52 = vld [vmem:[#allocation8 + $0x130] ss:$24 sps:$4 sm:$0xff]  }
 0x1b1   : > { %1783 = vmatprep.mubr.bf16.mxu0 %v5138_v41  ;;  %v729_v47 = vpop.xlane.xlu0 %728  ;;  %v780_v46 = vpop.xlane.xlu1 %779  ;;  %v1086_v59 = vadd.f32 %v5100_v22, %v1010_v1  ;;  %v900_v17 = vmul.f32 %v3960_v16, %v4827_v37  ;;  %v902_v36 = vmul.f32 %v3962_v45, %v4833_v48  ;;  %3975 = vrsqrt.f32 %v854_v5  ;;  %v3863_v5 = vld [vmem:[#allocation8 + $0xf8] ss:$24 sps:$4 sm:$0xff]  }
 0x1b2   : > { %v807_v57 = vmul.f32 0.00390625, %v729_v47  ;;  %1784 = vmatmul.mubr.bf16.vlgmr.msra.gmra.mxu0 %v5142_v62  ;;  %v824_v63 = vmul.f32 0.00390625, %v780_v46  ;;  %v1083_v56 = vadd.f32 %v5104_v0, %v1007_v24  ;;  %3977 = vrsqrt.f32 %v855_v54  ;;  %v3868_v47 = vld [vmem:[#allocation8 + $0x104] ss:$24 sps:$4 sm:$0xff]  }
 0x1b3   : > { %2138 = vmatpush1.bf16.msra.mxu0 %v3854_v53  ;;  %1947 = vmatpush1.bf16.msra.mxu1 %v3857_v55  ;;  %v5154_v58 = vpack.c.bf16 %v1086_v59, %v1084_v10  ;;  %v1085_v3 = vadd.f32 %v5104_v0, %v1009_v49  ;;  %v976_v6 = vmul.f32 %v5092_v13, %v900_v17  ;;  %v3966_v37 = vpop.eup %3965  ;;  %3979 = vrsqrt.f32 %v838_v7  ;;  %v6116_v59 = vld [vmem:[#allocation39_spill] sm:$0xff] }
 0x1b4   : > { %v839_v48 = vadd.f32 1e-05, %v807_v57  ;;  %2139 = vmatprep.subr.bf16.mxu0 %v3862_v61  ;;  %1948 = vmatprep.subr.bf16.mxu1 %v3865_v60  ;;  %v978_v1 = vmul.f32 %v5092_v13, %v902_v36  ;;  %v899_v54 = vmul.f32 %v3960_v16, %v4824_v15  ;;  %v5160_v53 = vpop.eup %3967  ;;  %v856_v55 = vadd.f32 1e-05, %v824_v63  ;;  %v3871_v49 = vld [vmem:[#allocation8 + $0xcc] ss:$24 sps:$4 sm:$0xff]  }
 0x1b5   : > { %1873 = vmatprep.mubr.bf16.mxu1 %v5154_v58  ;;  %v783_v10 = vpop.xlane.xlu0 %782  ;;  %v5163_v24 = vpack.c.bf16 %v1085_v3, %v1083_v56  ;;  %v732_v46 = vpop.xlane.xlu1 %731  ;;  %v901_v7 = vmul.f32 %v3962_v45, %v6116_v59  ;;  %v936_v61 = vmul.f32 %v5145_v28, %v4847_v12  ;;  %v1052_v36 = vadd.f32 %v5100_v22, %v976_v6  ;;  %v3866_v57 = vld [vmem:[#allocation8 + $0x100] ss:$24 sps:$4 sm:$0xff]  }
 0x1b6   : > { %v825_v60 = vmul.f32 0.00390625, %v783_v10  ;;  %v808_v17 = vmul.f32 0.00390625, %v732_v46  ;;  %v1054_v15 = vadd.f32 %v5100_v22, %v978_v1  ;;  %3981 = vrsqrt.f32 %v839_v48  ;;  %v3869_v56 = vld [vmem:[#allocation8 + $0xc8] ss:$24 sps:$4 sm:$0xff]   ;;  %v3874_v48 = vld [vmem:[#allocation8 + $0xd4] ss:$24 sps:$4 sm:$0xff]  }
 0x1b7   : > { %6115 = vst [vmem:[#allocation36_spill] sm:$0xff] %v5163_v24  ;;  %v5170_v16 = vpop.eup %3969  ;;  %1874 = vmatmul.mubr.bf16.gmra.mxu1 %v5163_v24  ;;  %2140 = vmatpush1.bf16.msra.mxu0 %v3860_v52  ;;  %v975_v63 = vmul.f32 %v5095_v29, %v899_v54  ;;  %v977_v45 = vmul.f32 %v5095_v29, %v901_v7  ;;  %3983 = vrsqrt.f32 %v856_v55  ;;  %v3875_v55 = vld [vmem:[#allocation8 + $0x98] ss:$24 sps:$4 sm:$0xff]  }
 0x1b8   : > { %v938_v12 = vmul.f32 %v3966_v37, %v4853_v14  ;;  %v857_v3 = vadd.f32 1e-05, %v825_v60  ;;  %v840_v10 = vadd.f32 1e-05, %v808_v17  ;;  %1949 = vmatpush1.bf16.msra.mxu1 %v3863_v5  ;;  %v5176_v6 = vpack.c.bf16 %v1054_v15, %v1052_v36  ;;  %2141 = vmatprep.subr.bf16.mxu0 %v3868_v47  ;;  %v3972_v46 = vpop.eup %3971  ;;  %v3877_v5 = vld [vmem:[#allocation8 + $0x9c] ss:$24 sps:$4 sm:$0xff]  }
 0x1b9   : > { %v1012_v1 = vmul.f32 %v5092_v13, %v936_v61  ;;  %v735_v59 = vpop.xlane.xlu0 %734  ;;  %v1051_v52 = vadd.f32 %v5104_v0, %v975_v63  ;;  %v1053_v54 = vadd.f32 %v5104_v0, %v977_v45  ;;  %1950 = vmatprep.subr.bf16.mxu1 %v3871_v49  ;;  %v786_v7 = vpop.xlane.xlu1 %785  ;;  %v935_v14 = vmul.f32 %v5145_v28, %v4844_v11  ;;  %v3872_v49 = vld [vmem:[#allocation8 + $0xd0] ss:$24 sps:$4 sm:$0xff]  }
 0x1ba   : > { %v1014_v24 = vmul.f32 %v5092_v13, %v938_v12  ;;  %1793 = vmatprep.mubr.bf16.mxu0 %v5176_v6  ;;  %v809_v47 = vmul.f32 0.00390625, %v735_v59  ;;  %v826_v61 = vmul.f32 0.00390625, %v786_v7  ;;  %v937_v15 = vmul.f32 %v3966_v37, %v4850_v25 }
 0x1bb   : > { %v5185_v60 = vpack.c.bf16 %v1053_v54, %v1051_v52  ;;  %2142 = vmatpush1.bf16.msra.mxu0 %v3866_v57  ;;  %v1088_v17 = vadd.f32 %v5100_v22, %v1012_v1  ;;  %v5190_v63 = vpop.eup %3973  ;;  %3985 = vrsqrt.f32 %v857_v3  ;;  %v1011_v28 = vmul.f32 %v5095_v29, %v935_v14  ;;  %v3880_v57 = vld [vmem:[#allocation8 + $0xa4] ss:$24 sps:$4 sm:$0xff]   ;;  %v3878_v14 = vld [vmem:[#allocation8 + $0xa0] ss:$24 sps:$4 sm:$0xff]  }
 0x1bc   : > { %v1090_v36 = vadd.f32 %v5100_v22, %v1014_v24  ;;  %v841_v11 = vadd.f32 1e-05, %v809_v47  ;;  %1951 = vmatpush1.bf16.msra.mxu1 %v3869_v56  ;;  %2143 = vmatprep.subr.bf16.mxu0 %v3874_v48  ;;  %v904_v45 = vmul.f32 %v5160_v53, %v4867_v34  ;;  %3987 = vrsqrt.f32 %v840_v10  ;;  %v3883_v3 = vld [vmem:[#allocation8 + $0x6c] ss:$24 sps:$4 sm:$0xff]  }
 0x1bd   : > { %1794 = vmatmul.mubr.bf16.gmra.mxu0 %v5185_v60  ;;  %v789_v12 = vpop.xlane.xlu0 %788  ;;  %v1013_v25 = vmul.f32 %v5095_v29, %v937_v15  ;;  %1952 = vmatprep.subr.bf16.mxu1 %v3877_v5  ;;  %v738_v37 = vpop.xlane.xlu1 %737  ;;  %v906_v56 = vmul.f32 %v3972_v46, %v4873_v9  ;;  %v858_v1 = vadd.f32 1e-05, %v826_v61  ;;  %v1087_v59 = vadd.f32 %v5104_v0, %v1011_v28  ;;  %v3881_v5 = vld [vmem:[#allocation8 + $0x68] ss:$24 sps:$4 sm:$0xff]   ;;  %v3886_v15 = vld [vmem:[#allocation8 + $0x74] ss:$24 sps:$4 sm:$0xff]  }
 0x1be   : > { %v5196_v24 = vpack.c.bf16 %v1090_v36, %v1088_v17  ;;  %v827_v48 = vmul.f32 0.00390625, %v789_v12  ;;  %v810_v52 = vmul.f32 0.00390625, %v738_v37  ;;  %v3976_v34 = vpop.eup %3975  ;;  %3989 = vrsqrt.f32 %v841_v11 }
 0x1bf   : > { %v1089_v10 = vadd.f32 %v5104_v0, %v1013_v25  ;;  %2144 = vmatpush1.bf16.msra.mxu0 %v3872_v49  ;;  %v980_v54 = vmul.f32 %v5092_v13, %v904_v45  ;;  %v982_v7 = vmul.f32 %v5092_v13, %v906_v56  ;;  %v5205_v9 = vpop.eup %3977  ;;  %v903_v17 = vmul.f32 %v5160_v53, %v4864_v18 }
 0x1c0   : > { %1883 = vmatprep.mubr.bf16.mxu1 %v5196_v24  ;;  %v859_v47 = vadd.f32 1e-05, %v827_v48  ;;  %v842_v61 = vadd.f32 1e-05, %v810_v52  ;;  %1953 = vmatpush1.bf16.msra.mxu1 %v3875_v55  ;;  %v905_v36 = vmul.f32 %v3972_v46, %v4870_v20  ;;  %v5210_v11 = vpop.eup %3979  ;;  %v940_v55 = vmul.f32 %v5170_v16, %v4887_v8 }
 0x1c1   : > { %2145 = vmatprep.subr.bf16.mxu0 %v3880_v57  ;;  %v5212_v49 = vpack.c.bf16 %v1089_v10, %v1087_v59  ;;  %v1056_v28 = vadd.f32 %v5100_v22, %v980_v54  ;;  %v1058_v45 = vadd.f32 %v5100_v22, %v982_v7  ;;  %v741_v12 = vpop.xlane.xlu0 %740  ;;  %1954 = vmatprep.subr.bf16.mxu1 %v3883_v3  ;;  %v792_v25 = vpop.xlane.xlu1 %791  ;;  %v3889_v57 = vld [vmem:[#allocation8 + $0x3c] ss:$24 sps:$4 sm:$0xff]   ;;  %3991 = vrsqrt.f32 %v858_v1  ;;  %v3884_v3 = vld [vmem:[#allocation8 + $0x70] ss:$24 sps:$4 sm:$0xff]  }
 0x1c2   : > { %v811_v18 = vmul.f32 0.00390625, %v741_v12  ;;  %v979_v20 = vmul.f32 %v5095_v29, %v903_v17  ;;  %v981_v53 = vmul.f32 %v5095_v29, %v905_v36  ;;  %3993 = vrsqrt.f32 %v859_v47  ;;  %v3887_v10 = vld [vmem:[#allocation8 + $0x38] ss:$24 sps:$4 sm:$0xff]   ;;  %v3892_v17 = vld [vmem:[#allocation8 + $0x44] ss:$24 sps:$4 sm:$0xff]  }
 0x1c3   : > { %1884 = vmatmul.mubr.bf16.gmra.mxu1 %v5212_v49  ;;  %v5221_v46 = vpack.c.bf16 %v1058_v45, %v1056_v28  ;;  %2146 = vmatpush1.bf16.msra.mxu0 %v3878_v14  ;;  %v828_v37 = vmul.f32 0.00390625, %v792_v25  ;;  %v942_v56 = vmul.f32 %v3976_v34, %v4893_v27  ;;  %v5224_v48 = vpop.eup %3981  ;;  %v1016_v52 = vmul.f32 %v5092_v13, %v940_v55  ;;  %v3895_v28 = vld [vmem:[#allocation8 + $0xc] ss:$24 sps:$4 sm:$0xff]  }
 0x1c4   : > { %v843_v8 = vadd.f32 1e-05, %v811_v18  ;;  %v1055_v1 = vadd.f32 %v5104_v0, %v979_v20  ;;  %v1057_v59 = vadd.f32 %v5104_v0, %v981_v53  ;;  %1955 = vmatpush1.bf16.msra.mxu1 %v3881_v5  ;;  %2147 = vmatprep.subr.bf16.mxu0 %v3886_v15  ;;  %3995 = vrsqrt.f32 %v842_v61  ;;  %v3984_v61 = vpop.eup %3983  ;;  %v3898_v20 = vld [vmem:[#allocation8 + $0x14] ss:$24 sps:$4 sm:$0xff]  }
 0x1c5   : > { %1803 = vmatprep.mubr.bf16.mxu0 %v5221_v46  ;;  %v1018_v54 = vmul.f32 %v5092_v13, %v942_v56  ;;  %v795_v7 = vpop.xlane.xlu0 %794  ;;  %v939_v27 = vmul.f32 %v5170_v16, %v4884_v19  ;;  %v941_v14 = vmul.f32 %v3976_v34, %v4890_v26  ;;  %1956 = vmatprep.subr.bf16.mxu1 %v3889_v57  ;;  %v744_v47 = vpop.xlane.xlu1 %743  ;;  %v860_v36 = vadd.f32 1e-05, %v828_v37  ;;  %v3890_v26 = vld [vmem:[#allocation8 + $0x40] ss:$24 sps:$4 sm:$0xff]  }
 0x1c6   : > { %3997 = vrsqrt.f32 %v843_v8  ;;  %v5234_v5 = vpack.c.bf16 %v1057_v59, %v1055_v1  ;;  %v829_v15 = vmul.f32 0.00390625, %v795_v7  ;;  %v1092_v45 = vadd.f32 %v5100_v22, %v1016_v52  ;;  %v3893_v16 = vld [vmem:[#allocation8 + $0x8] ss:$24 sps:$4 sm:$0xff]   ;;  %v3901_v52 = vld [vmem:[#allocation8 + $0x2dc] ss:$24 sps:$4 sm:$0xff]  }
 0x1c7   : > { %v1094_v12 = vadd.f32 %v5100_v22, %v1018_v54  ;;  %v1015_v25 = vmul.f32 %v5095_v29, %v939_v27  ;;  %v1017_v19 = vmul.f32 %v5095_v29, %v941_v14  ;;  %2148 = vmatpush1.bf16.msra.mxu0 %v3884_v3  ;;  %v812_v55 = vmul.f32 0.00390625, %v744_v47 }
 0x1c8   : > { %1804 = vmatmul.mubr.bf16.gmra.mxu0 %v5234_v5  ;;  %v861_v34 = vadd.f32 1e-05, %v829_v15  ;;  %1957 = vmatpush1.bf16.msra.mxu1 %v3887_v10  ;;  %v908_v57 = vmul.f32 %v5190_v63, %v4907_v4  ;;  %v910_v18 = vmul.f32 %v5210_v11, %v4913_v33  ;;  %v5245_v53 = vpop.eup %3985  ;;  %v907_v1 = vmul.f32 %v5190_v63, %v4904_v23  ;;  %v3896_v63 = vld [vmem:[#allocation8 + $0x10] ss:$24 sps:$4 sm:$0xff]  }
 0x1c9   : > { %v5247_v37 = vpack.c.bf16 %v1094_v12, %v1092_v45  ;;  %v1091_v56 = vadd.f32 %v5104_v0, %v1015_v25  ;;  %v1093_v3 = vadd.f32 %v5104_v0, %v1017_v19  ;;  %2149 = vmatprep.subr.bf16.mxu0 %v3892_v17  ;;  %v747_v8 = vpop.xlane.xlu0 %746  ;;  %v798_v59 = vpop.xlane.xlu1 %797  ;;  %3999 = vrsqrt.f32 %v860_v36  ;;  %1958 = vmatprep.subr.bf16.mxu1 %v3895_v28  ;;  %v3899_v28 = vld [vmem:[#allocation8 + $0x2d8] ss:$24 sps:$4 sm:$0xff]   ;;  %v3904_v12 = vld [vmem:[#allocation8 + $0x2e4] ss:$24 sps:$4 sm:$0xff]  }
 0x1ca   : > { %v5253_v4 = vpop.eup %3987  ;;  %v844_v33 = vadd.f32 1e-05, %v812_v55  ;;  %v984_v10 = vmul.f32 %v5092_v13, %v908_v57  ;;  %v986_v54 = vmul.f32 %v5092_v13, %v910_v18  ;;  %4001 = vrsqrt.f32 %v861_v34  ;;  %v3907_v34 = vld [vmem:[#allocation8 + $0x2ac] ss:$24 sps:$4 sm:$0xff]  }
 0x1cb   : > { %1893 = vmatprep.mubr.bf16.mxu1 %v5247_v37  ;;  %v5258_v7 = vpack.c.bf16 %v1093_v3, %v1091_v56  ;;  %v909_v27 = vmul.f32 %v5210_v11, %v4910_v32  ;;  %v983_v23 = vmul.f32 %v5095_v29, %v907_v1  ;;  %2150 = vmatpush1.bf16.msra.mxu0 %v3890_v26  ;;  %v5263_v14 = vpop.eup %3989  ;;  %v813_v36 = vmul.f32 0.00390625, %v747_v8  ;;  %v3902_v56 = vld [vmem:[#allocation8 + $0x2e0] ss:$24 sps:$4 sm:$0xff]  }
 0x1cc   : > { %v1060_v47 = vadd.f32 %v5100_v22, %v984_v10  ;;  %v1062_v17 = vadd.f32 %v5100_v22, %v986_v54  ;;  %v830_v15 = vmul.f32 0.00390625, %v798_v59  ;;  %1959 = vmatpush1.bf16.msra.mxu1 %v3893_v16  ;;  %2151 = vmatprep.subr.bf16.mxu0 %v3898_v20  ;;  %4003 = vrsqrt.f32 %v844_v33  ;;  %v3905_v1 = vld [vmem:[#allocation8 + $0x2a8] ss:$24 sps:$4 sm:$0xff]  }
 0x1cd   : > { %1894 = vmatmul.mubr.bf16.gmra.mxu1 %v5258_v7  ;;  %v985_v32 = vmul.f32 %v5095_v29, %v909_v27  ;;  %v944_v11 = vmul.f32 %v5205_v9, %v4927_v2  ;;  %1960 = vmatprep.subr.bf16.mxu1 %v3901_v52  ;;  %v750_v45 = vpop.xlane.xlu1 %749  ;;  %v946_v26 = vmul.f32 %v3984_v61, %v4933_v39  ;;  %v845_v39 = vadd.f32 1e-05, %v813_v36 }
 0x1ce   : > { %v5271_v25 = vpack.c.bf16 %v1062_v17, %v1060_v47  ;;  %v862_v19 = vadd.f32 1e-05, %v830_v15  ;;  %v943_v16 = vmul.f32 %v5205_v9, %v4924_v30  ;;  %v3992_v55 = vpop.eup %3991  ;;  %v1059_v57 = vadd.f32 %v5104_v0, %v983_v23  ;;  %v3913_v15 = vld [vmem:[#allocation8 + $0x27c] ss:$24 sps:$4 sm:$0xff]  }
 0x1cf   : > { %v1061_v18 = vadd.f32 %v5104_v0, %v985_v32  ;;  %v1020_v20 = vmul.f32 %v5092_v13, %v944_v11  ;;  %v945_v2 = vmul.f32 %v3984_v61, %v4930_v38  ;;  %2152 = vmatpush1.bf16.msra.mxu0 %v3896_v63  ;;  %v5280_v3 = vpop.eup %3993  ;;  %v1022_v8 = vmul.f32 %v5092_v13, %v946_v26  ;;  %v3910_v61 = vld [vmem:[#allocation8 + $0x2b4] ss:$24 sps:$4 sm:$0xff]  }
 0x1d0   : > { %1813 = vmatprep.mubr.bf16.mxu0 %v5271_v25  ;;  %v1019_v30 = vmul.f32 %v5095_v29, %v943_v16  ;;  %v814_v9 = vmul.f32 0.00390625, %v750_v45  ;;  %1961 = vmatpush2.bf16.msra.mxu1 %v3899_v28  ;;  %4005 = vrsqrt.f32 %v862_v19  ;;  %v912_v38 = vmul.f32 %v5224_v48, %v4947_v35  ;;  %v3908_v45 = vld [vmem:[#allocation8 + $0x2b0] ss:$24 sps:$4 sm:$0xff]  }
 0x1d1   : > { %v5285_v59 = vpack.c.bf16 %v1061_v18, %v1059_v57  ;;  %v1021_v52 = vmul.f32 %v5095_v29, %v945_v2  ;;  %2153 = vmatprep.subr.bf16.mxu0 %v3904_v12  ;;  %v5290_v33 = vpop.eup %3995  ;;  %v1096_v10 = vadd.f32 %v5100_v22, %v1020_v20  ;;  %v1098_v54 = vadd.f32 %v5100_v22, %v1022_v8  ;;  %v6117_v2 = vld [vmem:[#allocation40_spill] sm:$0xff] }
 0x1d2   : > { %v1095_v27 = vadd.f32 %v5104_v0, %v1019_v30  ;;  %v914_v23 = vmul.f32 %v5253_v4, %v4953_v44  ;;  %1962 = vmatprep.subr.bf16.mxu1 %v3907_v34  ;;  %v988_v47 = vmul.f32 %v5092_v13, %v912_v38  ;;  %v911_v17 = vmul.f32 %v5224_v48, %v4944_v21  ;;  %v3911_v48 = vld [vmem:[#allocation8 + $0x278] ss:$24 sps:$4 sm:$0xff]   ;;  %v3916_v34 = vld [vmem:[#allocation8 + $0x284] ss:$24 sps:$4 sm:$0xff]  }
 0x1d3   : > { %v5297_v63 = vpop.eup %3997  ;;  %1814 = vmatmul.mubr.bf16.gmra.mxu0 %v5285_v59  ;;  %v1097_v35 = vadd.f32 %v5104_v0, %v1021_v52  ;;  %v913_v36 = vmul.f32 %v5253_v4, %v4950_v43  ;;  %v5306_v28 = vpack.c.bf16 %v1098_v54, %v1096_v10  ;;  %v846_v32 = vadd.f32 1e-05, %v814_v9  ;;  %v3919_v9 = vld [vmem:[#allocation8 + $0x24c] ss:$24 sps:$4 sm:$0xff]   ;;  %v3917_v54 = vld [vmem:[#allocation8 + $0x248] ss:$24 sps:$4 sm:$0xff]  }
 0x1d4   : > { %v990_v44 = vmul.f32 %v5092_v13, %v914_v23  ;;  %2154 = vmatpush2.bf16.msra.mxu0 %v3902_v56  ;;  %1963 = vmatpush2.bf16.msra.mxu1 %v3905_v1  ;;  %v948_v11 = vmul.f32 %v5245_v53, %v4967_v40  ;;  %v1064_v19 = vadd.f32 %v5100_v22, %v988_v47  ;;  %4007 = vrsqrt.f32 %v845_v39  ;;  %v3914_v39 = vld [vmem:[#allocation8 + $0x280] ss:$24 sps:$4 sm:$0xff]   ;;  %v6120_v47 = vld [vmem:[#allocation41_spill] sm:$0xff] }
 0x1d5   : > { %v5311_v12 = vpack.c.bf16 %v1097_v35, %v1095_v27  ;;  %v987_v21 = vmul.f32 %v5095_v29, %v911_v17  ;;  %v989_v43 = vmul.f32 %v5095_v29, %v913_v36  ;;  %2155 = vmatprep.subr.bf16.mxu0 %v3910_v61  ;;  %1903 = vmatprep.mubr.bf16.mxu1 %v5306_v28  ;;  %v6119_v61 = vld [vmem:[#allocation44_spill] sm:$0xff]  ;;  %4009 = vrsqrt.f32 %v846_v32  ;;  %v6121_v32 = vld [vmem:[#allocation43_spill] sm:$0xff] }
 0x1d6   : > { %v1066_v4 = vadd.f32 %v5100_v22, %v990_v44  ;;  %v950_v26 = vmul.f32 %v3992_v55, %v4973_v50  ;;  %v1024_v16 = vmul.f32 %v5092_v13, %v948_v11  ;;  %v947_v40 = vmul.f32 %v5245_v53, %v4964_v31  ;;  %v4000_v57 = vpop.eup %3999  ;;  %1964 = vmatprep.subr.bf16.mxu1 %v3913_v15  ;;  %v3922_v36 = vld [vmem:[#allocation8 + $0x254] ss:$24 sps:$4 sm:$0xff]  }
 0x1d7   : > { %1904 = vmatmul.mubr.bf16.gmra.mxu1 %v5311_v12  ;;  %v1063_v18 = vadd.f32 %v5104_v0, %v987_v21  ;;  %v1065_v20 = vadd.f32 %v5104_v0, %v989_v43  ;;  %v949_v56 = vmul.f32 %v3992_v55, %v6117_v2  ;;  %v5326_v8 = vpop.eup %4001  ;;  %v6118_v55 = vld [vmem:[#allocation42_spill] sm:$0xff]  ;;  %v918_v10 = vmul.f32 %v5290_v33, %v6119_v61  ;;  %v6122_v43 = vld [vmem:[#allocation23_spill] sm:$0xff]  ;;  %v6123_v2 = vld [vmem:[#allocation25_spill] sm:$0xff] }
 0x1d8   : > { %v5328_v50 = vpack.c.bf16 %v1066_v4, %v1064_v19  ;;  %v1026_v30 = vmul.f32 %v5092_v13, %v950_v26  ;;  %v1100_v31 = vadd.f32 %v5100_v22, %v1024_v16  ;;  %v1023_v53 = vmul.f32 %v5095_v29, %v947_v40  ;;  %2156 = vmatpush2.bf16.msra.mxu0 %v3908_v45  ;;  %v3925_v4 = vld [vmem:[#allocation8 + $0x21c] ss:$24 sps:$4 sm:$0xff]   ;;  %v3931_v61 = vld [vmem:[#allocation8 + $0x1ec] ss:$24 sps:$4 sm:$0xff]  }
 0x1d9   : > { %v5333_v1 = vpack.c.bf16 %v1065_v20, %v1063_v18  ;;  %v1025_v52 = vmul.f32 %v5095_v29, %v949_v56  ;;  %1965 = vmatpush2.bf16.msra.mxu1 %v3911_v48  ;;  %v916_v38 = vmul.f32 %v5263_v14, %v6118_v55  ;;  %v4004_v27 = vpop.eup %4003  ;;  %2157 = vmatprep.subr.bf16.mxu0 %v3916_v34  ;;  %v3920_v48 = vld [vmem:[#allocation8 + $0x250] ss:$24 sps:$4 sm:$0xff]  }
 0x1da   : > { %1823 = vmatprep.mubr.bf16.mxu0 %v5328_v50  ;;  %v1102_v23 = vadd.f32 %v5100_v22, %v1026_v30  ;;  %v1099_v35 = vadd.f32 %v5104_v0, %v1023_v53  ;;  %v915_v17 = vmul.f32 %v5263_v14, %v6120_v47  ;;  %v994_v11 = vmul.f32 %v5092_v13, %v918_v10  ;;  %v6125_v55 = vld [vmem:[#allocation24_spill] sm:$0xff]  ;;  %v3926_v47 = vld [vmem:[#allocation8 + $0x220] ss:$24 sps:$4 sm:$0xff]  }
 0x1db   : > { %1824 = vmatmul.mubr.bf16.gmra.mxu0 %v5333_v1  ;;  %v1101_v15 = vadd.f32 %v5104_v0, %v1025_v52  ;;  %v992_v44 = vmul.f32 %v5092_v13, %v916_v38  ;;  %v917_v45 = vmul.f32 %v5290_v33, %v6121_v32  ;;  %1966 = vmatprep.subr.bf16.mxu1 %v3919_v9  ;;  %v3923_v33 = vld [vmem:[#allocation8 + $0x218] ss:$24 sps:$4 sm:$0xff]  }
 0x1dc   : > { %v5351_v19 = vpack.c.bf16 %v1102_v23, %v1100_v31  ;;  %v991_v21 = vmul.f32 %v5095_v29, %v915_v17  ;;  %2158 = vmatpush2.bf16.msra.mxu0 %v3914_v39  ;;  %v952_v14 = vmul.f32 %v5280_v3, %v6122_v43  ;;  %v1070_v40 = vadd.f32 %v5100_v22, %v994_v11  ;;  %v3928_v31 = vld [vmem:[#allocation8 + $0x224] ss:$24 sps:$4 sm:$0xff]   ;;  %v6124_v9 = vld [vmem:[#allocation45_spill] sm:$0xff] }
 0x1dd   : > { %v5356_v26 = vpack.c.bf16 %v1101_v15, %v1099_v35  ;;  %v1068_v16 = vadd.f32 %v5100_v22, %v992_v44  ;;  %v993_v34 = vmul.f32 %v5095_v29, %v917_v45  ;;  %1967 = vmatpush2.bf16.msra.mxu1 %v3917_v54  ;;  %v4006_v18 = vpop.eup %4005  ;;  %v954_v56 = vmul.f32 %v4000_v57, %v6123_v2  ;;  %v6126_v23 = vld [vmem:[#allocation26_spill] sm:$0xff]  ;;  %v6127_v44 = vld [vmem:[#allocation27_spill] sm:$0xff]  ;;  %v3934_v43 = vld [vmem:[#allocation8 + $0x1f4] ss:$24 sps:$4 sm:$0xff]  }
 0x1de   : > { %1913 = vmatprep.mubr.bf16.mxu1 %v5351_v19  ;;  %v1067_v20 = vadd.f32 %v5104_v0, %v991_v21  ;;  %v1028_v30 = vmul.f32 %v5092_v13, %v952_v14  ;;  %2159 = vmatprep.subr.bf16.mxu0 %v3922_v36  ;;  %v951_v52 = vmul.f32 %v5280_v3, %v6124_v9  ;;  %v6128_v45 = vld [vmem:[#allocation46_spill] sm:$0xff] }
 0x1df   : > { %1914 = vmatmul.mubr.bf16.gmra.mxu1 %v5356_v26  ;;  %v5366_v53 = vpack.c.bf16 %v1070_v40, %v1068_v16  ;;  %v1069_v39 = vadd.f32 %v5104_v0, %v993_v34  ;;  %v953_v38 = vmul.f32 %v4000_v57, %v6125_v55  ;;  %v1030_v10 = vmul.f32 %v5092_v13, %v954_v56  ;;  %v3929_v57 = vld [vmem:[#allocation8 + $0x1e8] ss:$24 sps:$4 sm:$0xff]   ;;  %v3937_v56 = vld [vmem:[#allocation8 + $0x1bc] ss:$24 sps:$4 sm:$0xff]   ;;  %v3935_v55 = vld [vmem:[#allocation8 + $0x1b8] ss:$24 sps:$4 sm:$0xff]  }
 0x1e0   : > { %v1104_v54 = vadd.f32 %v5100_v22, %v1028_v30  ;;  %1968 = vmatprep.subr.bf16.mxu1 %v3925_v4  ;;  %2160 = vmatpush2.bf16.msra.mxu0 %v3920_v48  ;;  %v920_v35 = vmul.f32 %v5297_v63, %v6126_v23  ;;  %v1027_v36 = vmul.f32 %v5095_v29, %v951_v52  ;;  %v6129_v4 = vld [vmem:[#allocation47_spill] sm:$0xff]  ;;  %v6131_v9 = vld [vmem:[#allocation30_spill] sm:$0xff] }
 0x1e1   : > { %1833 = vmatprep.mubr.bf16.mxu0 %v5366_v53  ;;  %v5377_v17 = vpack.c.bf16 %v1069_v39, %v1067_v20  ;;  %v1029_v3 = vmul.f32 %v5095_v29, %v953_v38  ;;  %1969 = vmatpush2.bf16.msra.mxu1 %v3923_v33  ;;  %v1106_v15 = vadd.f32 %v5100_v22, %v1030_v10  ;;  %v4008_v40 = vpop.eup %4007  ;;  %v6130_v39 = vld [vmem:[#allocation29_spill] sm:$0xff]  ;;  %v6132_v10 = vld [vmem:[#allocation28_spill] sm:$0xff]  ;;  %v3940_v23 = vld [vmem:[#allocation8 + $0x1c4] ss:$24 sps:$4 sm:$0xff]  }
 0x1e2   : > { %v922_v11 = vmul.f32 %v4004_v27, %v6127_v44  ;;  %v996_v32 = vmul.f32 %v5092_v13, %v920_v35  ;;  %2161 = vmatprep.subr.bf16.mxu0 %v3928_v31  ;;  %v919_v21 = vmul.f32 %v5297_v63, %v6128_v45  ;;  %v1103_v14 = vadd.f32 %v5104_v0, %v1027_v36  ;;  %v3932_v63 = vld [vmem:[#allocation8 + $0x1f0] ss:$24 sps:$4 sm:$0xff]   ;;  %v4010_v35 = vpop.eup %4009  ;;  %v3938_v45 = vld [vmem:[#allocation8 + $0x1c0] ss:$24 sps:$4 sm:$0xff]  }
 0x1e3   : > { %1834 = vmatmul.mubr.bf16.gmra.mxu0 %v5377_v17  ;;  %v1105_v48 = vadd.f32 %v5104_v0, %v1029_v3  ;;  %v921_v16 = vmul.f32 %v4004_v27, %v6129_v4  ;;  %1970 = vmatprep.subr.bf16.mxu1 %v3931_v61  ;;  %v5390_v34 = vpack.c.bf16 %v1106_v15, %v1104_v54 }
 0x1e4   : > { %v998_v33 = vmul.f32 %v5092_v13, %v922_v11  ;;  %v1072_v20 = vadd.f32 %v5100_v22, %v996_v32  ;;  %v995_v2 = vmul.f32 %v5095_v29, %v919_v21  ;;  %2162 = vmatpush2.bf16.msra.mxu0 %v3926_v47  ;;  %v956_v27 = vmul.f32 %v5326_v8, %v6130_v39  ;;  %v6134_v32 = vld [vmem:[#allocation32_spill] sm:$0xff]  ;;  %v6136_v39 = vld [vmem:[#allocation31_spill] sm:$0xff] }
 0x1e5   : > { %v5395_v30 = vpack.c.bf16 %v1105_v48, %v1103_v14  ;;  %v997_v31 = vmul.f32 %v5095_v29, %v921_v16  ;;  %1971 = vmatpush2.bf16.msra.mxu1 %v3929_v57  ;;  %v958_v52 = vmul.f32 %v4006_v18, %v6131_v9  ;;  %1923 = vmatprep.mubr.bf16.mxu1 %v5390_v34  ;;  %v6133_v57 = vld [vmem:[#allocation48_spill] sm:$0xff]  ;;  %v6137_v9 = vld [vmem:[#allocation33_spill] sm:$0xff] }
 0x1e6   : > { %v1074_v38 = vadd.f32 %v5100_v22, %v998_v33  ;;  %v1071_v61 = vadd.f32 %v5104_v0, %v995_v2  ;;  %2163 = vmatprep.subr.bf16.mxu0 %v3934_v43  ;;  %v955_v54 = vmul.f32 %v5326_v8, %v6132_v10  ;;  %v1032_v36 = vmul.f32 %v5092_v13, %v956_v27  ;;  %v3943_v21 = vld [vmem:[#allocation8 + $0x18c] ss:$24 sps:$4 sm:$0xff]   ;;  %v6135_v33 = vld [vmem:[#allocation34_spill] sm:$0xff] }
 0x1e7   : > { %1924 = vmatmul.mubr.bf16.gmra.mxu1 %v5395_v30  ;;  %v1073_v47 = vadd.f32 %v5104_v0, %v997_v31  ;;  %v1034_v3 = vmul.f32 %v5092_v13, %v958_v52  ;;  %v957_v15 = vmul.f32 %v4006_v18, %v6133_v57  ;;  %1972 = vmatprep.subr.bf16.mxu1 %v3937_v56  ;;  %v3941_v18 = vld [vmem:[#allocation8 + $0x188] ss:$24 sps:$4 sm:$0xff]  }
 0x1e8   : > { %v5411_v44 = vpack.c.bf16 %v1074_v38, %v1072_v20  ;;  %v1031_v11 = vmul.f32 %v5095_v29, %v955_v54  ;;  %2164 = vmatpush2.bf16.msra.mxu0 %v3932_v63  ;;  %v924_v8 = vmul.f32 %v4008_v40, %v6134_v32  ;;  %v1108_v14 = vadd.f32 %v5100_v22, %v1032_v36  ;;  %v3946_v63 = vld [vmem:[#allocation8 + $0x194] ss:$24 sps:$4 sm:$0xff]   ;;  %v3944_v38 = vld [vmem:[#allocation8 + $0x190] ss:$24 sps:$4 sm:$0xff]  }
 0x1e9   : > { %v5415_v43 = vpack.c.bf16 %v1073_v47, %v1071_v61  ;;  %v1110_v48 = vadd.f32 %v5100_v22, %v1034_v3  ;;  %v1033_v4 = vmul.f32 %v5095_v29, %v957_v15  ;;  %1973 = vmatpush2.bf16.msra.mxu1 %v3935_v55  ;;  %v926_v20 = vmul.f32 %v4010_v35, %v6135_v33 }
 0x1ea   : > { %1843 = vmatprep.mubr.bf16.mxu0 %v5411_v44  ;;  %v1107_v16 = vadd.f32 %v5104_v0, %v1031_v11  ;;  %v1000_v2 = vmul.f32 %v5092_v13, %v924_v8  ;;  %2165 = vmatprep.subr.bf16.mxu0 %v3940_v23  ;;  %v923_v27 = vmul.f32 %v4008_v40, %v6136_v39 }
 0x1eb   : > { %1844 = vmatmul.mubr.bf16.gmra.mxu0 %v5415_v43  ;;  %v5425_v56 = vpack.c.bf16 %v1110_v48, %v1108_v14  ;;  %v1109_v31 = vadd.f32 %v5104_v0, %v1033_v4  ;;  %v925_v52 = vmul.f32 %v4010_v35, %v6137_v9  ;;  %v1002_v55 = vmul.f32 %v5092_v13, %v926_v20 }
 0x1ec   : > { %1974 = vmatprep.subr.bf16.mxu1 %v3943_v21  ;;  %2166 = vmatpush2.bf16.msra.mxu0 %v3938_v45  ;;  %v999_v10 = vmul.f32 %v5095_v29, %v923_v27  ;;  %v1076_v23 = vadd.f32 %v5100_v22, %v1000_v2 }
 0x1ed   : > { %1933 = vmatprep.mubr.bf16.mxu1 %v5425_v56  ;;  %v5432_v61 = vpack.c.bf16 %v1109_v31, %v1107_v16  ;;  %v1001_v54 = vmul.f32 %v5095_v29, %v925_v52  ;;  %1975 = vmatpush2.bf16.msra.mxu1 %v3941_v18  ;;  %v1078_v40 = vadd.f32 %v5100_v22, %v1002_v55  ;;  %v6138_v29 = vld [vmem:[#allocation36_spill] sm:$0xff]  ;;  %v5500_v22 = vld [vmem:[%s5974_s4] sm:$0x3f] }
 0x1ee   : > { %2167 = vmatprep.subr.bf16.mxu0 %v3946_v63  ;;  %v1075_v13 = vadd.f32 %v5104_v0, %v999_v10 }
 0x1ef   : > { %1934 = vmatmul.mubr.bf16.gmra.mxu1 %v5432_v61  ;;  %v1077_v35 = vadd.f32 %v5104_v0, %v1001_v54  ;;  %v1126_v47 = vpack.c.bf16 %v1078_v40, %v1076_v23  ;;  %v6139_v0 = vld [vmem:[#allocation51_spill] sm:$0xff] }
 0x1f0   : > { %1976 = vmatprep.mubr.bf16.mxu1 %v5138_v41  ;;  %2168 = vmatpush2.bf16.msra.mxu0 %v3944_v38 }
 0x1f1   : > { %v1125_v36 = vpack.c.bf16 %v1077_v35, %v1075_v13  ;;  %1853 = vmatprep.mubr.bf16.mxu0 %v1126_v47 }
 0x1f3   : > { %1854 = vmatmul.mubr.bf16.gmra.mxu0 %v1125_v36 }
 0x1f4   : > { %2169 = vmatprep.mubr.bf16.mxu0 %v5138_v41 }
 0x1f7   : > { %1977 = vmatmul.mubr.bf16.vlgmr.msra.gmra.mxu1 %v5142_v62 }
 0x1f8   : > { %1986 = vmatprep.mubr.bf16.mxu1 %v5176_v6 }
 0x1fb   : > { %2170 = vmatmul.mubr.bf16.vlgmr.msra.gmra.mxu0 %v5142_v62 }
 0x1fc   : > { %2179 = vmatprep.mubr.bf16.mxu0 %v5176_v6 }
 0x1ff   : > { %1987 = vmatmul.mubr.bf16.gmra.mxu1 %v5185_v60 }
 0x200   : > { %1996 = vmatprep.mubr.bf16.mxu1 %v5221_v46 }
 0x203   : > { %2180 = vmatmul.mubr.bf16.gmra.mxu0 %v5185_v60 }
 0x204   : > { %2189 = vmatprep.mubr.bf16.mxu0 %v5221_v46 }
 0x207   : > { %1997 = vmatmul.mubr.bf16.gmra.mxu1 %v5234_v5 }
 0x208   : > { %2006 = vmatprep.mubr.bf16.mxu1 %v5271_v25 }
 0x20b   : > { %2190 = vmatmul.mubr.bf16.gmra.mxu0 %v5234_v5 }
 0x20c   : > { %2199 = vmatprep.mubr.bf16.mxu0 %v5271_v25 }
 0x20f   : > { %2007 = vmatmul.mubr.bf16.gmra.mxu1 %v5285_v59 }
 0x210   : > { %2016 = vmatprep.mubr.bf16.mxu1 %v5328_v50 }
 0x213   : > { %2200 = vmatmul.mubr.bf16.gmra.mxu0 %v5285_v59 }
 0x214   : > { %2209 = vmatprep.mubr.bf16.mxu0 %v5328_v50 }
 0x217   : > { %2017 = vmatmul.mubr.bf16.gmra.mxu1 %v5333_v1 }
 0x218   : > { %2026 = vmatprep.mubr.bf16.mxu1 %v5366_v53 }
 0x21b   : > { %2210 = vmatmul.mubr.bf16.gmra.mxu0 %v5333_v1 }
 0x21c   : > { %2219 = vmatprep.mubr.bf16.mxu0 %v5366_v53 }
 0x21f   : > { %2027 = vmatmul.mubr.bf16.gmra.mxu1 %v5377_v17 }
 0x220   : > { %2036 = vmatprep.mubr.bf16.mxu1 %v5411_v44 }
 0x223   : > { %2220 = vmatmul.mubr.bf16.gmra.mxu0 %v5377_v17 }
 0x224   : > { %2229 = vmatprep.mubr.bf16.mxu0 %v5411_v44 }
 0x227   : > { %2037 = vmatmul.mubr.bf16.gmra.mxu1 %v5415_v43 }
 0x228   : > { %2046 = vmatprep.mubr.bf16.mxu1 %v1126_v47 }
 0x22b   : > { %2230 = vmatmul.mubr.bf16.gmra.mxu0 %v5415_v43 }
 0x22c   : > { %2239 = vmatprep.mubr.bf16.mxu0 %v1126_v47 }
 0x22f   : > { %2047 = vmatmul.mubr.bf16.gmra.mxu1 %v1125_v36 }
 0x230   : > { %2056 = vmatprep.mubr.bf16.mxu1 %v5123_v51 }
 0x233   : > { %2240 = vmatmul.mubr.bf16.gmra.mxu0 %v1125_v36 }
 0x234   : > { %2249 = vmatprep.mubr.bf16.mxu0 %v5123_v51  ;;  %v5505_v51 = vrot.slane %v5500_v22, %v6139_v0 }
 0x237   : > { %2057 = vmatmul.mubr.bf16.gmra.mxu1 %v5125_v42 }
 0x238   : > { %2066 = vmatprep.mubr.bf16.mxu1 %v5154_v58 }
 0x23b   : > { %2250 = vmatmul.mubr.bf16.gmra.mxu0 %v5125_v42  ;;  %v6140_v42 = vld [vmem:[#allocation50_spill] sm:$0xff] }
 0x23c   : > { %2259 = vmatprep.mubr.bf16.mxu0 %v5154_v58  ;;  %v5510_v41 = vrot.slane %v5500_v22, %v6140_v42 }
 0x23f   : > { %2067 = vmatmul.mubr.bf16.gmra.mxu1 %v6138_v29 }
 0x240   : > { %2076 = vmatprep.mubr.bf16.mxu1 %v5196_v24 }
 0x243   : > { %2260 = vmatmul.mubr.bf16.gmra.mxu0 %v6138_v29 }
 0x244   : > { %2269 = vmatprep.mubr.bf16.mxu0 %v5196_v24 }
 0x247   : > { %2077 = vmatmul.mubr.bf16.gmra.mxu1 %v5212_v49 }
 0x248   : > { %2086 = vmatprep.mubr.bf16.mxu1 %v5247_v37 }
 0x24b   : > { %2270 = vmatmul.mubr.bf16.gmra.mxu0 %v5212_v49 }
 0x24c   : > { %2279 = vmatprep.mubr.bf16.mxu0 %v5247_v37 }
 0x24f   : > { %2087 = vmatmul.mubr.bf16.gmra.mxu1 %v5258_v7 }
 0x250   : > { %2096 = vmatprep.mubr.bf16.mxu1 %v5306_v28 }
 0x253   : > { %2280 = vmatmul.mubr.bf16.gmra.mxu0 %v5258_v7 }
 0x254   : > { %2289 = vmatprep.mubr.bf16.mxu0 %v5306_v28 }
 0x257   : > { %2097 = vmatmul.mubr.bf16.gmra.mxu1 %v5311_v12 }
 0x258   : > { %2106 = vmatprep.mubr.bf16.mxu1 %v5351_v19 }
 0x25b   : > { %2290 = vmatmul.mubr.bf16.gmra.mxu0 %v5311_v12 }
 0x25c   : > { %2299 = vmatprep.mubr.bf16.mxu0 %v5351_v19 }
 0x25f   : > { %2107 = vmatmul.mubr.bf16.gmra.mxu1 %v5356_v26 }
 0x260   : > { %2116 = vmatprep.mubr.bf16.mxu1 %v5390_v34 }
 0x263   : > { %2300 = vmatmul.mubr.bf16.gmra.mxu0 %v5356_v26 }
 0x264   : > { %2309 = vmatprep.mubr.bf16.mxu0 %v5390_v34 }
 0x267   : > { %2117 = vmatmul.mubr.bf16.gmra.mxu1 %v5395_v30 }
 0x268   : > { %2126 = vmatprep.mubr.bf16.mxu1 %v5425_v56 }
 0x26b   : > { %2310 = vmatmul.mubr.bf16.gmra.mxu0 %v5395_v30 }
 0x26c   : > { %2319 = vmatprep.mubr.bf16.mxu0 %v5425_v56 }
 0x26e   : > { %v1865_v62 = vpop.f32.mrf.mxu1 }
 0x26f   : > { %2127 = vmatmul.mubr.bf16.gmra.mxu1 %v5432_v61  ;;  %v1866_v58 = vadd.f32 %v1865_v62, %v5505_v51 }
 0x270   : > { %v1867_v6 = vpop.f32.mrf.mxu1 }
 0x271   : > { %v1868_v60 = vadd.f32 %v1867_v6, %v5510_v41  ;;  %v2362_v46 = vmul.f32 0.088388346, %v1866_v58 }
 0x272   : > { %v1785_v24 = vpop.f32.mrf.mxu0  ;;  %v1869_v49 = vpop.f32.mrf.mxu1 }
 0x273   : > { %2320 = vmatmul.mubr.bf16.gmra.mxu0 %v5432_v61  ;;  %v2363_v5 = vmul.f32 0.088388346, %v1868_v60  ;;  %v1786_v37 = vadd.f32 %v1785_v24, %v5505_v51  ;;  %v1870_v7 = vadd.f32 %v1869_v49, %v5505_v51 }
 0x274   : > { %v1787_v25 = vpop.f32.mrf.mxu0  ;;  %v1871_v59 = vpop.f32.mrf.mxu1 }
 0x275   : > { %v3563_v28 = vpack.c.bf16 %v2363_v5, %v2362_v46  ;;  %v1788_v12 = vadd.f32 %v1787_v25, %v5510_v41  ;;  %v1872_v50 = vadd.f32 %v1871_v59, %v5510_v41  ;;  %v2330_v19 = vmul.f32 0.088388346, %v1786_v37 }
 0x276   : > { %v1789_v1 = vpop.f32.mrf.mxu0  ;;  %v2364_v34 = vmul.f32 0.088388346, %v1870_v7 }
 0x277   : > { %2602 = vst [vmem:[%s5524_s13 + $0x80] sm:$0xff] %v3563_v28  ;;  %v2331_v26 = vmul.f32 0.088388346, %v1788_v12  ;;  %v1790_v53 = vadd.f32 %v1789_v1, %v5505_v51  ;;  %v1875_v17 = vpop.f32.mrf.mxu1  ;;  %v2365_v30 = vmul.f32 0.088388346, %v1872_v50 }
 0x278   : > { %v1876_v3 = vadd.f32 %v1875_v17, %v5505_v51  ;;  %v1791_v57 = vpop.f32.mrf.mxu0 }
 0x279   : > { %v3547_v15 = vpack.c.bf16 %v2331_v26, %v2330_v19  ;;  %v1792_v44 = vadd.f32 %v1791_v57, %v5510_v41  ;;  %v1877_v11 = vpop.f32.mrf.mxu1  ;;  %v3564_v32 = vpack.c.bf16 %v2365_v30, %v2364_v34  ;;  %v2332_v45 = vmul.f32 0.088388346, %v1790_v53 }
 0x27a   : > { %v1878_v8 = vadd.f32 %v1877_v11, %v5510_v41  ;;  %v2366_v14 = vmul.f32 0.088388346, %v1876_v3 }
 0x27b   : > { %2586 = vst [vmem:[%s5524_s13] sm:$0xff] %v3547_v15  ;;  %v2333_v21 = vmul.f32 0.088388346, %v1792_v44  ;;  %v1879_v43 = vpop.f32.mrf.mxu1  ;;  %2603 = vst [vmem:[%s5524_s13 + $0x88] sm:$0xff] %v3564_v32 }
 0x27c   : > { %v2367_v48 = vmul.f32 0.088388346, %v1878_v8  ;;  %v1880_v4 = vadd.f32 %v1879_v43, %v5505_v51 }
 0x27d   : > { %v3548_v18 = vpack.c.bf16 %v2333_v21, %v2332_v45  ;;  %v1795_v16 = vpop.f32.mrf.mxu0  ;;  %v1881_v33 = vpop.f32.mrf.mxu1 }
 0x27e   : > { %v3565_v20 = vpack.c.bf16 %v2367_v48, %v2366_v14  ;;  %v1796_v2 = vadd.f32 %v1795_v16, %v5505_v51  ;;  %v1882_v63 = vadd.f32 %v1881_v33, %v5510_v41  ;;  %v2368_v31 = vmul.f32 0.088388346, %v1880_v4 }
 0x27f   : > { %2587 = vst [vmem:[%s5524_s13 + $0x8] sm:$0xff] %v3548_v18  ;;  %v1797_v56 = vpop.f32.mrf.mxu0 }
 0x280   : > { %2604 = vst [vmem:[%s5524_s13 + $0x90] sm:$0xff] %v3565_v20  ;;  %v1798_v39 = vadd.f32 %v1797_v56, %v5510_v41  ;;  %v2369_v27 = vmul.f32 0.088388346, %v1882_v63  ;;  %v2334_v52 = vmul.f32 0.088388346, %v1796_v2 }
 0x281   : > { %v1799_v9 = vpop.f32.mrf.mxu0 }
 0x282   : > { %v2335_v55 = vmul.f32 0.088388346, %v1798_v39  ;;  %v3566_v38 = vpack.c.bf16 %v2369_v27, %v2368_v31  ;;  %v1800_v61 = vadd.f32 %v1799_v9, %v5505_v51 }
 0x283   : > { %v1885_v10 = vpop.f32.mrf.mxu1  ;;  %v1801_v54 = vpop.f32.mrf.mxu0 }
 0x284   : > { %v3549_v23 = vpack.c.bf16 %v2335_v55, %v2334_v52  ;;  %2605 = vst [vmem:[%s5524_s13 + $0x98] sm:$0xff] %v3566_v38  ;;  %v1886_v40 = vadd.f32 %v1885_v10, %v5505_v51  ;;  %v1802_v13 = vadd.f32 %v1801_v54, %v5510_v41  ;;  %v2336_v47 = vmul.f32 0.088388346, %v1800_v61 }
 0x285   : > { %v1887_v35 = vpop.f32.mrf.mxu1 }
 0x286   : > { %2588 = vst [vmem:[%s5524_s13 + $0x10] sm:$0xff] %v3549_v23  ;;  %v2337_v36 = vmul.f32 0.088388346, %v1802_v13  ;;  %v1888_v29 = vadd.f32 %v1887_v35, %v5510_v41  ;;  %v2370_v42 = vmul.f32 0.088388346, %v1886_v40 }
 0x287   : > { %v1889_v0 = vpop.f32.mrf.mxu1 }
 0x288   : > { %v3550_v62 = vpack.c.bf16 %v2337_v36, %v2336_v47  ;;  %v2371_v58 = vmul.f32 0.088388346, %v1888_v29  ;;  %v1805_v6 = vpop.f32.mrf.mxu0  ;;  %v1890_v60 = vadd.f32 %v1889_v0, %v5505_v51 }
 0x289   : > { %v1806_v24 = vadd.f32 %v1805_v6, %v5505_v51  ;;  %v1891_v49 = vpop.f32.mrf.mxu1 }
 0x28a   : > { %2589 = vst [vmem:[%s5524_s13 + $0x18] sm:$0xff] %v3550_v62  ;;  %v3567_v46 = vpack.c.bf16 %v2371_v58, %v2370_v42  ;;  %v1807_v5 = vpop.f32.mrf.mxu0  ;;  %v1892_v37 = vadd.f32 %v1891_v49, %v5510_v41  ;;  %v2372_v25 = vmul.f32 0.088388346, %v1890_v60 }
 0x28b   : > { %v1808_v7 = vadd.f32 %v1807_v5, %v5510_v41  ;;  %v2338_v12 = vmul.f32 0.088388346, %v1806_v24 }
 0x28c   : > { %2606 = vst [vmem:[%s5524_s13 + $0xa0] sm:$0xff] %v3567_v46  ;;  %v2373_v59 = vmul.f32 0.088388346, %v1892_v37  ;;  %v1809_v28 = vpop.f32.mrf.mxu0 }
 0x28d   : > { %v2339_v50 = vmul.f32 0.088388346, %v1808_v7  ;;  %v1810_v1 = vadd.f32 %v1809_v28, %v5505_v51  ;;  %v1895_v19 = vpop.f32.mrf.mxu1 }
 0x28e   : > { %v3568_v26 = vpack.c.bf16 %v2373_v59, %v2372_v25  ;;  %v1896_v53 = vadd.f32 %v1895_v19, %v5505_v51  ;;  %v1811_v17 = vpop.f32.mrf.mxu0 }
 0x28f   : > { %v3551_v34 = vpack.c.bf16 %v2339_v50, %v2338_v12  ;;  %v1812_v30 = vadd.f32 %v1811_v17, %v5510_v41  ;;  %v1897_v3 = vpop.f32.mrf.mxu1  ;;  %v2340_v15 = vmul.f32 0.088388346, %v1810_v1 }
 0x290   : > { %2607 = vst [vmem:[%s5524_s13 + $0xa8] sm:$0xff] %v3568_v26  ;;  %v1898_v57 = vadd.f32 %v1897_v3, %v5510_v41  ;;  %v2374_v32 = vmul.f32 0.088388346, %v1896_v53 }
 0x291   : > { %2590 = vst [vmem:[%s5524_s13 + $0x20] sm:$0xff] %v3551_v34  ;;  %v2341_v44 = vmul.f32 0.088388346, %v1812_v30  ;;  %v1899_v11 = vpop.f32.mrf.mxu1 }
 0x292   : > { %v2375_v8 = vmul.f32 0.088388346, %v1898_v57  ;;  %v1900_v45 = vadd.f32 %v1899_v11, %v5505_v51 }
 0x293   : > { %v3552_v21 = vpack.c.bf16 %v2341_v44, %v2340_v15  ;;  %v1815_v43 = vpop.f32.mrf.mxu0  ;;  %v1901_v14 = vpop.f32.mrf.mxu1 }
 0x294   : > { %v3569_v48 = vpack.c.bf16 %v2375_v8, %v2374_v32  ;;  %v1816_v4 = vadd.f32 %v1815_v43, %v5505_v51  ;;  %v1902_v18 = vadd.f32 %v1901_v14, %v5510_v41  ;;  %v2376_v33 = vmul.f32 0.088388346, %v1900_v45 }
 0x295   : > { %2591 = vst [vmem:[%s5524_s13 + $0x28] sm:$0xff] %v3552_v21  ;;  %v1817_v16 = vpop.f32.mrf.mxu0 }
 0x296   : > { %2608 = vst [vmem:[%s5524_s13 + $0xb0] sm:$0xff] %v3569_v48  ;;  %v1818_v20 = vadd.f32 %v1817_v16, %v5510_v41  ;;  %v2377_v2 = vmul.f32 0.088388346, %v1902_v18  ;;  %v2342_v31 = vmul.f32 0.088388346, %v1816_v4 }
 0x297   : > { %v1819_v63 = vpop.f32.mrf.mxu0  ;;  %v1905_v56 = vpop.f32.mrf.mxu1 }
 0x298   : > { %v2343_v39 = vmul.f32 0.088388346, %v1818_v20  ;;  %v3570_v27 = vpack.c.bf16 %v2377_v2, %v2376_v33  ;;  %v1820_v9 = vadd.f32 %v1819_v63, %v5505_v51  ;;  %v1906_v52 = vadd.f32 %v1905_v56, %v5505_v51 }
 0x299   : > { %v1821_v55 = vpop.f32.mrf.mxu0  ;;  %v1907_v38 = vpop.f32.mrf.mxu1 }
 0x29a   : > { %v3553_v61 = vpack.c.bf16 %v2343_v39, %v2342_v31  ;;  %2609 = vst [vmem:[%s5524_s13 + $0xb8] sm:$0xff] %v3570_v27  ;;  %v1822_v10 = vadd.f32 %v1821_v55, %v5510_v41  ;;  %v1908_v54 = vadd.f32 %v1907_v38, %v5510_v41  ;;  %v2344_v13 = vmul.f32 0.088388346, %v1820_v9 }
 0x29b   : > { %v1825_v23 = vpop.f32.mrf.mxu0  ;;  %v1909_v40 = vpop.f32.mrf.mxu1  ;;  %v2378_v36 = vmul.f32 0.088388346, %v1906_v52 }
 0x29c   : > { %2592 = vst [vmem:[%s5524_s13 + $0x30] sm:$0xff] %v3553_v61  ;;  %v2345_v35 = vmul.f32 0.088388346, %v1822_v10  ;;  %v1826_v47 = vadd.f32 %v1825_v23, %v5505_v51  ;;  %v2379_v29 = vmul.f32 0.088388346, %v1908_v54  ;;  %v1910_v0 = vadd.f32 %v1909_v40, %v5505_v51 }
 0x29d   : > { %v1827_v42 = vpop.f32.mrf.mxu0  ;;  %v1911_v62 = vpop.f32.mrf.mxu1 }
 0x29e   : > { %v3554_v58 = vpack.c.bf16 %v2345_v35, %v2344_v13  ;;  %v1828_v6 = vadd.f32 %v1827_v42, %v5510_v41  ;;  %v3571_v60 = vpack.c.bf16 %v2379_v29, %v2378_v36  ;;  %v1912_v24 = vadd.f32 %v1911_v62, %v5510_v41 }
 0x29f   : > { %v1829_v49 = vpop.f32.mrf.mxu0  ;;  %v1915_v46 = vpop.f32.mrf.mxu1  ;;  %v2346_v5 = vmul.f32 0.088388346, %v1826_v47  ;;  %v2380_v25 = vmul.f32 0.088388346, %v1910_v0 }
 0x2a0   : > { %2593 = vst [vmem:[%s5524_s13 + $0x38] sm:$0xff] %v3554_v58  ;;  %v2347_v37 = vmul.f32 0.088388346, %v1828_v6  ;;  %v1830_v7 = vadd.f32 %v1829_v49, %v5505_v51  ;;  %2610 = vst [vmem:[%s5524_s13 + $0xc0] sm:$0xff] %v3571_v60  ;;  %v2381_v59 = vmul.f32 0.088388346, %v1912_v24  ;;  %v1916_v28 = vadd.f32 %v1915_v46, %v5505_v51 }
 0x2a1   : > { %v1831_v12 = vpop.f32.mrf.mxu0  ;;  %v1917_v50 = vpop.f32.mrf.mxu1 }
 0x2a2   : > { %v3555_v1 = vpack.c.bf16 %v2347_v37, %v2346_v5  ;;  %v1832_v19 = vadd.f32 %v1831_v12, %v5510_v41  ;;  %v3572_v26 = vpack.c.bf16 %v2381_v59, %v2380_v25  ;;  %v1918_v53 = vadd.f32 %v1917_v50, %v5510_v41  ;;  %v6141_v25 = vld [vmem:[#allocation49_spill] sm:$0xff] }
 0x2a3   : > { %v1835_v17 = vpop.f32.mrf.mxu0  ;;  %v1919_v34 = vpop.f32.mrf.mxu1  ;;  %v2348_v30 = vmul.f32 0.088388346, %v1830_v7  ;;  %v2382_v15 = vmul.f32 0.088388346, %v1916_v28  ;;  %v1251_v59 = vsub.s32 2, %v6141_v25  ;;  %v1255_v28 = vsub.s32 3, %v6141_v25 }
 0x2a4   : > { %2594 = vst [vmem:[%s5524_s13 + $0x40] sm:$0xff] %v3555_v1  ;;  %v2349_v3 = vmul.f32 0.088388346, %v1832_v19  ;;  %v1836_v57 = vadd.f32 %v1835_v17, %v5505_v51  ;;  %2611 = vst [vmem:[%s5524_s13 + $0xc8] sm:$0xff] %v3572_v26  ;;  %v2383_v44 = vmul.f32 0.088388346, %v1918_v53  ;;  %v1920_v11 = vadd.f32 %v1919_v34, %v5505_v51 }
 0x2a5   : > { %v1837_v32 = vpop.f32.mrf.mxu0  ;;  %v1921_v8 = vpop.f32.mrf.mxu1  ;;  %v1259_v17 = vsub.s32 4, %v6141_v25 }
 0x2a6   : > { %v3556_v45 = vpack.c.bf16 %v2349_v3, %v2348_v30  ;;  %v1838_v21 = vadd.f32 %v1837_v32, %v5510_v41  ;;  %v3573_v43 = vpack.c.bf16 %v2383_v44, %v2382_v15  ;;  %v1922_v14 = vadd.f32 %v1921_v8, %v5510_v41 }
 0x2a7   : > { %v1839_v48 = vpop.f32.mrf.mxu0  ;;  %v1925_v4 = vpop.f32.mrf.mxu1  ;;  %v2350_v18 = vmul.f32 0.088388346, %v1836_v57  ;;  %v2384_v20 = vmul.f32 0.088388346, %v1920_v11  ;;  %v1263_v57 = vsub.s32 5, %v6141_v25 }
 0x2a8   : > { %2595 = vst [vmem:[%s5524_s13 + $0x48] sm:$0xff] %v3556_v45  ;;  %v2351_v16 = vmul.f32 0.088388346, %v1838_v21  ;;  %v1840_v33 = vadd.f32 %v1839_v48, %v5505_v51  ;;  %2612 = vst [vmem:[%s5524_s13 + $0xd0] sm:$0xff] %v3573_v43  ;;  %v2385_v2 = vmul.f32 0.088388346, %v1922_v14  ;;  %v1926_v63 = vadd.f32 %v1925_v4, %v5505_v51 }
 0x2a9   : > { %v1841_v56 = vpop.f32.mrf.mxu0  ;;  %v1927_v31 = vpop.f32.mrf.mxu1  ;;  %v5613_v43 = vrot.slane %v5500_v22, %v1251_v59  ;;  %v5616_v14 = vrot.slane %v5500_v22, %v1255_v28 }
 0x2aa   : > { %v3557_v39 = vpack.c.bf16 %v2351_v16, %v2350_v18  ;;  %v1842_v27 = vadd.f32 %v1841_v56, %v5510_v41  ;;  %v3574_v9 = vpack.c.bf16 %v2385_v2, %v2384_v20  ;;  %v1928_v52 = vadd.f32 %v1927_v31, %v5510_v41 }
 0x2ab   : > { %v1845_v55 = vpop.f32.mrf.mxu0  ;;  %v1929_v38 = vpop.f32.mrf.mxu1  ;;  %v2352_v61 = vmul.f32 0.088388346, %v1840_v33  ;;  %v2386_v23 = vmul.f32 0.088388346, %v1926_v63 }
 0x2ac   : > { %2596 = vst [vmem:[%s5524_s13 + $0x50] sm:$0xff] %v3557_v39  ;;  %v2353_v10 = vmul.f32 0.088388346, %v1842_v27  ;;  %v1846_v54 = vadd.f32 %v1845_v55, %v5505_v51  ;;  %2613 = vst [vmem:[%s5524_s13 + $0xd8] sm:$0xff] %v3574_v9  ;;  %v2387_v40 = vmul.f32 0.088388346, %v1928_v52  ;;  %v1930_v13 = vadd.f32 %v1929_v38, %v5505_v51 }
 0x2ad   : > { %v1847_v35 = vpop.f32.mrf.mxu0  ;;  %v1931_v47 = vpop.f32.mrf.mxu1  ;;  %v5623_v27 = vrot.slane %v5500_v22, %v1259_v17  ;;  %v5626_v9 = vrot.slane %v5500_v22, %v1263_v57 }
 0x2ae   : > { %v3558_v36 = vpack.c.bf16 %v2353_v10, %v2352_v61  ;;  %v1848_v29 = vadd.f32 %v1847_v35, %v5510_v41  ;;  %v3575_v0 = vpack.c.bf16 %v2387_v40, %v2386_v23  ;;  %v1932_v42 = vadd.f32 %v1931_v47, %v5510_v41 }
 0x2af   : > { %v1849_v62 = vpop.f32.mrf.mxu0  ;;  %v1935_v58 = vpop.f32.mrf.mxu1  ;;  %v2354_v6 = vmul.f32 0.088388346, %v1846_v54  ;;  %v2388_v49 = vmul.f32 0.088388346, %v1930_v13 }
 0x2b0   : > { %2597 = vst [vmem:[%s5524_s13 + $0x58] sm:$0xff] %v3558_v36  ;;  %v2355_v60 = vmul.f32 0.088388346, %v1848_v29  ;;  %v1850_v24 = vadd.f32 %v1849_v62, %v5505_v51  ;;  %2614 = vst [vmem:[%s5524_s13 + $0xe0] sm:$0xff] %v3575_v0  ;;  %v2389_v46 = vmul.f32 0.088388346, %v1932_v42  ;;  %v1936_v5 = vadd.f32 %v1935_v58, %v5505_v51 }
 0x2b1   : > { %v1851_v37 = vpop.f32.mrf.mxu0  ;;  %v1937_v7 = vpop.f32.mrf.mxu1 }
 0x2b2   : > { %v3559_v12 = vpack.c.bf16 %v2355_v60, %v2354_v6  ;;  %v1852_v50 = vadd.f32 %v1851_v37, %v5510_v41  ;;  %v3576_v1 = vpack.c.bf16 %v2389_v46, %v2388_v49  ;;  %v1938_v19 = vadd.f32 %v1937_v7, %v5510_v41 }
 0x2b3   : > { %v1855_v26 = vpop.f32.mrf.mxu0  ;;  %v1939_v53 = vpop.f32.mrf.mxu1  ;;  %v2356_v34 = vmul.f32 0.088388346, %v1850_v24  ;;  %v2390_v15 = vmul.f32 0.088388346, %v1936_v5 }
 0x2b4   : > { %2598 = vst [vmem:[%s5524_s13 + $0x60] sm:$0xff] %v3559_v12  ;;  %v2357_v30 = vmul.f32 0.088388346, %v1852_v50  ;;  %v1856_v3 = vadd.f32 %v1855_v26, %v5505_v51  ;;  %2615 = vst [vmem:[%s5524_s13 + $0xe8] sm:$0xff] %v3576_v1  ;;  %v2391_v44 = vmul.f32 0.088388346, %v1938_v19  ;;  %v1940_v11 = vadd.f32 %v1939_v53, %v5505_v51 }
 0x2b5   : > { %v1857_v32 = vpop.f32.mrf.mxu0  ;;  %v1941_v8 = vpop.f32.mrf.mxu1 }
 0x2b6   : > { %v3560_v45 = vpack.c.bf16 %v2357_v30, %v2356_v34  ;;  %v1858_v21 = vadd.f32 %v1857_v32, %v5510_v41  ;;  %v3577_v48 = vpack.c.bf16 %v2391_v44, %v2390_v15  ;;  %v1942_v4 = vadd.f32 %v1941_v8, %v5510_v41 }
 0x2b7   : > { %v1859_v18 = vpop.f32.mrf.mxu0  ;;  %v1978_v16 = vpop.f32.mrf.mxu1  ;;  %v2358_v33 = vmul.f32 0.088388346, %v1856_v3  ;;  %v2392_v63 = vmul.f32 0.088388346, %v1940_v11 }
 0x2b8   : > { %2599 = vst [vmem:[%s5524_s13 + $0x68] sm:$0xff] %v3560_v45  ;;  %v2359_v20 = vmul.f32 0.088388346, %v1858_v21  ;;  %v1860_v2 = vadd.f32 %v1859_v18, %v5505_v51  ;;  %2616 = vst [vmem:[%s5524_s13 + $0xf0] sm:$0xff] %v3577_v48  ;;  %v2393_v56 = vmul.f32 0.088388346, %v1942_v4  ;;  %v1979_v55 = vadd.f32 %v1978_v16, %v5613_v43 }
 0x2b9   : > { %v1861_v31 = vpop.f32.mrf.mxu0  ;;  %v1980_v39 = vpop.f32.mrf.mxu1 }
 0x2ba   : > { %v3561_v52 = vpack.c.bf16 %v2359_v20, %v2358_v33  ;;  %v1862_v38 = vadd.f32 %v1861_v31, %v5510_v41  ;;  %v1981_v51 = vadd.f32 %v1980_v39, %v5616_v14  ;;  %v3578_v61 = vpack.c.bf16 %v2393_v56, %v2392_v63 }
 0x2bb   : > { %v1982_v10 = vpop.f32.mrf.mxu1  ;;  %v2171_v54 = vpop.f32.mrf.mxu0  ;;  %v2360_v23 = vmul.f32 0.088388346, %v1860_v2 }
 0x2bc   : > { %2600 = vst [vmem:[%s5524_s13 + $0x70] sm:$0xff] %v3561_v52  ;;  %v2361_v40 = vmul.f32 0.088388346, %v1862_v38  ;;  %v3579_v13 = vpack.c.bf16 %v1981_v51, %v1979_v55  ;;  %2617 = vst [vmem:[%s5524_s13 + $0xf8] sm:$0xff] %v3578_v61  ;;  %v1983_v22 = vadd.f32 %v1982_v10, %v5613_v43  ;;  %v2172_v41 = vadd.f32 %v2171_v54, %v5623_v27 }
 0x2bd   : > { %v1984_v35 = vpop.f32.mrf.mxu1  ;;  %v2173_v47 = vpop.f32.mrf.mxu0 }
 0x2be   : > { %v3562_v36 = vpack.c.bf16 %v2361_v40, %v2360_v23  ;;  %2810 = vst [vmem:[%s5635_s17] sm:$0xff] %v3579_v13  ;;  %v1985_v29 = vadd.f32 %v1984_v35, %v5616_v14  ;;  %v2174_v0 = vadd.f32 %v2173_v47, %v5626_v9 }
 0x2bf   : > { %v1988_v42 = vpop.f32.mrf.mxu1  ;;  %v2175_v62 = vpop.f32.mrf.mxu0 }
 0x2c0   : > { %2601 = vst [vmem:[%s5524_s13 + $0x78] sm:$0xff] %v3562_v36  ;;  %v3580_v58 = vpack.c.bf16 %v1985_v29, %v1983_v22  ;;  %v3611_v6 = vpack.c.bf16 %v2174_v0, %v2172_v41  ;;  %v1989_v49 = vadd.f32 %v1988_v42, %v5613_v43  ;;  %v2176_v46 = vadd.f32 %v2175_v62, %v5623_v27 }
 0x2c1   : > { %v1990_v60 = vpop.f32.mrf.mxu1  ;;  %v2177_v24 = vpop.f32.mrf.mxu0 }
 0x2c2   : > { %2811 = vst [vmem:[%s5635_s17 + $0x8] sm:$0xff] %v3580_v58  ;;  %3034 = vst [vmem:[%s5648_s1] sm:$0xff] %v3611_v6  ;;  %v1991_v5 = vadd.f32 %v1990_v60, %v5616_v14  ;;  %v2178_v37 = vadd.f32 %v2177_v24, %v5626_v9 }
 0x2c3   : > { %v1992_v7 = vpop.f32.mrf.mxu1  ;;  %v2181_v25 = vpop.f32.mrf.mxu0 }
 0x2c4   : > { %v3581_v59 = vpack.c.bf16 %v1991_v5, %v1989_v49  ;;  %v3612_v28 = vpack.c.bf16 %v2178_v37, %v2176_v46  ;;  %v1993_v1 = vadd.f32 %v1992_v7, %v5613_v43  ;;  %v2182_v19 = vadd.f32 %v2181_v25, %v5623_v27 }
 0x2c5   : > { %v1994_v12 = vpop.f32.mrf.mxu1  ;;  %v2183_v50 = vpop.f32.mrf.mxu0 }
 0x2c6   : > { %2812 = vst [vmem:[%s5635_s17 + $0x10] sm:$0xff] %v3581_v59  ;;  %3035 = vst [vmem:[%s5648_s1 + $0x8] sm:$0xff] %v3612_v28  ;;  %v1995_v26 = vadd.f32 %v1994_v12, %v5616_v14  ;;  %v2184_v53 = vadd.f32 %v2183_v50, %v5626_v9 }
 0x2c7   : > { %v1998_v17 = vpop.f32.mrf.mxu1  ;;  %v2185_v34 = vpop.f32.mrf.mxu0 }
 0x2c8   : > { %4130 = shalt.err (!%p4127_p9)
}
 0x2c9   : > { %s4131_s3 = scalar_lea.hbm %s5659_s10, 4096  ;;  %s4135_s13 = scalar_lea.hbm %s5975_s5, 16384 }
 0x2ca   : > { %p4132_p12 = scmp.ne.s32.totalorder %s5659_s10, %s4131_s3  ;;  %p4136_p1 = scmp.lt.s32.totalorder %s5659_s10, %s5975_s5 }
 0x2cb   : > { %p4137_p2 = scmp.lt.s32.totalorder %s4135_s13, %s4131_s3 }
 0x2cc   : > { %p4133_p10 = pnand %p4132_p12, %p4452_p13 }
 0x2cd   : > { %p4138_p3 = por %p4137_p2, %p4136_p1 }
 0x2ce   : > { %p4134_p0 = pneg %p4133_p10 }
 0x2d0   : > { %p4139_p4 = pnand %p4138_p3, %p4134_p0 }
 0x2d2   : > { %4142 = shalt.err (!%p4139_p4)
}
 0x2d3   : > { %s4288_s22 = smov 128   ;;  %s4289_s27 = smov 8   ;;  %v3582_v30 = vpack.c.bf16 %v1995_v26, %v1993_v1  ;;  %v3613_v3 = vpack.c.bf16 %v2184_v53, %v2182_v19  ;;  %v2000_v57 = vpop.f32.mrf.mxu1  ;;  %v2187_v15 = vpop.f32.mrf.mxu0  ;;  %v1999_v44 = vadd.f32 %v1998_v17, %v5613_v43  ;;  %v2186_v11 = vadd.f32 %v2185_v34, %v5623_v27 }
 0x2d4   : > { %3692 = dma.vmem_to_hbm [thread:$0]  (%p4452_p13), %s5668_s12, 4096, %s5659_s10, %s3067_s19, %s4288_s22, %s4288_s22, %s4289_s27   ;;  %v2001_v32 = vadd.f32 %v2000_v57, %v5616_v14  ;;  %v2188_v8 = vadd.f32 %v2187_v15, %v5626_v9 }
 0x2d5   : > { %2813 = vst [vmem:[%s5635_s17 + $0x18] sm:$0xff] %v3582_v30  ;;  %3036 = vst [vmem:[%s5648_s1 + $0x10] sm:$0xff] %v3613_v3  ;;  %v2002_v45 = vpop.f32.mrf.mxu1  ;;  %v2191_v21 = vpop.f32.mrf.mxu0  ;;  %s3071_s24 = sand.u32 1, %s4373_s9   ;;  %s3112_s28 = sshll.u32 %s5635_s17, 4  ;;  %s5872_s28 = int_to_ptr.vmem [resolvable:$true] %s3112_s28 }
 0x2d6   : > { %v3583_v48 = vpack.c.bf16 %v2001_v32, %v1999_v44  ;;  %v3614_v4 = vpack.c.bf16 %v2188_v8, %v2186_v11  ;;  %v2003_v33 = vadd.f32 %v2002_v45, %v5613_v43  ;;  %v2192_v20 = vadd.f32 %v2191_v21, %v5623_v27  ;;  %s6142_s12 = sld [smem:[#allocation55_spill]]  ;;  %s3131_s6 = sshll.u32 %s5648_s1, 4  ;;  %s5913_s6 = int_to_ptr.vmem [resolvable:$true] %s3131_s6 }
 0x2d7   : > { %v2004_v18 = vpop.f32.mrf.mxu1  ;;  %v2193_v16 = vpop.f32.mrf.mxu0  ;;  %s5879_s29 = scalar_lea.sflag [#allocation12], %s3071_s24  ;;  %s4143_s20 = scalar_lea.vmem %s5872_s28, 4096 }
 0x2d8   : > { %2814 = vst [vmem:[%s5635_s17 + $0x20] sm:$0xff] %v3583_v48  ;;  %3037 = vst [vmem:[%s5648_s1 + $0x18] sm:$0xff] %v3614_v4  ;;  %v2005_v2 = vadd.f32 %v2004_v18, %v5616_v14  ;;  %v2194_v63 = vadd.f32 %v2193_v16, %v5626_v9  ;;  %p4144_p6 = scmp.ne.s32.totalorder %s5872_s28, %s4143_s20  ;;  %s4290_s21 = smov [#allocation11]  }
 0x2d9   : > { %v2008_v56 = vpop.f32.mrf.mxu1  ;;  %v2195_v31 = vpop.f32.mrf.mxu0  ;;  %s4147_s3 = sshll.u32 %s4290_s21, 4  ;;  %s4148_s3 = int_to_ptr.vmem [resolvable:$false] %s4147_s3 }
 0x2da   : > { %v3584_v39 = vpack.c.bf16 %v2005_v2, %v2003_v33  ;;  %v3615_v52 = vpack.c.bf16 %v2194_v63, %v2192_v20  ;;  %v2009_v51 = vadd.f32 %v2008_v56, %v5613_v43  ;;  %v2196_v61 = vadd.f32 %v2195_v31, %v5623_v27  ;;  %p4145_p8 = pnand %p4144_p6, %p4452_p13  ;;  %s4149_s7 = scalar_lea.vmem %s4148_s3, 8192 }
 0x2db   : > { %v2010_v55 = vpop.f32.mrf.mxu1  ;;  %v2197_v38 = vpop.f32.mrf.mxu0  ;;  %p4150_p5 = scmp.lt.s32.totalorder %s5872_s28, %s4148_s3  ;;  %p4151_p7 = scmp.lt.s32.totalorder %s4149_s7, %s4143_s20 }
 0x2dc   : > { %2815 = vst [vmem:[%s5635_s17 + $0x28] sm:$0xff] %v3584_v39  ;;  %3038 = vst [vmem:[%s5648_s1 + $0x20] sm:$0xff] %v3615_v52  ;;  %v2011_v10 = vadd.f32 %v2010_v55, %v5616_v14  ;;  %v2198_v54 = vadd.f32 %v2197_v38, %v5626_v9  ;;  %s5870_s19 = scalar_lea.hbm %s6142_s12, %s5644_s2  ;;  %p4146_p11 = pneg %p4145_p8 }
 0x2dd   : > { %v2012_v23 = vpop.f32.mrf.mxu1  ;;  %v2201_v40 = vpop.f32.mrf.mxu0  ;;  %p4152_p9 = por %p4151_p7, %p4150_p5 }
 0x2de   : > { %v3585_v13 = vpack.c.bf16 %v2011_v10, %v2009_v51  ;;  %v3616_v22 = vpack.c.bf16 %v2198_v54, %v2196_v61  ;;  %v2013_v36 = vadd.f32 %v2012_v23, %v5613_v43  ;;  %v2202_v41 = vadd.f32 %v2201_v40, %v5623_v27 }
 0x2df   : > { %v2014_v35 = vpop.f32.mrf.mxu1  ;;  %v2203_v47 = vpop.f32.mrf.mxu0  ;;  %p4153_p12 = pnand %p4152_p9, %p4146_p11 }
 0x2e0   : > { %2816 = vst [vmem:[%s5635_s17 + $0x30] sm:$0xff] %v3585_v13  ;;  %3039 = vst [vmem:[%s5648_s1 + $0x28] sm:$0xff] %v3616_v22  ;;  %v2015_v29 = vadd.f32 %v2014_v35, %v5616_v14  ;;  %v2204_v0 = vadd.f32 %v2203_v47, %v5626_v9 }
 0x2e1   : > { %v2018_v42 = vpop.f32.mrf.mxu1  ;;  %v2205_v62 = vpop.f32.mrf.mxu0 }
 0x2e2   : > { %v3586_v58 = vpack.c.bf16 %v2015_v29, %v2013_v36  ;;  %v3617_v6 = vpack.c.bf16 %v2204_v0, %v2202_v41  ;;  %v2019_v49 = vadd.f32 %v2018_v42, %v5613_v43  ;;  %v2206_v46 = vadd.f32 %v2205_v62, %v5623_v27 }
 0x2e3   : > { %v2020_v60 = vpop.f32.mrf.mxu1  ;;  %v2207_v24 = vpop.f32.mrf.mxu0 }
 0x2e4   : > { %2817 = vst [vmem:[%s5635_s17 + $0x38] sm:$0xff] %v3586_v58  ;;  %3040 = vst [vmem:[%s5648_s1 + $0x30] sm:$0xff] %v3617_v6  ;;  %v2021_v5 = vadd.f32 %v2020_v60, %v5616_v14  ;;  %v2208_v37 = vadd.f32 %v2207_v24, %v5626_v9 }
 0x2e5   : > { %v2022_v7 = vpop.f32.mrf.mxu1  ;;  %v2211_v25 = vpop.f32.mrf.mxu0 }
 0x2e6   : > { %v3587_v59 = vpack.c.bf16 %v2021_v5, %v2019_v49  ;;  %v3618_v28 = vpack.c.bf16 %v2208_v37, %v2206_v46  ;;  %v2023_v1 = vadd.f32 %v2022_v7, %v5613_v43  ;;  %v2212_v19 = vadd.f32 %v2211_v25, %v5623_v27 }
 0x2e7   : > { %v2024_v12 = vpop.f32.mrf.mxu1  ;;  %v2213_v50 = vpop.f32.mrf.mxu0 }
 0x2e8   : > { %2818 = vst [vmem:[%s5635_s17 + $0x40] sm:$0xff] %v3587_v59  ;;  %3041 = vst [vmem:[%s5648_s1 + $0x38] sm:$0xff] %v3618_v28  ;;  %v2025_v26 = vadd.f32 %v2024_v12, %v5616_v14  ;;  %v2214_v53 = vadd.f32 %v2213_v50, %v5626_v9 }
 0x2e9   : > { %v2028_v17 = vpop.f32.mrf.mxu1  ;;  %v2215_v34 = vpop.f32.mrf.mxu0 }
 0x2ea   : > { %v3588_v30 = vpack.c.bf16 %v2025_v26, %v2023_v1  ;;  %v3619_v3 = vpack.c.bf16 %v2214_v53, %v2212_v19  ;;  %v2029_v44 = vadd.f32 %v2028_v17, %v5613_v43  ;;  %v2216_v11 = vadd.f32 %v2215_v34, %v5623_v27 }
 0x2eb   : > { %v2030_v57 = vpop.f32.mrf.mxu1  ;;  %v2217_v15 = vpop.f32.mrf.mxu0 }
 0x2ec   : > { %2819 = vst [vmem:[%s5635_s17 + $0x48] sm:$0xff] %v3588_v30  ;;  %3042 = vst [vmem:[%s5648_s1 + $0x40] sm:$0xff] %v3619_v3  ;;  %v2031_v32 = vadd.f32 %v2030_v57, %v5616_v14  ;;  %v2218_v8 = vadd.f32 %v2217_v15, %v5626_v9 }
 0x2ed   : > { %v2032_v45 = vpop.f32.mrf.mxu1  ;;  %v2221_v21 = vpop.f32.mrf.mxu0 }
 0x2ee   : > { %v3589_v48 = vpack.c.bf16 %v2031_v32, %v2029_v44  ;;  %v3620_v4 = vpack.c.bf16 %v2218_v8, %v2216_v11  ;;  %v2033_v33 = vadd.f32 %v2032_v45, %v5613_v43  ;;  %v2222_v20 = vadd.f32 %v2221_v21, %v5623_v27 }
 0x2ef   : > { %v2034_v18 = vpop.f32.mrf.mxu1  ;;  %v2223_v16 = vpop.f32.mrf.mxu0 }
 0x2f0   : > { %2820 = vst [vmem:[%s5635_s17 + $0x50] sm:$0xff] %v3589_v48  ;;  %3043 = vst [vmem:[%s5648_s1 + $0x48] sm:$0xff] %v3620_v4  ;;  %v2035_v2 = vadd.f32 %v2034_v18, %v5616_v14  ;;  %v2224_v63 = vadd.f32 %v2223_v16, %v5626_v9 }
 0x2f1   : > { %v2038_v56 = vpop.f32.mrf.mxu1  ;;  %v2225_v31 = vpop.f32.mrf.mxu0 }
 0x2f2   : > { %v3590_v39 = vpack.c.bf16 %v2035_v2, %v2033_v33  ;;  %v3621_v52 = vpack.c.bf16 %v2224_v63, %v2222_v20  ;;  %v2039_v51 = vadd.f32 %v2038_v56, %v5613_v43  ;;  %v2226_v61 = vadd.f32 %v2225_v31, %v5623_v27 }
 0x2f3   : > { %v2040_v55 = vpop.f32.mrf.mxu1  ;;  %v2227_v38 = vpop.f32.mrf.mxu0 }
 0x2f4   : > { %2821 = vst [vmem:[%s5635_s17 + $0x58] sm:$0xff] %v3590_v39  ;;  %3044 = vst [vmem:[%s5648_s1 + $0x50] sm:$0xff] %v3621_v52  ;;  %v2041_v10 = vadd.f32 %v2040_v55, %v5616_v14  ;;  %v2228_v54 = vadd.f32 %v2227_v38, %v5626_v9 }
 0x2f5   : > { %v2042_v23 = vpop.f32.mrf.mxu1  ;;  %v2231_v40 = vpop.f32.mrf.mxu0 }
 0x2f6   : > { %v3591_v13 = vpack.c.bf16 %v2041_v10, %v2039_v51  ;;  %v3622_v22 = vpack.c.bf16 %v2228_v54, %v2226_v61  ;;  %v2043_v36 = vadd.f32 %v2042_v23, %v5613_v43  ;;  %v2232_v41 = vadd.f32 %v2231_v40, %v5623_v27 }
 0x2f7   : > { %v2044_v35 = vpop.f32.mrf.mxu1  ;;  %v2233_v47 = vpop.f32.mrf.mxu0 }
 0x2f8   : > { %2822 = vst [vmem:[%s5635_s17 + $0x60] sm:$0xff] %v3591_v13  ;;  %3045 = vst [vmem:[%s5648_s1 + $0x58] sm:$0xff] %v3622_v22  ;;  %v2045_v29 = vadd.f32 %v2044_v35, %v5616_v14  ;;  %v2234_v0 = vadd.f32 %v2233_v47, %v5626_v9 }
 0x2f9   : > { %v2048_v42 = vpop.f32.mrf.mxu1  ;;  %v2235_v62 = vpop.f32.mrf.mxu0 }
 0x2fa   : > { %v3592_v58 = vpack.c.bf16 %v2045_v29, %v2043_v36  ;;  %v3623_v6 = vpack.c.bf16 %v2234_v0, %v2232_v41  ;;  %v2049_v49 = vadd.f32 %v2048_v42, %v5613_v43  ;;  %v2236_v46 = vadd.f32 %v2235_v62, %v5623_v27 }
 0x2fb   : > { %v2050_v60 = vpop.f32.mrf.mxu1  ;;  %v2237_v24 = vpop.f32.mrf.mxu0 }
 0x2fc   : > { %2823 = vst [vmem:[%s5635_s17 + $0x68] sm:$0xff] %v3592_v58  ;;  %3046 = vst [vmem:[%s5648_s1 + $0x60] sm:$0xff] %v3623_v6  ;;  %v2051_v5 = vadd.f32 %v2050_v60, %v5616_v14  ;;  %v2238_v37 = vadd.f32 %v2237_v24, %v5626_v9 }
 0x2fd   : > { %v2052_v7 = vpop.f32.mrf.mxu1  ;;  %v2241_v25 = vpop.f32.mrf.mxu0 }
 0x2fe   : > { %v3593_v59 = vpack.c.bf16 %v2051_v5, %v2049_v49  ;;  %v3624_v28 = vpack.c.bf16 %v2238_v37, %v2236_v46  ;;  %v2053_v1 = vadd.f32 %v2052_v7, %v5613_v43  ;;  %v2242_v19 = vadd.f32 %v2241_v25, %v5623_v27 }
 0x2ff   : > { %v2054_v12 = vpop.f32.mrf.mxu1  ;;  %v2243_v50 = vpop.f32.mrf.mxu0 }
 0x300   : > { %2824 = vst [vmem:[%s5635_s17 + $0x70] sm:$0xff] %v3593_v59  ;;  %3047 = vst [vmem:[%s5648_s1 + $0x68] sm:$0xff] %v3624_v28  ;;  %v2055_v26 = vadd.f32 %v2054_v12, %v5616_v14  ;;  %v2244_v53 = vadd.f32 %v2243_v50, %v5626_v9 }
 0x301   : > { %v2058_v17 = vpop.f32.mrf.mxu1  ;;  %v2245_v34 = vpop.f32.mrf.mxu0 }
 0x302   : > { %v3594_v30 = vpack.c.bf16 %v2055_v26, %v2053_v1  ;;  %v3625_v3 = vpack.c.bf16 %v2244_v53, %v2242_v19  ;;  %v2059_v44 = vadd.f32 %v2058_v17, %v5613_v43  ;;  %v2246_v11 = vadd.f32 %v2245_v34, %v5623_v27 }
 0x303   : > { %v2060_v57 = vpop.f32.mrf.mxu1  ;;  %v2247_v15 = vpop.f32.mrf.mxu0 }
 0x304   : > { %2825 = vst [vmem:[%s5635_s17 + $0x78] sm:$0xff] %v3594_v30  ;;  %3048 = vst [vmem:[%s5648_s1 + $0x70] sm:$0xff] %v3625_v3  ;;  %v2061_v32 = vadd.f32 %v2060_v57, %v5616_v14  ;;  %v2248_v8 = vadd.f32 %v2247_v15, %v5626_v9 }
 0x305   : > { %v2062_v45 = vpop.f32.mrf.mxu1  ;;  %v2251_v21 = vpop.f32.mrf.mxu0 }
 0x306   : > { %v3595_v48 = vpack.c.bf16 %v2061_v32, %v2059_v44  ;;  %v3626_v4 = vpack.c.bf16 %v2248_v8, %v2246_v11  ;;  %v2063_v33 = vadd.f32 %v2062_v45, %v5613_v43  ;;  %v2252_v20 = vadd.f32 %v2251_v21, %v5623_v27 }
 0x307   : > { %v2064_v18 = vpop.f32.mrf.mxu1  ;;  %v2253_v16 = vpop.f32.mrf.mxu0 }
 0x308   : > { %2826 = vst [vmem:[%s5635_s17 + $0x80] sm:$0xff] %v3595_v48  ;;  %3049 = vst [vmem:[%s5648_s1 + $0x78] sm:$0xff] %v3626_v4  ;;  %v2065_v2 = vadd.f32 %v2064_v18, %v5616_v14  ;;  %v2254_v63 = vadd.f32 %v2253_v16, %v5626_v9 }
 0x309   : > { %v2068_v56 = vpop.f32.mrf.mxu1  ;;  %v2255_v31 = vpop.f32.mrf.mxu0 }
 0x30a   : > { %v3596_v39 = vpack.c.bf16 %v2065_v2, %v2063_v33  ;;  %v3627_v52 = vpack.c.bf16 %v2254_v63, %v2252_v20  ;;  %v2069_v51 = vadd.f32 %v2068_v56, %v5613_v43  ;;  %v2256_v61 = vadd.f32 %v2255_v31, %v5623_v27 }
 0x30b   : > { %v2070_v55 = vpop.f32.mrf.mxu1  ;;  %v2257_v38 = vpop.f32.mrf.mxu0 }
 0x30c   : > { %2827 = vst [vmem:[%s5635_s17 + $0x88] sm:$0xff] %v3596_v39  ;;  %3050 = vst [vmem:[%s5648_s1 + $0x80] sm:$0xff] %v3627_v52  ;;  %v2071_v10 = vadd.f32 %v2070_v55, %v5616_v14  ;;  %v2258_v54 = vadd.f32 %v2257_v38, %v5626_v9 }
 0x30d   : > { %v2072_v23 = vpop.f32.mrf.mxu1  ;;  %v2261_v40 = vpop.f32.mrf.mxu0 }
 0x30e   : > { %v3597_v13 = vpack.c.bf16 %v2071_v10, %v2069_v51  ;;  %v3628_v22 = vpack.c.bf16 %v2258_v54, %v2256_v61  ;;  %v2073_v36 = vadd.f32 %v2072_v23, %v5613_v43  ;;  %v2262_v41 = vadd.f32 %v2261_v40, %v5623_v27 }
 0x30f   : > { %v2074_v35 = vpop.f32.mrf.mxu1  ;;  %v2263_v47 = vpop.f32.mrf.mxu0 }
 0x310   : > { %2828 = vst [vmem:[%s5635_s17 + $0x90] sm:$0xff] %v3597_v13  ;;  %3051 = vst [vmem:[%s5648_s1 + $0x88] sm:$0xff] %v3628_v22  ;;  %v2075_v29 = vadd.f32 %v2074_v35, %v5616_v14  ;;  %v2264_v0 = vadd.f32 %v2263_v47, %v5626_v9 }
 0x311   : > { %v2078_v42 = vpop.f32.mrf.mxu1  ;;  %v2265_v62 = vpop.f32.mrf.mxu0 }
 0x312   : > { %v3598_v58 = vpack.c.bf16 %v2075_v29, %v2073_v36  ;;  %v3629_v6 = vpack.c.bf16 %v2264_v0, %v2262_v41  ;;  %v2079_v49 = vadd.f32 %v2078_v42, %v5613_v43  ;;  %v2266_v46 = vadd.f32 %v2265_v62, %v5623_v27 }
 0x313   : > { %v2080_v60 = vpop.f32.mrf.mxu1  ;;  %v2267_v24 = vpop.f32.mrf.mxu0 }
 0x314   : > { %2829 = vst [vmem:[%s5635_s17 + $0x98] sm:$0xff] %v3598_v58  ;;  %3052 = vst [vmem:[%s5648_s1 + $0x90] sm:$0xff] %v3629_v6  ;;  %v2081_v5 = vadd.f32 %v2080_v60, %v5616_v14  ;;  %v2268_v37 = vadd.f32 %v2267_v24, %v5626_v9 }
 0x315   : > { %v2082_v7 = vpop.f32.mrf.mxu1  ;;  %v2271_v25 = vpop.f32.mrf.mxu0 }
 0x316   : > { %v3599_v59 = vpack.c.bf16 %v2081_v5, %v2079_v49  ;;  %v3630_v28 = vpack.c.bf16 %v2268_v37, %v2266_v46  ;;  %v2083_v1 = vadd.f32 %v2082_v7, %v5613_v43  ;;  %v2272_v19 = vadd.f32 %v2271_v25, %v5623_v27 }
 0x317   : > { %v2084_v12 = vpop.f32.mrf.mxu1  ;;  %v2273_v50 = vpop.f32.mrf.mxu0 }
 0x318   : > { %2830 = vst [vmem:[%s5635_s17 + $0xa0] sm:$0xff] %v3599_v59  ;;  %3053 = vst [vmem:[%s5648_s1 + $0x98] sm:$0xff] %v3630_v28  ;;  %v2085_v26 = vadd.f32 %v2084_v12, %v5616_v14  ;;  %v2274_v53 = vadd.f32 %v2273_v50, %v5626_v9 }
 0x319   : > { %v2088_v17 = vpop.f32.mrf.mxu1  ;;  %v2275_v34 = vpop.f32.mrf.mxu0 }
 0x31a   : > { %v3600_v30 = vpack.c.bf16 %v2085_v26, %v2083_v1  ;;  %v3631_v3 = vpack.c.bf16 %v2274_v53, %v2272_v19  ;;  %v2089_v44 = vadd.f32 %v2088_v17, %v5613_v43  ;;  %v2276_v11 = vadd.f32 %v2275_v34, %v5623_v27 }
 0x31b   : > { %v2090_v57 = vpop.f32.mrf.mxu1  ;;  %v2277_v15 = vpop.f32.mrf.mxu0 }
 0x31c   : > { %2831 = vst [vmem:[%s5635_s17 + $0xa8] sm:$0xff] %v3600_v30  ;;  %3054 = vst [vmem:[%s5648_s1 + $0xa0] sm:$0xff] %v3631_v3  ;;  %v2091_v32 = vadd.f32 %v2090_v57, %v5616_v14  ;;  %v2278_v8 = vadd.f32 %v2277_v15, %v5626_v9 }
 0x31d   : > { %v2092_v45 = vpop.f32.mrf.mxu1  ;;  %v2281_v21 = vpop.f32.mrf.mxu0 }
 0x31e   : > { %v3601_v48 = vpack.c.bf16 %v2091_v32, %v2089_v44  ;;  %v3632_v4 = vpack.c.bf16 %v2278_v8, %v2276_v11  ;;  %v2093_v33 = vadd.f32 %v2092_v45, %v5613_v43  ;;  %v2282_v20 = vadd.f32 %v2281_v21, %v5623_v27 }
 0x31f   : > { %v2094_v18 = vpop.f32.mrf.mxu1  ;;  %v2283_v16 = vpop.f32.mrf.mxu0 }
 0x320   : > { %2832 = vst [vmem:[%s5635_s17 + $0xb0] sm:$0xff] %v3601_v48  ;;  %3055 = vst [vmem:[%s5648_s1 + $0xa8] sm:$0xff] %v3632_v4  ;;  %v2095_v2 = vadd.f32 %v2094_v18, %v5616_v14  ;;  %v2284_v63 = vadd.f32 %v2283_v16, %v5626_v9 }
 0x321   : > { %v2098_v56 = vpop.f32.mrf.mxu1  ;;  %v2285_v31 = vpop.f32.mrf.mxu0 }
 0x322   : > { %v3602_v39 = vpack.c.bf16 %v2095_v2, %v2093_v33  ;;  %v3633_v52 = vpack.c.bf16 %v2284_v63, %v2282_v20  ;;  %v2099_v51 = vadd.f32 %v2098_v56, %v5613_v43  ;;  %v2286_v61 = vadd.f32 %v2285_v31, %v5623_v27 }
 0x323   : > { %v2100_v55 = vpop.f32.mrf.mxu1  ;;  %v2287_v38 = vpop.f32.mrf.mxu0 }
 0x324   : > { %2833 = vst [vmem:[%s5635_s17 + $0xb8] sm:$0xff] %v3602_v39  ;;  %3056 = vst [vmem:[%s5648_s1 + $0xb0] sm:$0xff] %v3633_v52  ;;  %v2101_v10 = vadd.f32 %v2100_v55, %v5616_v14  ;;  %v2288_v54 = vadd.f32 %v2287_v38, %v5626_v9 }
 0x325   : > { %v2102_v23 = vpop.f32.mrf.mxu1  ;;  %v2291_v40 = vpop.f32.mrf.mxu0 }
 0x326   : > { %v3603_v13 = vpack.c.bf16 %v2101_v10, %v2099_v51  ;;  %v3634_v22 = vpack.c.bf16 %v2288_v54, %v2286_v61  ;;  %v2103_v36 = vadd.f32 %v2102_v23, %v5613_v43  ;;  %v2292_v41 = vadd.f32 %v2291_v40, %v5623_v27 }
 0x327   : > { %v2104_v35 = vpop.f32.mrf.mxu1  ;;  %v2293_v47 = vpop.f32.mrf.mxu0 }
 0x328   : > { %2834 = vst [vmem:[%s5635_s17 + $0xc0] sm:$0xff] %v3603_v13  ;;  %3057 = vst [vmem:[%s5648_s1 + $0xb8] sm:$0xff] %v3634_v22  ;;  %v2105_v29 = vadd.f32 %v2104_v35, %v5616_v14  ;;  %v2294_v0 = vadd.f32 %v2293_v47, %v5626_v9 }
 0x329   : > { %v2108_v42 = vpop.f32.mrf.mxu1  ;;  %v2295_v62 = vpop.f32.mrf.mxu0 }
 0x32a   : > { %v3604_v58 = vpack.c.bf16 %v2105_v29, %v2103_v36  ;;  %v3635_v6 = vpack.c.bf16 %v2294_v0, %v2292_v41  ;;  %v2109_v49 = vadd.f32 %v2108_v42, %v5613_v43  ;;  %v2296_v46 = vadd.f32 %v2295_v62, %v5623_v27 }
 0x32b   : > { %v2110_v60 = vpop.f32.mrf.mxu1  ;;  %v2297_v24 = vpop.f32.mrf.mxu0 }
 0x32c   : > { %2835 = vst [vmem:[%s5635_s17 + $0xc8] sm:$0xff] %v3604_v58  ;;  %3058 = vst [vmem:[%s5648_s1 + $0xc0] sm:$0xff] %v3635_v6  ;;  %v2111_v5 = vadd.f32 %v2110_v60, %v5616_v14  ;;  %v2298_v37 = vadd.f32 %v2297_v24, %v5626_v9 }
 0x32d   : > { %v2112_v7 = vpop.f32.mrf.mxu1  ;;  %v2301_v25 = vpop.f32.mrf.mxu0 }
 0x32e   : > { %v3605_v59 = vpack.c.bf16 %v2111_v5, %v2109_v49  ;;  %v3636_v28 = vpack.c.bf16 %v2298_v37, %v2296_v46  ;;  %v2113_v1 = vadd.f32 %v2112_v7, %v5613_v43  ;;  %v2302_v19 = vadd.f32 %v2301_v25, %v5623_v27 }
 0x32f   : > { %v2114_v12 = vpop.f32.mrf.mxu1  ;;  %v2303_v50 = vpop.f32.mrf.mxu0 }
 0x330   : > { %2836 = vst [vmem:[%s5635_s17 + $0xd0] sm:$0xff] %v3605_v59  ;;  %3059 = vst [vmem:[%s5648_s1 + $0xc8] sm:$0xff] %v3636_v28  ;;  %v2115_v26 = vadd.f32 %v2114_v12, %v5616_v14  ;;  %v2304_v53 = vadd.f32 %v2303_v50, %v5626_v9 }
 0x331   : > { %v2118_v17 = vpop.f32.mrf.mxu1  ;;  %v2305_v34 = vpop.f32.mrf.mxu0 }
 0x332   : > { %v3606_v30 = vpack.c.bf16 %v2115_v26, %v2113_v1  ;;  %v3637_v3 = vpack.c.bf16 %v2304_v53, %v2302_v19  ;;  %v2119_v44 = vadd.f32 %v2118_v17, %v5613_v43  ;;  %v2306_v11 = vadd.f32 %v2305_v34, %v5623_v27 }
 0x333   : > { %v2120_v57 = vpop.f32.mrf.mxu1  ;;  %v2307_v15 = vpop.f32.mrf.mxu0 }
 0x334   : > { %2837 = vst [vmem:[%s5635_s17 + $0xd8] sm:$0xff] %v3606_v30  ;;  %3060 = vst [vmem:[%s5648_s1 + $0xd0] sm:$0xff] %v3637_v3  ;;  %v2121_v32 = vadd.f32 %v2120_v57, %v5616_v14  ;;  %v2308_v8 = vadd.f32 %v2307_v15, %v5626_v9 }
 0x335   : > { %v2122_v45 = vpop.f32.mrf.mxu1  ;;  %v2311_v21 = vpop.f32.mrf.mxu0 }
 0x336   : > { %v3607_v48 = vpack.c.bf16 %v2121_v32, %v2119_v44  ;;  %v3638_v4 = vpack.c.bf16 %v2308_v8, %v2306_v11  ;;  %v2123_v33 = vadd.f32 %v2122_v45, %v5613_v43  ;;  %v2312_v20 = vadd.f32 %v2311_v21, %v5623_v27 }
 0x337   : > { %v2124_v18 = vpop.f32.mrf.mxu1  ;;  %v2313_v16 = vpop.f32.mrf.mxu0 }
 0x338   : > { %2838 = vst [vmem:[%s5635_s17 + $0xe0] sm:$0xff] %v3607_v48  ;;  %3061 = vst [vmem:[%s5648_s1 + $0xd8] sm:$0xff] %v3638_v4  ;;  %v2125_v2 = vadd.f32 %v2124_v18, %v5616_v14  ;;  %v2314_v63 = vadd.f32 %v2313_v16, %v5626_v9 }
 0x339   : > { %v2128_v56 = vpop.f32.mrf.mxu1  ;;  %v2315_v31 = vpop.f32.mrf.mxu0 }
 0x33a   : > { %v3608_v39 = vpack.c.bf16 %v2125_v2, %v2123_v33  ;;  %v3639_v52 = vpack.c.bf16 %v2314_v63, %v2312_v20  ;;  %v2129_v51 = vadd.f32 %v2128_v56, %v5613_v43  ;;  %v2316_v61 = vadd.f32 %v2315_v31, %v5623_v27 }
 0x33b   : > { %v2130_v55 = vpop.f32.mrf.mxu1  ;;  %v2317_v38 = vpop.f32.mrf.mxu0 }
 0x33c   : > { %2839 = vst [vmem:[%s5635_s17 + $0xe8] sm:$0xff] %v3608_v39  ;;  %3062 = vst [vmem:[%s5648_s1 + $0xe0] sm:$0xff] %v3639_v52  ;;  %v2131_v10 = vadd.f32 %v2130_v55, %v5616_v14  ;;  %v2318_v54 = vadd.f32 %v2317_v38, %v5626_v9 }
 0x33d   : > { %v2132_v23 = vpop.f32.mrf.mxu1  ;;  %v2321_v40 = vpop.f32.mrf.mxu0 }
 0x33e   : > { %v3609_v13 = vpack.c.bf16 %v2131_v10, %v2129_v51  ;;  %v3640_v22 = vpack.c.bf16 %v2318_v54, %v2316_v61  ;;  %v2133_v36 = vadd.f32 %v2132_v23, %v5613_v43  ;;  %v2322_v41 = vadd.f32 %v2321_v40, %v5623_v27 }
 0x33f   : > { %v2134_v35 = vpop.f32.mrf.mxu1  ;;  %v2323_v47 = vpop.f32.mrf.mxu0 }
 0x340   : > { %2840 = vst [vmem:[%s5635_s17 + $0xf0] sm:$0xff] %v3609_v13  ;;  %3063 = vst [vmem:[%s5648_s1 + $0xe8] sm:$0xff] %v3640_v22  ;;  %v2135_v29 = vadd.f32 %v2134_v35, %v5616_v14  ;;  %v2324_v0 = vadd.f32 %v2323_v47, %v5626_v9 }
 0x341   : > { %v2325_v42 = vpop.f32.mrf.mxu0 }
 0x342   : > { %v3610_v62 = vpack.c.bf16 %v2135_v29, %v2133_v36  ;;  %v3641_v58 = vpack.c.bf16 %v2324_v0, %v2322_v41  ;;  %v2326_v14 = vadd.f32 %v2325_v42, %v5623_v27 }
 0x343   : > { %v2327_v43 = vpop.f32.mrf.mxu0 }
 0x344   : > { %2841 = vst [vmem:[%s5635_s17 + $0xf8] sm:$0xff] %v3610_v62  ;;  %3064 = vst [vmem:[%s5648_s1 + $0xf0] sm:$0xff] %v3641_v58  ;;  %v2328_v6 = vadd.f32 %v2327_v43, %v5626_v9 }
 0x345   : > { %4156 = shalt.err (!%p4153_p12)
}
 0x346   : > { %s4157_s17 = scalar_lea.hbm %s5870_s19, 4096  ;;  %s4161_s23 = scalar_lea.hbm %s6142_s12, 16384 }
 0x347   : > { %p4158_p10 = scmp.ne.s32.totalorder %s5870_s19, %s4157_s17  ;;  %p4162_p2 = scmp.lt.s32.totalorder %s5870_s19, %s6142_s12 }
 0x348   : > { %p4163_p3 = scmp.lt.s32.totalorder %s4161_s23, %s4157_s17 }
 0x349   : > { %p4159_p0 = pnand %p4158_p10, %p4452_p13 }
 0x34a   : > { %p4164_p4 = por %p4163_p3, %p4162_p2 }
 0x34b   : > { %p4160_p1 = pneg %p4159_p0 }
 0x34d   : > { %p4165_p6 = pnand %p4164_p4, %p4160_p1 }
 0x34f   : > { %4168 = shalt.err (!%p4165_p6)
}
 0x350   : > { %3693 = dma.vmem_to_hbm [thread:$0]  (%p4452_p13), %s5872_s28, 4096, %s5870_s19, %s5879_s29, %s4288_s22, %s4288_s22, %s4289_s27   ;;  %v3642_v27 = vpack.c.bf16 %v2328_v6, %v2326_v14 }
 0x351   : > { %s6143_s20 = sld [smem:[#allocation56_spill]]  ;;  %s4169_s3 = scalar_lea.vmem %s5913_s6, 4096 }
 0x352   : > { %3065 = vst [vmem:[%s5648_s1 + $0xf8] sm:$0xff] %v3642_v27  ;;  %p4170_p8 = scmp.ne.s32.totalorder %s5913_s6, %s4169_s3  ;;  %s4291_s7 = smov [#allocation13]  }
 0x353   : > { %s4173_s28 = sshll.u32 %s4291_s7, 4  ;;  %s4174_s28 = int_to_ptr.vmem [resolvable:$false] %s4173_s28 }
 0x354   : > { %p4171_p11 = pnand %p4170_p8, %p4452_p13  ;;  %s4175_s19 = scalar_lea.vmem %s4174_s28, 8192 }
 0x355   : > { %p4176_p7 = scmp.lt.s32.totalorder %s5913_s6, %s4174_s28  ;;  %p4177_p9 = scmp.lt.s32.totalorder %s4175_s19, %s4169_s3 }
 0x356   : > { %p4172_p5 = pneg %p4171_p11 }
 0x357   : > { %s5909_s21 = scalar_lea.hbm %s6143_s20, %s5644_s2  ;;  %p4178_p12 = por %p4177_p9, %p4176_p7 }
 0x359   : > { %p4179_p10 = pnand %p4178_p12, %p4172_p5 }
 0x35b   : > { %4182 = shalt.err (!%p4179_p10)
}
 0x35c   : > { %s4183_s2 = scalar_lea.hbm %s5909_s21, 4096  ;;  %s4187_s11 = scalar_lea.hbm %s6143_s20, 16384 }
 0x35d   : > { %p4184_p0 = scmp.ne.s32.totalorder %s5909_s21, %s4183_s2  ;;  %p4188_p3 = scmp.lt.s32.totalorder %s5909_s21, %s6143_s20 }
 0x35e   : > { %p4189_p4 = scmp.lt.s32.totalorder %s4187_s11, %s4183_s2 }
 0x35f   : > { %p4185_p1 = pnand %p4184_p0, %p4452_p13 }
 0x360   : > { %p4190_p6 = por %p4189_p4, %p4188_p3 }
 0x361   : > { %p4186_p2 = pneg %p4185_p1 }
 0x363   : > { %p4191_p8 = pnand %p4190_p6, %p4186_p2 }
 0x365   : > { %4194 = shalt.err (!%p4191_p8)
}
 0x366   : > { %3694 = dma.vmem_to_hbm [thread:$0]  (%p4452_p13), %s5913_s6, 4096, %s5909_s21, %s5879_s29, %s4288_s22, %s4288_s22, %s4289_s27  }
 0x367 PF: > { %s6144_s15 = sld [smem:[#allocation19_spill]]  ;;  %p3729_p11 = scmp.ge.s32.totalorder %s4277_s8, 2 }
 0x368   : > { %s6145_s24 = sld [smem:[#allocation21_spill]] }
 0x36d   : > { %s3146_s9 = sand.u32 1, %s6144_s15  }
 0x36e   : > { %p6146_p5 = scmp.ne.s32.totalorder %s6145_s24, 0  ;;  %s3147_s10 = scalar_lea.sflag [#allocation4], %s3146_s9 }
 0x370   : > { %p3713_p7 = pnand %p3729_p11, %p6146_p5 }
 0x372   : > { %p3714_p9 = pneg %p3713_p7 }
 0x374   : > { %4240 = dma.done.wait (%p3714_p9), %s3147_s10, 4096  }
 0x375   : > { %4242 = vsyncadd (%p3714_p9), %s3147_s10, 4294963200  ;;  %s6147_s18 = sadd.s32 4294967294, %s4277_s8  }
 0x376   : > { %s3155_s3 = sand.u32 1, %s6147_s18  }
 0x377   : > { %s3156_s7 = scalar_lea.sflag [#allocation12], %s3155_s3 }
 0x378   : > { %4244 = dma.done.wait (%p3714_p9), %s3156_s7, 8192  }
 0x379   : > { %4246 = vsyncadd (%p3714_p9), %s3156_s7, 4294959104  ;;  %s29_s8 = sadd.s32 1, %s4277_s8   ;;  %s6148_s27 = sld [smem:[#allocation20_spill]] }
 0x37a   : > { %p26_p13 = scmp.ge.s32.totalorder %s29_s8, 6   ;;  %s6149_s29 = sld [smem:[#allocation22_spill]] }
 0x37b   : > { %s6150_s24 = smov %s4253_s25  ;;  %s6151_s25 = smov %s4257_s26 }
 0x37c   : > { %s6152_s26 = smov %s4469_s14  ;;  %s6153_s28 = smov %s4273_s30 }
 0x37d   : > { %s6154_s30 = smov %s6160_s16  ;;  %28 = sbr.rel (!%p26_p13) target bundleno = 17 (0x11), region = 129 }
 0x382   :  { %3170 = vsyncpa [#allocation3], 1 }
 0x383   :  { %3172 = vsyncpa [#allocation3 + $0x1], 1 }
 0x384   :  { %3173 = vsyncpa [#allocation6], 1 }
 0x385   :  { %3174 = vsyncpa [#allocation9], 1 }
 0x386   :  { %3175 = vsyncpa [#allocation4], 1 }
 0x387   :  { %3177 = vsyncpa [#allocation4 + $0x1], 1 }
 0x388   :  { %3178 = vsyncpa [#allocation12], 1 }
 0x389   :  { %3180 = vsyncpa [#allocation12 + $0x1], 1 }

</bundles_post_ra>
